<compile_context>
chip_gen: v6e
topology: v6e:2x2x1
jax: 0.10.0
libtpu: 0.0.40
codegen_flags: <defaults>
</compile_context>

<pallas_src>
import jax
import jax.numpy as jnp
from jax import lax
from jax.experimental import pallas as pl
from jax.experimental.pallas import tpu as pltpu

EMB_DIM = 768
LSTM_DIM = 50          # real hidden size (matches the PyTorch module)
HP = 128               # lane-padded hidden size per LSTM
HF = 2 * HP            # fused hidden width: [comment | code] = 256
G1 = 4 * HP            # per-LSTM padded gate width (i,f,g,o) = 512
GF = 4 * HF            # fused gate width = 1024
HEAD_IN = HF + HP      # head input width: [h_c | h_d | metrics_pad] = 384
HEAD_PAD = 128         # padded head widths (106 -> 384 blocks, 25 -> 128, 5 -> 128)


# ----------------------------------------------------------------------------
# Single fused kernel: fused 2x LSTM recurrence + dense -> relu -> dense -> softmax
# ----------------------------------------------------------------------------
def fused_kernel(xc_ref, xd_ref, met_ref,
                 wih_ref, whh_ref, b_ref,
                 w1_ref, b1_ref, w2_ref, b2_ref,
                 out_ref, hs_ref):
    # xc_ref/xd_ref: (B, 768) f32       last-token embeddings (comment / code)
    # met_ref:       (B, 128) f32       metrics, lane-padded
    # wih_ref:       (2, 768, 512) bf16 per-LSTM input->gate weights (i,f,g,o)
    # whh_ref:       (256, 1024) bf16   fused block-diagonal hidden->gate weights
    # b_ref:         (1, 1024) f32      combined bias (b_ih + b_hh), fused layout
    # w1_ref:        (384, 128) bf16    first dense layer ([h_c|h_d|metrics] rows)
    # b1_ref:        (1, 128) f32
    # w2_ref:        (128, 128) bf16
    # b2_ref:        (1, 128) f32
    # out_ref:       (B, 128) f32       softmax probs in lanes [0:5]
    # hs_ref:        (B, 256) f32       VMEM scratch: per-step hidden states
    B = xc_ref.shape[0]

    # --- Hoisted input->gate projections (one matmul per LSTM), bf16 MXU -----
    g0 = jnp.dot(xc_ref[...].astype(jnp.bfloat16), wih_ref[0],
                 preferred_element_type=jnp.float32)                 # (B, 512)
    g1 = jnp.dot(xd_ref[...].astype(jnp.bfloat16), wih_ref[1],
                 preferred_element_type=jnp.float32)                 # (B, 512)

    # One-time, vreg-aligned interleave (off the serial chain) into the fused
    # gate-major layout: gate k = lanes [k*256, (k+1)*256) = [comment | code].
    parts = []
    for k in range(4):
        parts.append(g0[:, k * HP:(k + 1) * HP])
        parts.append(g1[:, k * HP:(k + 1) * HP])
    gates_in = jnp.concatenate(parts, axis=1) + b_ref[...]           # (B, 1024)

    w_hh = whh_ref[...]                                              # (256, 1024) bf16

    # --- Fused recurrence: both LSTMs advance in one (1,256)@(256,1024) dot ---
    h = jnp.zeros((1, HF), jnp.float32)
    c = jnp.zeros((1, HF), jnp.float32)
    for t in range(B):                     # T = B is static and tiny: unroll
        g_t = gates_in[t:t + 1, :] + jnp.dot(
            h.astype(jnp.bfloat16), w_hh,
            preferred_element_type=jnp.float32)                      # (1, 1024)
        i_g = jax.nn.sigmoid(g_t[:, 0 * HF:1 * HF])
        f_g = jax.nn.sigmoid(g_t[:, 1 * HF:2 * HF])
        g_g = jnp.tanh(g_t[:, 2 * HF:3 * HF])
        o_g = jax.nn.sigmoid(g_t[:, 3 * HF:4 * HF])
        c = f_g * c + i_g * g_g
        h = o_g * jnp.tanh(c)
        hs_ref[pl.ds(t, 1), :] = h         # direct row store, no concat/relayout
    # Padded lanes (>=50 within each 128 block) stay exactly 0: padded gate
    # cols/biases are 0, so g=tanh(0)=0 and tanh(c_pad=0)=0 -> h_pad=c_pad=0.

    # --- Head: [h_c | h_d | metrics] @ W1 -> relu -> @ W2 -> softmax(5) ------
    head_in = jnp.concatenate([hs_ref[...], met_ref[...]], axis=1)   # (B, 384)
    d1 = jnp.dot(head_in.astype(jnp.bfloat16), w1_ref[...],
                 preferred_element_type=jnp.float32) + b1_ref[...]   # (B, 128)
    h1 = jnp.maximum(d1, 0.0)
    logits = jnp.dot(h1.astype(jnp.bfloat16), w2_ref[...],
                     preferred_element_type=jnp.float32) + b2_ref[...]

    # Softmax over the 5 real lanes only (padded lanes masked), exact division
    # so every output row sums to 1 within f32 rounding.
    lane = lax.broadcasted_iota(jnp.int32, logits.shape, 1)
    mask = lane < 5
    ml = jnp.where(mask, logits, jnp.full_like(logits, -1e30))
    m = jnp.max(ml, axis=-1, keepdims=True)
    e = jnp.where(mask, jnp.exp(logits - m), jnp.zeros_like(logits))
    denom = jnp.sum(e, axis=-1, keepdims=True)
    out_ref[...] = e / denom


def run_fused(xc, xd, metrics_pad, params):
    B = xc.shape[0]
    vmem = pl.BlockSpec(memory_space=pltpu.MemorySpace.VMEM)
    return pl.pallas_call(
        fused_kernel,
        out_shape=jax.ShapeDtypeStruct((B, HEAD_PAD), jnp.float32),
        in_specs=[vmem] * 10,
        out_specs=vmem,
        scratch_shapes=[pltpu.VMEM((B, HF), jnp.float32)],
    )(xc, xd, metrics_pad,
      params["wih"], params["whh"], params["b"],
      params["w1"], params["b1"], params["w2"], params["b2"])


# ----------------------------------------------------------------------------
# Parameters (deterministic, built in-script, pre-padded to lane-dense layouts)
# ----------------------------------------------------------------------------
def make_params(metrics_dim, vocab_size=64, seed=0):
    keys = jax.random.split(jax.random.PRNGKey(seed), 12)
    s = 0.1
    H, E = LSTM_DIM, EMB_DIM

    def wih_padded(key):
        # gate order (i, f, g, o); gate k occupies lanes [k*128, k*128 + 50)
        w = s * jax.random.normal(key, (4, E, H), jnp.float32)
        wp = jnp.zeros((E, 4, HP), jnp.float32).at[:, :, :H].set(
            jnp.transpose(w, (1, 0, 2)))
        return wp.reshape(E, G1)

    wih = jnp.stack([wih_padded(keys[2]), wih_padded(keys[5])]).astype(jnp.bfloat16)

    # Fused block-diagonal hidden->gate weights and combined bias.
    whh_c = s * jax.random.normal(keys[3], (4, H, H), jnp.float32)
    whh_d = s * jax.random.normal(keys[6], (4, H, H), jnp.float32)
    b_c = s * jax.random.normal(keys[4], (4, H), jnp.float32)   # b_ih + b_hh combined
    b_d = s * jax.random.normal(keys[7], (4, H), jnp.float32)
    whh = jnp.zeros((HF, GF), jnp.float32)
    b = jnp.zeros((1, GF), jnp.float32)
    for k in range(4):
        whh = whh.at[0:H, k * HF:k * HF + H].set(whh_c[k])
        whh = whh.at[HP:HP + H, k * HF + HP:k * HF + HP + H].set(whh_d[k])
        b = b.at[0, k * HF:k * HF + H].set(b_c[k])
        b = b.at[0, k * HF + HP:k * HF + HP + H].set(b_d[k])

    # Dense head (real shapes: 2*50 + metrics_dim -> 25 -> 5), padded/bf16.
    in_dim = 2 * H + metrics_dim
    w1 = s * jax.random.normal(keys[8], (in_dim, 25), jnp.float32)
    b1 = s * jax.random.normal(keys[9], (1, 25), jnp.float32)
    w2 = s * jax.random.normal(keys[10], (25, 5), jnp.float32)
    b2 = s * jax.random.normal(keys[11], (1, 5), jnp.float32)

    w1_full = jnp.zeros((HEAD_IN, HEAD_PAD), jnp.float32)
    w1_full = w1_full.at[0:H, :25].set(w1[:H])                        # h_comment rows
    w1_full = w1_full.at[HP:HP + H, :25].set(w1[H:2 * H])             # h_code rows
    w1_full = w1_full.at[HF:HF + metrics_dim, :25].set(w1[2 * H:])    # metrics rows

    return {
        # stand-ins for the two CodeBERT encoders (embedding tables)
        "emb_comment": s * jax.random.normal(keys[0], (vocab_size, E), jnp.float32),
        "emb_code":    s * jax.random.normal(keys[1], (vocab_size, E), jnp.float32),
        # fused, padded LSTM weights
        "wih": wih,                                                   # (2, 768, 512) bf16
        "whh": whh.astype(jnp.bfloat16),                              # (256, 1024)  bf16
        "b":   b,                                                     # (1, 1024)    f32
        # padded head weights
        "w1":  w1_full.astype(jnp.bfloat16),                          # (384, 128)   bf16
        "b1":  jnp.zeros((1, HEAD_PAD), jnp.float32).at[:, :25].set(b1),
        "w2":  jnp.zeros((HEAD_PAD, HEAD_PAD), jnp.float32)
                 .at[:25, :5].set(w2).astype(jnp.bfloat16),           # (128, 128)   bf16
        "b2":  jnp.zeros((1, HEAD_PAD), jnp.float32).at[:, :5].set(b2),
    }


@jax.jit
def forward(params, comment_ids, comment_mask, code_ids, code_mask, metrics):
    # TODO(synk): RobertaModel encoders replaced by deterministic embedding lookups.
    # out[:, -1] of the (batch_first=False) LSTM depends only on the last-token
    # embedding of each example, so gather only that token (no (B,S,768) temp).
    xc = params["emb_comment"][comment_ids[:, -1]] * comment_mask[:, -1:]   # (B, 768)
    xd = params["emb_code"][code_ids[:, -1]] * code_mask[:, -1:]            # (B, 768)

    B = xc.shape[0]
    metrics_pad = jnp.zeros((B, HP), jnp.float32).at[:, :metrics.shape[1]].set(metrics)

    out_pad = run_fused(xc, xd, metrics_pad, params)                        # (B, 128)
    return out_pad[:, :5]


if __name__ == "__main__":
    B, S, VOCAB, METRICS_DIM = 4, 8, 64, 6

    key = jax.random.PRNGKey(0)
    k1, k2, k3 = jax.random.split(key, 3)
    comment_ids = jax.random.randint(k1, (B, S), 0, VOCAB, dtype=jnp.int32)
    code_ids = jax.random.randint(k2, (B, S), 0, VOCAB, dtype=jnp.int32)
    comment_mask = jnp.ones((B, S), jnp.float32)
    code_mask = jnp.ones((B, S), jnp.float32)
    metrics = jax.random.normal(k3, (B, METRICS_DIM), jnp.float32)

    params = make_params(METRICS_DIM, vocab_size=VOCAB, seed=0)

    out = forward(params, comment_ids, comment_mask, code_ids, code_mask, metrics)
    out = jax.block_until_ready(out)

    assert out.shape == (B, 5)
    assert bool(jnp.all(jnp.isfinite(out)))
    # exact-division softmax -> rows sum to 1 within f32 rounding
    assert jnp.allclose(jnp.sum(out, axis=1), 1.0, atol=1e-3)
    print("KERNEL_OK")
</pallas_src>

<mosaic_0001>
module attributes {stable_mosaic.version = 11 : i64} {
  func.func @fused_kernel(%arg0: memref<4x768xf32, #tpu.memory_space<vmem>>, %arg1: memref<4x768xf32, #tpu.memory_space<vmem>>, %arg2: memref<4x128xf32, #tpu.memory_space<vmem>>, %arg3: memref<2x768x512xbf16, #tpu.memory_space<vmem>>, %arg4: memref<256x1024xbf16, #tpu.memory_space<vmem>>, %arg5: memref<1x1024xf32, #tpu.memory_space<vmem>>, %arg6: memref<384x128xbf16, #tpu.memory_space<vmem>>, %arg7: memref<1x128xf32, #tpu.memory_space<vmem>>, %arg8: memref<128x128xbf16, #tpu.memory_space<vmem>>, %arg9: memref<1x128xf32, #tpu.memory_space<vmem>>, %arg10: memref<4x128xf32, #tpu.memory_space<vmem>>, %arg11: memref<4x256xf32, #tpu.memory_space<vmem>>) attributes {dimension_semantics = [], scalar_prefetch = 0 : i64, scratch_operands = 1 : i64, tpu.core_type = #tpu.core_type<tc>} {
    %c0 = arith.constant 0 : index
    %c0_0 = arith.constant 0 : index
    %0 = vector.load %arg0[%c0, %c0_0] : memref<4x768xf32, #tpu.memory_space<vmem>>, vector<4x768xf32>
    %1 = arith.truncf %0 : vector<4x768xf32> to vector<4x768xbf16>
    %c0_1 = arith.constant 0 : index
    %c0_2 = arith.constant 0 : index
    %c0_3 = arith.constant 0 : index
    %2 = vector.load %arg3[%c0_1, %c0_2, %c0_3] : memref<2x768x512xbf16, #tpu.memory_space<vmem>>, vector<1x768x512xbf16>
    %3 = vector.shape_cast %2 : vector<1x768x512xbf16> to vector<768x512xbf16>
    %cst = arith.constant dense<0.000000e+00> : vector<4x512xf32>
    %4 = tpu.matmul %1, %3, %cst {dimension_numbers = #tpu.dot_dimension_numbers<[1], [0], [0], [1], [0, 0, 1, 1], [], []>} : vector<4x768xbf16>, vector<768x512xbf16>, vector<4x512xf32> -> vector<4x512xf32>
    %c0_4 = arith.constant 0 : index
    %c0_5 = arith.constant 0 : index
    %5 = vector.load %arg1[%c0_4, %c0_5] : memref<4x768xf32, #tpu.memory_space<vmem>>, vector<4x768xf32>
    %6 = arith.truncf %5 : vector<4x768xf32> to vector<4x768xbf16>
    %c1 = arith.constant 1 : index
    %c0_6 = arith.constant 0 : index
    %c0_7 = arith.constant 0 : index
    %7 = vector.load %arg3[%c1, %c0_6, %c0_7] : memref<2x768x512xbf16, #tpu.memory_space<vmem>>, vector<1x768x512xbf16>
    %8 = vector.shape_cast %7 : vector<1x768x512xbf16> to vector<768x512xbf16>
    %cst_8 = arith.constant dense<0.000000e+00> : vector<4x512xf32>
    %9 = tpu.matmul %6, %8, %cst_8 {dimension_numbers = #tpu.dot_dimension_numbers<[1], [0], [0], [1], [0, 0, 1, 1], [], []>} : vector<4x768xbf16>, vector<768x512xbf16>, vector<4x512xf32> -> vector<4x512xf32>
    %10 = vector.extract_strided_slice %4 {offsets = [0, 0], sizes = [4, 128], strides = [1, 1]} : vector<4x512xf32> to vector<4x128xf32>
    %11 = vector.extract_strided_slice %9 {offsets = [0, 0], sizes = [4, 128], strides = [1, 1]} : vector<4x512xf32> to vector<4x128xf32>
    %12 = vector.extract_strided_slice %4 {offsets = [0, 128], sizes = [4, 128], strides = [1, 1]} : vector<4x512xf32> to vector<4x128xf32>
    %13 = vector.extract_strided_slice %9 {offsets = [0, 128], sizes = [4, 128], strides = [1, 1]} : vector<4x512xf32> to vector<4x128xf32>
    %14 = vector.extract_strided_slice %4 {offsets = [0, 256], sizes = [4, 128], strides = [1, 1]} : vector<4x512xf32> to vector<4x128xf32>
    %15 = vector.extract_strided_slice %9 {offsets = [0, 256], sizes = [4, 128], strides = [1, 1]} : vector<4x512xf32> to vector<4x128xf32>
    %16 = vector.extract_strided_slice %4 {offsets = [0, 384], sizes = [4, 128], strides = [1, 1]} : vector<4x512xf32> to vector<4x128xf32>
    %17 = vector.extract_strided_slice %9 {offsets = [0, 384], sizes = [4, 128], strides = [1, 1]} : vector<4x512xf32> to vector<4x128xf32>
    %18 = tpu.concatenate %10, %11, %12, %13, %14, %15, %16, %17 in 1 : vector<4x128xf32>, vector<4x128xf32>, vector<4x128xf32>, vector<4x128xf32>, vector<4x128xf32>, vector<4x128xf32>, vector<4x128xf32>, vector<4x128xf32> -> vector<4x1024xf32>
    %c0_9 = arith.constant 0 : index
    %c0_10 = arith.constant 0 : index
    %19 = vector.load %arg5[%c0_9, %c0_10] : memref<1x1024xf32, #tpu.memory_space<vmem>>, vector<1x1024xf32>
    %20 = vector.broadcast %19 : vector<1x1024xf32> to vector<4x1024xf32>
    %21 = arith.addf %18, %20 : vector<4x1024xf32>
    %c0_11 = arith.constant 0 : index
    %c0_12 = arith.constant 0 : index
    %22 = vector.load %arg4[%c0_11, %c0_12] : memref<256x1024xbf16, #tpu.memory_space<vmem>>, vector<256x1024xbf16>
    %cst_13 = arith.constant 0.000000e+00 : f32
    %23 = vector.broadcast %cst_13 : f32 to vector<1x256xf32>
    %cst_14 = arith.constant 0.000000e+00 : f32
    %24 = vector.broadcast %cst_14 : f32 to vector<1x256xf32>
    %25 = vector.extract_strided_slice %21 {offsets = [0, 0], sizes = [1, 1024], strides = [1, 1]} : vector<4x1024xf32> to vector<1x1024xf32>
    %26 = arith.truncf %23 : vector<1x256xf32> to vector<1x256xbf16>
    %cst_15 = arith.constant dense<0.000000e+00> : vector<1x1024xf32>
    %27 = tpu.matmul %26, %22, %cst_15 {dimension_numbers = #tpu.dot_dimension_numbers<[1], [0], [0], [1], [0, 0, 1, 1], [], []>} : vector<1x256xbf16>, vector<256x1024xbf16>, vector<1x1024xf32> -> vector<1x1024xf32>
    %28 = arith.addf %25, %27 : vector<1x1024xf32>
    %29 = vector.extract_strided_slice %28 {offsets = [0, 0], sizes = [1, 256], strides = [1, 1]} : vector<1x1024xf32> to vector<1x256xf32>
    %30 = arith.negf %29 : vector<1x256xf32>
    %31 = math.exp %30 : vector<1x256xf32>
    %cst_16 = arith.constant 1.000000e+00 : f32
    %32 = vector.broadcast %cst_16 : f32 to vector<1x256xf32>
    %33 = arith.addf %32, %31 : vector<1x256xf32>
    %34 = arith.divf %32, %33 : vector<1x256xf32>
    %35 = vector.extract_strided_slice %28 {offsets = [0, 256], sizes = [1, 256], strides = [1, 1]} : vector<1x1024xf32> to vector<1x256xf32>
    %36 = arith.negf %35 : vector<1x256xf32>
    %37 = math.exp %36 : vector<1x256xf32>
    %cst_17 = arith.constant 1.000000e+00 : f32
    %38 = vector.broadcast %cst_17 : f32 to vector<1x256xf32>
    %39 = arith.addf %38, %37 : vector<1x256xf32>
    %40 = arith.divf %38, %39 : vector<1x256xf32>
    %41 = vector.extract_strided_slice %28 {offsets = [0, 512], sizes = [1, 256], strides = [1, 1]} : vector<1x1024xf32> to vector<1x256xf32>
    %42 = math.tanh %41 : vector<1x256xf32>
    %43 = vector.extract_strided_slice %28 {offsets = [0, 768], sizes = [1, 256], strides = [1, 1]} : vector<1x1024xf32> to vector<1x256xf32>
    %44 = arith.negf %43 : vector<1x256xf32>
    %45 = math.exp %44 : vector<1x256xf32>
    %cst_18 = arith.constant 1.000000e+00 : f32
    %46 = vector.broadcast %cst_18 : f32 to vector<1x256xf32>
    %47 = arith.addf %46, %45 : vector<1x256xf32>
    %48 = arith.divf %46, %47 : vector<1x256xf32>
    %49 = arith.mulf %40, %24 : vector<1x256xf32>
    %50 = arith.mulf %34, %42 : vector<1x256xf32>
    %51 = arith.addf %49, %50 : vector<1x256xf32>
    %52 = math.tanh %51 : vector<1x256xf32>
    %53 = arith.mulf %48, %52 : vector<1x256xf32>
    %c0_19 = arith.constant 0 : index
    %c0_20 = arith.constant 0 : index
    %54 = vector.load %arg11[%c0_19, %c0_20] : memref<4x256xf32, #tpu.memory_space<vmem>>, vector<1x256xf32>
    tpu.vector_store %arg11[%c0_19, %c0_20], %53 {strides = array<i32>} : memref<4x256xf32, #tpu.memory_space<vmem>>, vector<1x256xf32>,
    %55 = vector.extract_strided_slice %21 {offsets = [1, 0], sizes = [1, 1024], strides = [1, 1]} : vector<4x1024xf32> to vector<1x1024xf32>
    %56 = arith.truncf %53 : vector<1x256xf32> to vector<1x256xbf16>
    %cst_21 = arith.constant dense<0.000000e+00> : vector<1x1024xf32>
    %57 = tpu.matmul %56, %22, %cst_21 {dimension_numbers = #tpu.dot_dimension_numbers<[1], [0], [0], [1], [0, 0, 1, 1], [], []>} : vector<1x256xbf16>, vector<256x1024xbf16>, vector<1x1024xf32> -> vector<1x1024xf32>
    %58 = arith.addf %55, %57 : vector<1x1024xf32>
    %59 = vector.extract_strided_slice %58 {offsets = [0, 0], sizes = [1, 256], strides = [1, 1]} : vector<1x1024xf32> to vector<1x256xf32>
    %60 = arith.negf %59 : vector<1x256xf32>
    %61 = math.exp %60 : vector<1x256xf32>
    %cst_22 = arith.constant 1.000000e+00 : f32
    %62 = vector.broadcast %cst_22 : f32 to vector<1x256xf32>
    %63 = arith.addf %62, %61 : vector<1x256xf32>
    %64 = arith.divf %62, %63 : vector<1x256xf32>
    %65 = vector.extract_strided_slice %58 {offsets = [0, 256], sizes = [1, 256], strides = [1, 1]} : vector<1x1024xf32> to vector<1x256xf32>
    %66 = arith.negf %65 : vector<1x256xf32>
    %67 = math.exp %66 : vector<1x256xf32>
    %cst_23 = arith.constant 1.000000e+00 : f32
    %68 = vector.broadcast %cst_23 : f32 to vector<1x256xf32>
    %69 = arith.addf %68, %67 : vector<1x256xf32>
    %70 = arith.divf %68, %69 : vector<1x256xf32>
    %71 = vector.extract_strided_slice %58 {offsets = [0, 512], sizes = [1, 256], strides = [1, 1]} : vector<1x1024xf32> to vector<1x256xf32>
    %72 = math.tanh %71 : vector<1x256xf32>
    %73 = vector.extract_strided_slice %58 {offsets = [0, 768], sizes = [1, 256], strides = [1, 1]} : vector<1x1024xf32> to vector<1x256xf32>
    %74 = arith.negf %73 : vector<1x256xf32>
    %75 = math.exp %74 : vector<1x256xf32>
    %cst_24 = arith.constant 1.000000e+00 : f32
    %76 = vector.broadcast %cst_24 : f32 to vector<1x256xf32>
    %77 = arith.addf %76, %75 : vector<1x256xf32>
    %78 = arith.divf %76, %77 : vector<1x256xf32>
    %79 = arith.mulf %70, %51 : vector<1x256xf32>
    %80 = arith.mulf %64, %72 : vector<1x256xf32>
    %81 = arith.addf %79, %80 : vector<1x256xf32>
    %82 = math.tanh %81 : vector<1x256xf32>
    %83 = arith.mulf %78, %82 : vector<1x256xf32>
    %c1_25 = arith.constant 1 : index
    %c0_26 = arith.constant 0 : index
    %84 = vector.load %arg11[%c1_25, %c0_26] : memref<4x256xf32, #tpu.memory_space<vmem>>, vector<1x256xf32>
    tpu.vector_store %arg11[%c1_25, %c0_26], %83 {strides = array<i32>} : memref<4x256xf32, #tpu.memory_space<vmem>>, vector<1x256xf32>,
    %85 = vector.extract_strided_slice %21 {offsets = [2, 0], sizes = [1, 1024], strides = [1, 1]} : vector<4x1024xf32> to vector<1x1024xf32>
    %86 = arith.truncf %83 : vector<1x256xf32> to vector<1x256xbf16>
    %cst_27 = arith.constant dense<0.000000e+00> : vector<1x1024xf32>
    %87 = tpu.matmul %86, %22, %cst_27 {dimension_numbers = #tpu.dot_dimension_numbers<[1], [0], [0], [1], [0, 0, 1, 1], [], []>} : vector<1x256xbf16>, vector<256x1024xbf16>, vector<1x1024xf32> -> vector<1x1024xf32>
    %88 = arith.addf %85, %87 : vector<1x1024xf32>
    %89 = vector.extract_strided_slice %88 {offsets = [0, 0], sizes = [1, 256], strides = [1, 1]} : vector<1x1024xf32> to vector<1x256xf32>
    %90 = arith.negf %89 : vector<1x256xf32>
    %91 = math.exp %90 : vector<1x256xf32>
    %cst_28 = arith.constant 1.000000e+00 : f32
    %92 = vector.broadcast %cst_28 : f32 to vector<1x256xf32>
    %93 = arith.addf %92, %91 : vector<1x256xf32>
    %94 = arith.divf %92, %93 : vector<1x256xf32>
    %95 = vector.extract_strided_slice %88 {offsets = [0, 256], sizes = [1, 256], strides = [1, 1]} : vector<1x1024xf32> to vector<1x256xf32>
    %96 = arith.negf %95 : vector<1x256xf32>
    %97 = math.exp %96 : vector<1x256xf32>
    %cst_29 = arith.constant 1.000000e+00 : f32
    %98 = vector.broadcast %cst_29 : f32 to vector<1x256xf32>
    %99 = arith.addf %98, %97 : vector<1x256xf32>
    %100 = arith.divf %98, %99 : vector<1x256xf32>
    %101 = vector.extract_strided_slice %88 {offsets = [0, 512], sizes = [1, 256], strides = [1, 1]} : vector<1x1024xf32> to vector<1x256xf32>
    %102 = math.tanh %101 : vector<1x256xf32>
    %103 = vector.extract_strided_slice %88 {offsets = [0, 768], sizes = [1, 256], strides = [1, 1]} : vector<1x1024xf32> to vector<1x256xf32>
    %104 = arith.negf %103 : vector<1x256xf32>
    %105 = math.exp %104 : vector<1x256xf32>
    %cst_30 = arith.constant 1.000000e+00 : f32
    %106 = vector.broadcast %cst_30 : f32 to vector<1x256xf32>
    %107 = arith.addf %106, %105 : vector<1x256xf32>
    %108 = arith.divf %106, %107 : vector<1x256xf32>
    %109 = arith.mulf %100, %81 : vector<1x256xf32>
    %110 = arith.mulf %94, %102 : vector<1x256xf32>
    %111 = arith.addf %109, %110 : vector<1x256xf32>
    %112 = math.tanh %111 : vector<1x256xf32>
    %113 = arith.mulf %108, %112 : vector<1x256xf32>
    %c2 = arith.constant 2 : index
    %c0_31 = arith.constant 0 : index
    %114 = vector.load %arg11[%c2, %c0_31] : memref<4x256xf32, #tpu.memory_space<vmem>>, vector<1x256xf32>
    tpu.vector_store %arg11[%c2, %c0_31], %113 {strides = array<i32>} : memref<4x256xf32, #tpu.memory_space<vmem>>, vector<1x256xf32>,
    %115 = vector.extract_strided_slice %21 {offsets = [3, 0], sizes = [1, 1024], strides = [1, 1]} : vector<4x1024xf32> to vector<1x1024xf32>
    %116 = arith.truncf %113 : vector<1x256xf32> to vector<1x256xbf16>
    %cst_32 = arith.constant dense<0.000000e+00> : vector<1x1024xf32>
    %117 = tpu.matmul %116, %22, %cst_32 {dimension_numbers = #tpu.dot_dimension_numbers<[1], [0], [0], [1], [0, 0, 1, 1], [], []>} : vector<1x256xbf16>, vector<256x1024xbf16>, vector<1x1024xf32> -> vector<1x1024xf32>
    %118 = arith.addf %115, %117 : vector<1x1024xf32>
    %119 = vector.extract_strided_slice %118 {offsets = [0, 0], sizes = [1, 256], strides = [1, 1]} : vector<1x1024xf32> to vector<1x256xf32>
    %120 = arith.negf %119 : vector<1x256xf32>
    %121 = math.exp %120 : vector<1x256xf32>
    %cst_33 = arith.constant 1.000000e+00 : f32
    %122 = vector.broadcast %cst_33 : f32 to vector<1x256xf32>
    %123 = arith.addf %122, %121 : vector<1x256xf32>
    %124 = arith.divf %122, %123 : vector<1x256xf32>
    %125 = vector.extract_strided_slice %118 {offsets = [0, 256], sizes = [1, 256], strides = [1, 1]} : vector<1x1024xf32> to vector<1x256xf32>
    %126 = arith.negf %125 : vector<1x256xf32>
    %127 = math.exp %126 : vector<1x256xf32>
    %cst_34 = arith.constant 1.000000e+00 : f32
    %128 = vector.broadcast %cst_34 : f32 to vector<1x256xf32>
    %129 = arith.addf %128, %127 : vector<1x256xf32>
    %130 = arith.divf %128, %129 : vector<1x256xf32>
    %131 = vector.extract_strided_slice %118 {offsets = [0, 512], sizes = [1, 256], strides = [1, 1]} : vector<1x1024xf32> to vector<1x256xf32>
    %132 = math.tanh %131 : vector<1x256xf32>
    %133 = vector.extract_strided_slice %118 {offsets = [0, 768], sizes = [1, 256], strides = [1, 1]} : vector<1x1024xf32> to vector<1x256xf32>
    %134 = arith.negf %133 : vector<1x256xf32>
    %135 = math.exp %134 : vector<1x256xf32>
    %cst_35 = arith.constant 1.000000e+00 : f32
    %136 = vector.broadcast %cst_35 : f32 to vector<1x256xf32>
    %137 = arith.addf %136, %135 : vector<1x256xf32>
    %138 = arith.divf %136, %137 : vector<1x256xf32>
    %139 = arith.mulf %130, %111 : vector<1x256xf32>
    %140 = arith.mulf %124, %132 : vector<1x256xf32>
    %141 = arith.addf %139, %140 : vector<1x256xf32>
    %142 = math.tanh %141 : vector<1x256xf32>
    %143 = arith.mulf %138, %142 : vector<1x256xf32>
    %c3 = arith.constant 3 : index
    %c0_36 = arith.constant 0 : index
    %144 = vector.load %arg11[%c3, %c0_36] : memref<4x256xf32, #tpu.memory_space<vmem>>, vector<1x256xf32>
    tpu.vector_store %arg11[%c3, %c0_36], %143 {strides = array<i32>} : memref<4x256xf32, #tpu.memory_space<vmem>>, vector<1x256xf32>,
    %c0_37 = arith.constant 0 : index
    %c0_38 = arith.constant 0 : index
    %145 = vector.load %arg11[%c0_37, %c0_38] : memref<4x256xf32, #tpu.memory_space<vmem>>, vector<4x256xf32>
    %c0_39 = arith.constant 0 : index
    %c0_40 = arith.constant 0 : index
    %146 = vector.load %arg2[%c0_39, %c0_40] : memref<4x128xf32, #tpu.memory_space<vmem>>, vector<4x128xf32>
    %147 = tpu.concatenate %145, %146 in 1 : vector<4x256xf32>, vector<4x128xf32> -> vector<4x384xf32>
    %148 = arith.truncf %147 : vector<4x384xf32> to vector<4x384xbf16>
    %c0_41 = arith.constant 0 : index
    %c0_42 = arith.constant 0 : index
    %149 = vector.load %arg6[%c0_41, %c0_42] : memref<384x128xbf16, #tpu.memory_space<vmem>>, vector<384x128xbf16>
    %cst_43 = arith.constant dense<0.000000e+00> : vector<4x128xf32>
    %150 = tpu.matmul %148, %149, %cst_43 {dimension_numbers = #tpu.dot_dimension_numbers<[1], [0], [0], [1], [0, 0, 1, 1], [], []>} : vector<4x384xbf16>, vector<384x128xbf16>, vector<4x128xf32> -> vector<4x128xf32>
    %c0_44 = arith.constant 0 : index
    %c0_45 = arith.constant 0 : index
    %151 = vector.load %arg7[%c0_44, %c0_45] : memref<1x128xf32, #tpu.memory_space<vmem>>, vector<1x128xf32>
    %152 = vector.broadcast %151 : vector<1x128xf32> to vector<4x128xf32>
    %153 = arith.addf %150, %152 : vector<4x128xf32>
    %cst_46 = arith.constant 0.000000e+00 : f32
    %154 = vector.broadcast %cst_46 : f32 to vector<4x128xf32>
    %155 = arith.maximumf %153, %154 : vector<4x128xf32>
    %156 = arith.truncf %155 : vector<4x128xf32> to vector<4x128xbf16>
    %c0_47 = arith.constant 0 : index
    %c0_48 = arith.constant 0 : index
    %157 = vector.load %arg8[%c0_47, %c0_48] : memref<128x128xbf16, #tpu.memory_space<vmem>>, vector<128x128xbf16>
    %cst_49 = arith.constant dense<0.000000e+00> : vector<4x128xf32>
    %158 = tpu.matmul %156, %157, %cst_49 {dimension_numbers = #tpu.dot_dimension_numbers<[1], [0], [0], [1], [0, 0, 1, 1], [], []>} : vector<4x128xbf16>, vector<128x128xbf16>, vector<4x128xf32> -> vector<4x128xf32>
    %c0_50 = arith.constant 0 : index
    %c0_51 = arith.constant 0 : index
    %159 = vector.load %arg9[%c0_50, %c0_51] : memref<1x128xf32, #tpu.memory_space<vmem>>, vector<1x128xf32>
    %160 = vector.broadcast %159 : vector<1x128xf32> to vector<4x128xf32>
    %161 = arith.addf %158, %160 : vector<4x128xf32>
    %162 = tpu.iota {dimensions = array<i32: 1>} : vector<4x128xi32>
    %c5_i32 = arith.constant 5 : i32
    %163 = vector.broadcast %c5_i32 : i32 to vector<4x128xi32>
    %164 = arith.cmpi slt, %162, %163 : vector<4x128xi32>
    %cst_52 = arith.constant -1.000000e+30 : f32
    %165 = vector.broadcast %cst_52 : f32 to vector<4x128xf32>
    %166 = arith.select %164, %161, %165 : vector<4x128xi1>, vector<4x128xf32>
    %cst_53 = arith.constant dense<0xFF800000> : vector<4xf32>
    %167 = vector.multi_reduction <maximumf>, %166, %cst_53 [1] : vector<4x128xf32> to vector<4xf32>
    %168 = vector.shape_cast %167 : vector<4xf32> to vector<4x1xf32>
    %169 = vector.broadcast %168 : vector<4x1xf32> to vector<4x128xf32>
    %170 = arith.subf %161, %169 : vector<4x128xf32>
    %171 = math.exp %170 : vector<4x128xf32>
    %cst_54 = arith.constant 0.000000e+00 : f32
    %172 = vector.broadcast %cst_54 : f32 to vector<4x128xf32>
    %173 = arith.select %164, %171, %172 : vector<4x128xi1>, vector<4x128xf32>
    %cst_55 = arith.constant dense<0.000000e+00> : vector<4xf32>
    %174 = vector.multi_reduction <add>, %173, %cst_55 [1] : vector<4x128xf32> to vector<4xf32>
    %175 = vector.shape_cast %174 : vector<4xf32> to vector<4x1xf32>
    %176 = vector.broadcast %175 : vector<4x1xf32> to vector<4x128xf32>
    %177 = arith.divf %173, %176 : vector<4x128xf32>
    %c0_56 = arith.constant 0 : index
    %c0_57 = arith.constant 0 : index
    %178 = vector.load %arg10[%c0_56, %c0_57] : memref<4x128xf32, #tpu.memory_space<vmem>>, vector<4x128xf32>
    tpu.vector_store %arg10[%c0_56, %c0_57], %177 {strides = array<i32>} : memref<4x128xf32, #tpu.memory_space<vmem>>, vector<4x128xf32>,
    return
  }
}

</mosaic_0001>

<bundles_post_ra>
// kernel: forward.1
= control target key start
LH: loop header
LB: loop body
LE: loop exit
PB: predicated region body
PF: predicated region fallthrough
CT: control target
= control target key end

     0   :  { %15 = vsyncpa [#allocation4], 0  ;;  %s8025_s0 = inlined_call_operand.vmem [shape: f32[4,768], index: 0, kind: input, shape index: {}]   ;;  %s8026_s1 = inlined_call_operand.vmem [shape: f32[4,768], index: 1, kind: input, shape index: {}]   ;;  %s8027_s2 = inlined_call_operand.vmem [shape: f32[4,128], index: 2, kind: input, shape index: {}]   ;;  %s8028_s3 = inlined_call_operand.hbm [shape: bf16[2,768,512], index: 3, kind: input, shape index: {}]   ;;  %s8029_s4 = inlined_call_operand.hbm [shape: bf16[256,1024], index: 4, kind: input, shape index: {}]   ;;  %s8030_s5 = inlined_call_operand.hbm [shape: f32[1,1024], index: 5, kind: input, shape index: {}]   ;;  %s8031_s6 = inlined_call_operand.hbm [shape: bf16[384,128], index: 6, kind: input, shape index: {}]   ;;  %s8032_s7 = inlined_call_operand.hbm [shape: f32[1,128], index: 7, kind: input, shape index: {}]   ;;  %s8033_s8 = inlined_call_operand.hbm [shape: bf16[128,128], index: 8, kind: input, shape index: {}]   ;;  %s8034_s9 = inlined_call_operand.hbm [shape: f32[1,128], index: 9, kind: input, shape index: {}]   ;;  %s8035_s10 = inlined_call_operand.hbm [shape: f32[4,128], index: 10, kind: output, shape index: {}]  }
   0x1   :  { %16 = vsyncpa [#allocation7], 0 }
   0x2   :  { %17 = vsyncpa [#allocation10], 0 }
   0x3   :  { %18 = vsyncpa [#allocation13], 0 }
   0x4   :  { %19 = vsyncpa [#allocation5], 0  ;;  %s6875_s13 = smov [#allocation6]  }
   0x5   :  { %s43_s14 = sshll.u32 %s6875_s13, 4  ;;  %s44_s14 = int_to_ptr.vmem [resolvable:$true] %s43_s14 }
   0x6   :  { %s6713_s15 = scalar_lea.vmem %s44_s14, 16384  ;;  %p6718_p1 = scmp.lt.s32.totalorder %s44_s14, %s44_s14 }
   0x7   :  { %p6714_p0 = scmp.ne.s32.totalorder %s44_s14, %s6713_s15  ;;  %p6719_p2 = scmp.lt.s32.totalorder %s6713_s15, %s6713_s15 }
   0x9   :  { %p6720_p3 = por %p6719_p2, %p6718_p1 }
   0xb   :  { %p6721_p4 = pnand %p6720_p3, %p6714_p0 }
   0xd   :  { %6724 = shalt.err (!%p6721_p4)
}
   0xe   :  { %s6876_s16 = smov 512   ;;  %s6877_s17 = smov 32  }
   0xf   :  { %49 = dma.hbm_to_vmem [thread:$0]  %s8029_s4, 16384, %s44_s14, [#allocation7], %s6876_s16, %s6876_s16, %s6877_s17  }
  0x10   :  { %s6878_s20 = smov [#allocation9]  }
  0x11   :  { %s65_s21 = sshll.u32 %s6878_s20, 4  ;;  %s66_s21 = int_to_ptr.vmem [resolvable:$true] %s65_s21 }
  0x12   :  { %s6733_s22 = scalar_lea.vmem %s66_s21, 3072  ;;  %p6738_p6 = scmp.lt.s32.totalorder %s66_s21, %s66_s21 }
  0x13   :  { %p6734_p5 = scmp.ne.s32.totalorder %s66_s21, %s6733_s22  ;;  %p6739_p7 = scmp.lt.s32.totalorder %s6733_s22, %s6733_s22 }
  0x15   :  { %p6740_p8 = por %p6739_p7, %p6738_p6 }
  0x17   :  { %p6741_p9 = pnand %p6740_p8, %p6734_p5 }
  0x19   :  { %6744 = shalt.err (!%p6741_p9)
}
  0x1a   :  { %s6879_s23 = smov 64   ;;  %s6880_s24 = smov 4  }
  0x1b   :  { %71 = dma.hbm_to_vmem [thread:$0]  %s8031_s6, 3072, %s66_s21, [#allocation10], %s6879_s23, %s6879_s23, %s6880_s24  }
  0x1c   :  { %s6881_s27 = smov [#allocation12]   ;;  %s6882_s29 = smov [#allocation3]  }
  0x1d   :  { %s87_s28 = sshll.u32 %s6881_s27, 4  ;;  %s31_s4 = sshll.u32 %s6882_s29, 4  ;;  %s88_s28 = int_to_ptr.vmem [resolvable:$true] %s87_s28  ;;  %s32_s4 = int_to_ptr.vmem [resolvable:$true] %s31_s4 }
  0x1e   :  { %s6753_s30 = scalar_lea.vmem %s88_s28, 1024  ;;  %p6758_p11 = scmp.lt.s32.totalorder %s88_s28, %s88_s28 }
  0x1f   :  { %p6754_p10 = scmp.ne.s32.totalorder %s88_s28, %s6753_s30  ;;  %p6759_p12 = scmp.lt.s32.totalorder %s6753_s30, %s6753_s30 }
  0x21   :  { %p6760_p13 = por %p6759_p12, %p6758_p11 }
  0x23   :  { %p6761_p0 = pnand %p6760_p13, %p6754_p10 }
  0x25   :  { %6764 = shalt.err (!%p6761_p0)
}
  0x26   :  { %93 = dma.hbm_to_vmem [thread:$0]  %s8033_s8, 1024, %s88_s28, [#allocation13], %s6879_s23, %s6879_s23, %s6880_s24  }
  0x27   :  { %s6773_s13 = scalar_lea.vmem %s32_s4, 49152  ;;  %p6778_p2 = scmp.lt.s32.totalorder %s32_s4, %s32_s4 }
  0x28   :  { %p6774_p1 = scmp.ne.s32.totalorder %s32_s4, %s6773_s13  ;;  %p6779_p3 = scmp.lt.s32.totalorder %s6773_s13, %s6773_s13 }
  0x2a   :  { %p6780_p4 = por %p6779_p3, %p6778_p2 }
  0x2c   :  { %p6781_p5 = pnand %p6780_p4, %p6774_p1 }
  0x2e   :  { %6784 = shalt.err (!%p6781_p5)
}
  0x2f   :  { %s6883_s6 = smov 256   ;;  %s6884_s14 = smov 16  }
  0x30   :  { %37 = dma.hbm_to_vmem [thread:$0]  %s8028_s3, 49152, %s32_s4, [#allocation4], %s6883_s6, %s6883_s6, %s6884_s14  }
  0x31   :  { %s6885_s17 = smov [#allocation8]   ;;  %s6886_s19 = smov [#allocation11]  }
  0x32   :  { %s56_s18 = sshll.u32 %s6885_s17, 4  ;;  %s78_s20 = sshll.u32 %s6886_s19, 4  ;;  %s57_s18 = int_to_ptr.vmem [resolvable:$true] %s56_s18  ;;  %s79_s20 = int_to_ptr.vmem [resolvable:$true] %s78_s20 }
  0x33   :  { %s6793_s8 = scalar_lea.vmem %s57_s18, 128  ;;  %p6798_p7 = scmp.lt.s32.totalorder %s57_s18, %s57_s18 }
  0x34   :  { %p6794_p6 = scmp.ne.s32.totalorder %s57_s18, %s6793_s8  ;;  %p6799_p8 = scmp.lt.s32.totalorder %s6793_s8, %s6793_s8 }
  0x36   :  { %p6800_p9 = por %p6799_p8, %p6798_p7 }
  0x38   :  { %p6801_p10 = pnand %p6800_p9, %p6794_p6 }
  0x3a   :  { %6804 = shalt.err (!%p6801_p10)
}
  0x3b   :  { %59 = dma.hbm_to_vmem [thread:$0]  %s8030_s5, 128, %s57_s18, [#allocation7]  }
  0x3c   :  { %s6813_s23 = scalar_lea.vmem %s79_s20, 16  ;;  %s6817_s3 = scalar_lea.vmem %s79_s20, 32 }
  0x3d   :  { %p6814_p11 = scmp.ne.s32.totalorder %s79_s20, %s6813_s23  ;;  %p6818_p12 = scmp.lt.s32.totalorder %s79_s20, %s79_s20 }
  0x3e   :  { %p6819_p13 = scmp.lt.s32.totalorder %s6817_s3, %s6813_s23 }
  0x40   :  { %p6820_p0 = por %p6819_p13, %p6818_p12 }
  0x42   :  { %p6821_p1 = pnand %p6820_p0, %p6814_p11 }
  0x44   :  { %6824 = shalt.err (!%p6821_p1)
}
  0x45   :  { %81 = dma.hbm_to_vmem [thread:$0]  %s8032_s7, 16, %s79_s20, [#allocation10]  }
  0x46   :  { %s6887_s26 = smov [#allocation14]  }
  0x47   :  { %s100_s27 = sshll.u32 %s6887_s26, 4  ;;  %s101_s27 = int_to_ptr.vmem [resolvable:$true] %s100_s27 }
  0x48   :  { %s6833_s28 = scalar_lea.vmem %s101_s27, 16  ;;  %s6837_s29 = scalar_lea.vmem %s101_s27, 32 }
  0x49   :  { %p6834_p2 = scmp.ne.s32.totalorder %s101_s27, %s6833_s28  ;;  %p6838_p3 = scmp.lt.s32.totalorder %s101_s27, %s101_s27 }
  0x4a   :  { %p6839_p4 = scmp.lt.s32.totalorder %s6837_s29, %s6833_s28 }
  0x4c   :  { %p6840_p5 = por %p6839_p4, %p6838_p3 }
  0x4e   :  { %p6841_p6 = pnand %p6840_p5, %p6834_p2 }
  0x50   :  { %6844 = shalt.err (!%p6841_p6)
}
  0x51   :  { %103 = dma.hbm_to_vmem [thread:$0]  %s8034_s9, 16, %s101_s27, [#allocation13]  }
  0x52   :  { %6865 = dma.done.wait [#allocation4], 49152  }
  0x53   :  { %6866 = vsyncadd [#allocation4], 4294918144 }
  0x54   :  { %6867 = dma.done.wait [#allocation7], 16512  }
  0x55   :  { %6868 = vsyncadd [#allocation7], 4294950784 }
  0x56   :  { %6869 = dma.done.wait [#allocation10], 3088  }
  0x57   :  { %6870 = vsyncadd [#allocation10], 4294964208 }
  0x58   :  { %6871 = dma.done.wait [#allocation13], 1040  }
  0x59   :  { %6872 = vsyncadd [#allocation13], 4294966256  ;;  %v5958_v0 = vld [vmem:[#allocation3 + $0xe4] ss:$16 sps:$4 sm:$0xff]   ;;  %v5962_v2 = vld [vmem:[#allocation3 + $0xe0] ss:$16 sps:$4 sm:$0xff]  }
  0x5a   :  { %v5960_v1 = vld [vmem:[#allocation3 + $0x2e4] ss:$16 sps:$4 sm:$0xff]   ;;  %1296 = vmatprep.subr.bf16.mxu0 %v5958_v0  ;;  %v5963_v3 = vld [vmem:[#allocation3 + $0x2e0] ss:$16 sps:$4 sm:$0xff]   ;;  %v126_v46 = vld [vmem:[%s8025_s0] sm:$0xff]  ;;  %vm6891_vm1 = vmmov 0  }
  0x5b   :  { %1337 = vmatprep.subr.bf16.mxu1 %v5960_v1  ;;  %v5964_v4 = vld [vmem:[#allocation3 + $0xc4] ss:$16 sps:$4 sm:$0xff]   ;;  %1297 = vmatpush1.bf16.msra.mxu0 %v5962_v2  ;;  %v5968_v6 = vld [vmem:[#allocation3 + $0xc0] ss:$16 sps:$4 sm:$0xff]   ;;  %v132_v47 = vcombine.high %v126_v46, %v126_v46  ;;  %vm5258_vm3 = vcmask 1043456  }
  0x5c   :  { %1338 = vmatpush1.bf16.msra.mxu1 %v5963_v3  ;;  %v5966_v5 = vld [vmem:[#allocation3 + $0x2c4] ss:$16 sps:$4 sm:$0xff]   ;;  %1298 = vmatprep.subr.bf16.mxu0 %v5964_v4  ;;  %v5969_v7 = vld [vmem:[#allocation3 + $0x2c0] ss:$16 sps:$4 sm:$0xff]  }
  0x5d   :  { %1339 = vmatprep.subr.bf16.mxu1 %v5966_v5  ;;  %v5970_v8 = vld [vmem:[#allocation3 + $0xa4] ss:$16 sps:$4 sm:$0xff]   ;;  %v5974_v10 = vld [vmem:[#allocation3 + $0xa0] ss:$16 sps:$4 sm:$0xff]   ;;  %v139_v54 = vpack.c.bf16 %v132_v47, %v132_v47 }
  0x5e   :  { %v5972_v9 = vld [vmem:[#allocation3 + $0x2a4] ss:$16 sps:$4 sm:$0xff]   ;;  %v5975_v11 = vld [vmem:[#allocation3 + $0x2a0] ss:$16 sps:$4 sm:$0xff]  }
  0x5f   :  { %1299 = vmatpush1.bf16.msra.mxu0 %v5968_v6  ;;  %v5976_v12 = vld [vmem:[#allocation3 + $0x84] ss:$16 sps:$4 sm:$0xff]   ;;  %v5980_v14 = vld [vmem:[#allocation3 + $0x80] ss:$16 sps:$4 sm:$0xff]   ;;  %1328 = vmatprep.mubr.bf16.mxu0 %v139_v54 }
  0x60   :  { %1340 = vmatpush1.bf16.msra.mxu1 %v5969_v7  ;;  %1300 = vmatprep.subr.bf16.mxu0 %v5970_v8  ;;  %v5978_v13 = vld [vmem:[#allocation3 + $0x284] ss:$16 sps:$4 sm:$0xff]   ;;  %v5981_v15 = vld [vmem:[#allocation3 + $0x280] ss:$16 sps:$4 sm:$0xff]   ;;  %v6061_v7 = vld [vmem:[#allocation3 + $0xec] ss:$16 sps:$4 sm:$0xff]   ;;  %v6978_v8 = vpack.c.bf16 %v126_v46, %v126_v46 }
  0x61   :  { %1341 = vmatprep.subr.bf16.mxu1 %v5972_v9  ;;  %v5982_v16 = vld [vmem:[#allocation3 + $0x64] ss:$16 sps:$4 sm:$0xff]   ;;  %v5986_v18 = vld [vmem:[#allocation3 + $0x60] ss:$16 sps:$4 sm:$0xff]   ;;  %v6107_v46 = vld [vmem:[#allocation3 + $0x1e8] ss:$16 sps:$4 sm:$0xff]  }
  0x62   :  { %v5984_v17 = vld [vmem:[#allocation3 + $0x264] ss:$16 sps:$4 sm:$0xff]   ;;  %v5987_v19 = vld [vmem:[#allocation3 + $0x260] ss:$16 sps:$4 sm:$0xff]  }
  0x63   :  { %1301 = vmatpush1.bf16.msra.mxu0 %v5974_v10  ;;  %v5988_v20 = vld [vmem:[#allocation3 + $0x44] ss:$16 sps:$4 sm:$0xff]   ;;  %v5992_v22 = vld [vmem:[#allocation3 + $0x40] ss:$16 sps:$4 sm:$0xff]  }
  0x64   :  { %1342 = vmatpush1.bf16.msra.mxu1 %v5975_v11  ;;  %1302 = vmatprep.subr.bf16.mxu0 %v5976_v12  ;;  %v5990_v21 = vld [vmem:[#allocation3 + $0x244] ss:$16 sps:$4 sm:$0xff]   ;;  %v5993_v23 = vld [vmem:[#allocation3 + $0x240] ss:$16 sps:$4 sm:$0xff]   ;;  %v6059_v11 = vld [vmem:[#allocation3 + $0xe8] ss:$16 sps:$4 sm:$0xff]  }
  0x65   :  { %1343 = vmatprep.subr.bf16.mxu1 %v5978_v13  ;;  %v5994_v24 = vld [vmem:[#allocation3 + $0x24] ss:$16 sps:$4 sm:$0xff]   ;;  %v5998_v26 = vld [vmem:[#allocation3 + $0x20] ss:$16 sps:$4 sm:$0xff]   ;;  %v6067_v13 = vld [vmem:[#allocation3 + $0xcc] ss:$16 sps:$4 sm:$0xff]  }
  0x66   :  { %v5996_v25 = vld [vmem:[#allocation3 + $0x224] ss:$16 sps:$4 sm:$0xff]   ;;  %v5999_v27 = vld [vmem:[#allocation3 + $0x220] ss:$16 sps:$4 sm:$0xff]  }
  0x67   :  { %1303 = vmatpush1.bf16.msra.mxu0 %v5980_v14  ;;  %v6000_v28 = vld [vmem:[#allocation3 + $0x4] ss:$16 sps:$4 sm:$0xff]   ;;  %v6004_v30 = vld [vmem:[#allocation3] ss:$16 sps:$4 sm:$0xff]  }
  0x68   :  { %1344 = vmatpush1.bf16.msra.mxu1 %v5981_v15  ;;  %1304 = vmatprep.subr.bf16.mxu0 %v5982_v16  ;;  %v6002_v29 = vld [vmem:[#allocation3 + $0x204] ss:$16 sps:$4 sm:$0xff]   ;;  %v6005_v31 = vld [vmem:[#allocation3 + $0x200] ss:$16 sps:$4 sm:$0xff]   ;;  %v6065_v15 = vld [vmem:[#allocation3 + $0xc8] ss:$16 sps:$4 sm:$0xff]  }
  0x69   :  { %1345 = vmatprep.subr.bf16.mxu1 %v5984_v17  ;;  %v6006_v32 = vld [vmem:[#allocation3 + $0x1e4] ss:$16 sps:$4 sm:$0xff]   ;;  %v6010_v34 = vld [vmem:[#allocation3 + $0x1e0] ss:$16 sps:$4 sm:$0xff]   ;;  %v6073_v17 = vld [vmem:[#allocation3 + $0xac] ss:$16 sps:$4 sm:$0xff]  }
  0x6a   :  { %v6008_v33 = vld [vmem:[#allocation3 + $0x3e4] ss:$16 sps:$4 sm:$0xff]   ;;  %v6011_v35 = vld [vmem:[#allocation3 + $0x3e0] ss:$16 sps:$4 sm:$0xff]  }
  0x6b   :  { %1305 = vmatpush1.bf16.msra.mxu0 %v5986_v18  ;;  %v6012_v36 = vld [vmem:[#allocation3 + $0x1c4] ss:$16 sps:$4 sm:$0xff]   ;;  %v6016_v38 = vld [vmem:[#allocation3 + $0x1c0] ss:$16 sps:$4 sm:$0xff]  }
  0x6c   :  { %1346 = vmatpush1.bf16.msra.mxu1 %v5987_v19  ;;  %1306 = vmatprep.subr.bf16.mxu0 %v5988_v20  ;;  %v6014_v37 = vld [vmem:[#allocation3 + $0x3c4] ss:$16 sps:$4 sm:$0xff]   ;;  %v6017_v39 = vld [vmem:[#allocation3 + $0x3c0] ss:$16 sps:$4 sm:$0xff]   ;;  %v6071_v19 = vld [vmem:[#allocation3 + $0xa8] ss:$16 sps:$4 sm:$0xff]  }
  0x6d   :  { %1347 = vmatprep.subr.bf16.mxu1 %v5990_v21  ;;  %v6018_v40 = vld [vmem:[#allocation3 + $0x1a4] ss:$16 sps:$4 sm:$0xff]   ;;  %v6022_v42 = vld [vmem:[#allocation3 + $0x1a0] ss:$16 sps:$4 sm:$0xff]   ;;  %v6079_v21 = vld [vmem:[#allocation3 + $0x8c] ss:$16 sps:$4 sm:$0xff]  }
  0x6e   :  { %v6020_v41 = vld [vmem:[#allocation3 + $0x3a4] ss:$16 sps:$4 sm:$0xff]   ;;  %v6023_v43 = vld [vmem:[#allocation3 + $0x3a0] ss:$16 sps:$4 sm:$0xff]  }
  0x6f   :  { %1307 = vmatpush1.bf16.msra.mxu0 %v5992_v22  ;;  %v6024_v44 = vld [vmem:[#allocation3 + $0x184] ss:$16 sps:$4 sm:$0xff]   ;;  %v6028_v49 = vld [vmem:[#allocation3 + $0x180] ss:$16 sps:$4 sm:$0xff]  }
  0x70   :  { %1348 = vmatpush1.bf16.msra.mxu1 %v5993_v23  ;;  %1308 = vmatprep.subr.bf16.mxu0 %v5994_v24  ;;  %v6026_v45 = vld [vmem:[#allocation3 + $0x384] ss:$16 sps:$4 sm:$0xff]   ;;  %v6029_v50 = vld [vmem:[#allocation3 + $0x380] ss:$16 sps:$4 sm:$0xff]   ;;  %v6077_v23 = vld [vmem:[#allocation3 + $0x88] ss:$16 sps:$4 sm:$0xff]  }
  0x71   :  { %1349 = vmatprep.subr.bf16.mxu1 %v5996_v25  ;;  %v127_v48 = vld [vmem:[%s8025_s0 + $0x8] sm:$0xff]  ;;  %v6085_v25 = vld [vmem:[#allocation3 + $0x6c] ss:$16 sps:$4 sm:$0xff]  }
  0x72   :  { %v133_v51 = vcombine.high %v127_v48, %v127_v48  ;;  %v6030_v52 = vld [vmem:[#allocation3 + $0x164] ss:$16 sps:$4 sm:$0xff]   ;;  %v6034_v56 = vld [vmem:[#allocation3 + $0x160] ss:$16 sps:$4 sm:$0xff]   ;;  %v6980_v9 = vpack.c.bf16 %v127_v48, %v127_v48  ;;  %v6115_v48 = vld [vmem:[#allocation3 + $0x1cc] ss:$16 sps:$4 sm:$0xff]  }
  0x73   :  { %1309 = vmatpush1.bf16.msra.mxu0 %v5998_v26  ;;  %v6032_v53 = vld [vmem:[#allocation3 + $0x364] ss:$16 sps:$4 sm:$0xff]   ;;  %v6035_v57 = vld [vmem:[#allocation3 + $0x360] ss:$16 sps:$4 sm:$0xff]  }
  0x74   :  { %1350 = vmatpush1.bf16.msra.mxu1 %v5999_v27  ;;  %1310 = vmatprep.subr.bf16.mxu0 %v6000_v28  ;;  %v6975_v55 = vpack.c.bf16 %v133_v51, %v133_v51  ;;  %v6036_v58 = vld [vmem:[#allocation3 + $0x144] ss:$16 sps:$4 sm:$0xff]   ;;  %v6040_v60 = vld [vmem:[#allocation3 + $0x140] ss:$16 sps:$4 sm:$0xff]   ;;  %v6083_v27 = vld [vmem:[#allocation3 + $0x68] ss:$16 sps:$4 sm:$0xff]  }
  0x75   :  { %1351 = vmatprep.subr.bf16.mxu1 %v6002_v29  ;;  %v6038_v59 = vld [vmem:[#allocation3 + $0x344] ss:$16 sps:$4 sm:$0xff]   ;;  %v6041_v61 = vld [vmem:[#allocation3 + $0x340] ss:$16 sps:$4 sm:$0xff]   ;;  %v6091_v29 = vld [vmem:[#allocation3 + $0x4c] ss:$16 sps:$4 sm:$0xff]  }
  0x76   :  { %1369 = vmatprep.mubr.bf16.mxu1 %v6975_v55  ;;  %v6042_v62 = vld [vmem:[#allocation3 + $0x124] ss:$16 sps:$4 sm:$0xff]   ;;  %v6046_v0 = vld [vmem:[#allocation3 + $0x120] ss:$16 sps:$4 sm:$0xff]  }
  0x77   :  { %1311 = vmatpush1.bf16.msra.mxu0 %v6004_v30  ;;  %v6044_v63 = vld [vmem:[#allocation3 + $0x324] ss:$16 sps:$4 sm:$0xff]   ;;  %v6047_v1 = vld [vmem:[#allocation3 + $0x320] ss:$16 sps:$4 sm:$0xff]  }
  0x78   :  { %1352 = vmatpush1.bf16.msra.mxu1 %v6005_v31  ;;  %1312 = vmatprep.subr.bf16.mxu0 %v6006_v32  ;;  %v6048_v2 = vld [vmem:[#allocation3 + $0x104] ss:$16 sps:$4 sm:$0xff]   ;;  %v6052_v4 = vld [vmem:[#allocation3 + $0x100] ss:$16 sps:$4 sm:$0xff]   ;;  %v6089_v31 = vld [vmem:[#allocation3 + $0x48] ss:$16 sps:$4 sm:$0xff]  }
  0x79   :  { %1353 = vmatprep.subr.bf16.mxu1 %v6008_v33  ;;  %v6050_v3 = vld [vmem:[#allocation3 + $0x304] ss:$16 sps:$4 sm:$0xff]   ;;  %v6053_v5 = vld [vmem:[#allocation3 + $0x300] ss:$16 sps:$4 sm:$0xff]   ;;  %v6097_v33 = vld [vmem:[#allocation3 + $0x2c] ss:$16 sps:$4 sm:$0xff]  }
  0x7a   :  { %v6058_v6 = vld [vmem:[#allocation3 + $0x4e4] ss:$16 sps:$4 sm:$0xff]   ;;  %v6056_v10 = vld [vmem:[#allocation3 + $0x4e0] ss:$16 sps:$4 sm:$0xff]  }
  0x7b   :  { %1313 = vmatpush2.bf16.msra.mxu0 %v6010_v34  ;;  %v6064_v12 = vld [vmem:[#allocation3 + $0x4c4] ss:$16 sps:$4 sm:$0xff]   ;;  %v6062_v14 = vld [vmem:[#allocation3 + $0x4c0] ss:$16 sps:$4 sm:$0xff]   ;;  %v6987_v34 = vld [vmem:[%s8025_s0 + $0x10] sm:$0xff] }
  0x7c   :  { %1354 = vmatpush2.bf16.msra.mxu1 %v6011_v35  ;;  %1314 = vmatprep.subr.bf16.mxu0 %v6012_v36  ;;  %v6070_v16 = vld [vmem:[#allocation3 + $0x4a4] ss:$16 sps:$4 sm:$0xff]   ;;  %v6068_v18 = vld [vmem:[#allocation3 + $0x4a0] ss:$16 sps:$4 sm:$0xff]   ;;  %v134_v36 = vcombine.high %v6987_v34, %v6987_v34 }
  0x7d   :  { %1355 = vmatprep.subr.bf16.mxu1 %v6014_v37  ;;  %v6076_v20 = vld [vmem:[#allocation3 + $0x484] ss:$16 sps:$4 sm:$0xff]   ;;  %v6074_v22 = vld [vmem:[#allocation3 + $0x480] ss:$16 sps:$4 sm:$0xff]   ;;  %v6095_v37 = vld [vmem:[#allocation3 + $0x28] ss:$16 sps:$4 sm:$0xff]  }
  0x7e   :  { %v6082_v24 = vld [vmem:[#allocation3 + $0x464] ss:$16 sps:$4 sm:$0xff]   ;;  %v6080_v26 = vld [vmem:[#allocation3 + $0x460] ss:$16 sps:$4 sm:$0xff]  }
  0x7f   :  { %1315 = vmatpush2.bf16.msra.mxu0 %v6016_v38  ;;  %v6088_v28 = vld [vmem:[#allocation3 + $0x444] ss:$16 sps:$4 sm:$0xff]   ;;  %v6086_v30 = vld [vmem:[#allocation3 + $0x440] ss:$16 sps:$4 sm:$0xff]  }
  0x80   :  { %1356 = vmatpush2.bf16.msra.mxu1 %v6017_v39  ;;  %1316 = vmatprep.subr.bf16.mxu0 %v6018_v40  ;;  %v6094_v32 = vld [vmem:[#allocation3 + $0x424] ss:$16 sps:$4 sm:$0xff]   ;;  %v6092_v35 = vld [vmem:[#allocation3 + $0x420] ss:$16 sps:$4 sm:$0xff]   ;;  %v6103_v39 = vld [vmem:[#allocation3 + $0xc] ss:$16 sps:$4 sm:$0xff]   ;;  %v6991_v40 = vpack.c.bf16 %v134_v36, %v134_v36 }
  0x81   :  { %1357 = vmatprep.subr.bf16.mxu1 %v6020_v41  ;;  %v6100_v38 = vld [vmem:[#allocation3 + $0x404] ss:$16 sps:$4 sm:$0xff]   ;;  %v6098_v41 = vld [vmem:[#allocation3 + $0x400] ss:$16 sps:$4 sm:$0xff]   ;;  %v6186_v36 = vld [vmem:[#allocation3 + $0x448] ss:$16 sps:$4 sm:$0xff]  }
  0x82   :  { %v6112_v47 = vld [vmem:[#allocation3 + $0x5c4] ss:$16 sps:$4 sm:$0xff]  }
  0x83   :  { %1317 = vmatpush2.bf16.msra.mxu0 %v6022_v42  ;;  %v6101_v42 = vld [vmem:[#allocation3 + $0x8] ss:$16 sps:$4 sm:$0xff]   ;;  %v6118_v51 = vld [vmem:[#allocation3 + $0x5a4] ss:$16 sps:$4 sm:$0xff]  }
  0x84   :  { %1358 = vmatpush2.bf16.msra.mxu1 %v6023_v43  ;;  %1318 = vmatprep.subr.bf16.mxu0 %v6024_v44  ;;  %v6106_v43 = vld [vmem:[#allocation3 + $0x5e4] ss:$16 sps:$4 sm:$0xff]   ;;  %v6109_v44 = vld [vmem:[#allocation3 + $0x1ec] ss:$16 sps:$4 sm:$0xff]  }
  0x85   :  { %1359 = vmatprep.subr.bf16.mxu1 %v6026_v45  ;;  %v6104_v45 = vld [vmem:[#allocation3 + $0x5e0] ss:$16 sps:$4 sm:$0xff]  }
  0x87   :  { %1319 = vmatpush2.bf16.msra.mxu0 %v6028_v49  ;;  %v6110_v49 = vld [vmem:[#allocation3 + $0x5c0] ss:$16 sps:$4 sm:$0xff]  }
  0x88   :  { %1360 = vmatpush2.bf16.msra.mxu1 %v6029_v50  ;;  %1320 = vmatprep.subr.bf16.mxu0 %v6030_v52  ;;  %v6113_v50 = vld [vmem:[#allocation3 + $0x1c8] ss:$16 sps:$4 sm:$0xff]   ;;  %v6121_v52 = vld [vmem:[#allocation3 + $0x1ac] ss:$16 sps:$4 sm:$0xff]  }
  0x89   :  { %1361 = vmatprep.subr.bf16.mxu1 %v6032_v53  ;;  %v6116_v53 = vld [vmem:[#allocation3 + $0x5a0] ss:$16 sps:$4 sm:$0xff]  }
  0x8b   :  { %1321 = vmatpush2.bf16.msra.mxu0 %v6034_v56  ;;  %v6124_v56 = vld [vmem:[#allocation3 + $0x584] ss:$16 sps:$4 sm:$0xff]  }
  0x8c   :  { %1362 = vmatpush2.bf16.msra.mxu1 %v6035_v57  ;;  %1322 = vmatprep.subr.bf16.mxu0 %v6036_v58  ;;  %v6127_v57 = vld [vmem:[#allocation3 + $0x18c] ss:$16 sps:$4 sm:$0xff]   ;;  %v6122_v58 = vld [vmem:[#allocation3 + $0x580] ss:$16 sps:$4 sm:$0xff]  }
  0x8d   :  { %1363 = vmatprep.subr.bf16.mxu1 %v6038_v59  ;;  %v6125_v59 = vld [vmem:[#allocation3 + $0x188] ss:$16 sps:$4 sm:$0xff]  }
  0x8f   :  { %1323 = vmatpush2.bf16.msra.mxu0 %v6040_v60  ;;  %v6130_v60 = vld [vmem:[#allocation3 + $0x564] ss:$16 sps:$4 sm:$0xff]  }
  0x90   :  { %1364 = vmatpush2.bf16.msra.mxu1 %v6041_v61  ;;  %1324 = vmatprep.subr.bf16.mxu0 %v6042_v62  ;;  %v6133_v61 = vld [vmem:[#allocation3 + $0x16c] ss:$16 sps:$4 sm:$0xff]   ;;  %v6128_v62 = vld [vmem:[#allocation3 + $0x560] ss:$16 sps:$4 sm:$0xff]  }
  0x91   :  { %1365 = vmatprep.subr.bf16.mxu1 %v6044_v63  ;;  %v6131_v63 = vld [vmem:[#allocation3 + $0x168] ss:$16 sps:$4 sm:$0xff]  }
  0x93   :  { %1325 = vmatpush2.bf16.msra.mxu0 %v6046_v0  ;;  %v6136_v0 = vld [vmem:[#allocation3 + $0x544] ss:$16 sps:$4 sm:$0xff]  }
  0x94   :  { %1366 = vmatpush2.bf16.msra.mxu1 %v6047_v1  ;;  %1326 = vmatprep.subr.bf16.mxu0 %v6048_v2  ;;  %v6139_v1 = vld [vmem:[#allocation3 + $0x14c] ss:$16 sps:$4 sm:$0xff]   ;;  %v6134_v2 = vld [vmem:[#allocation3 + $0x540] ss:$16 sps:$4 sm:$0xff]  }
  0x95   :  { %1367 = vmatprep.subr.bf16.mxu1 %v6050_v3  ;;  %v6137_v3 = vld [vmem:[#allocation3 + $0x148] ss:$16 sps:$4 sm:$0xff]  }
  0x97   :  { %1327 = vmatpush2.bf16.msra.mxu0 %v6052_v4  ;;  %v6142_v4 = vld [vmem:[#allocation3 + $0x524] ss:$16 sps:$4 sm:$0xff]  }
  0x98   :  { %1368 = vmatpush2.bf16.msra.mxu1 %v6053_v5  ;;  %1378 = vmatprep.subr.bf16.mxu0 %v6058_v6  ;;  %v6145_v5 = vld [vmem:[#allocation3 + $0x12c] ss:$16 sps:$4 sm:$0xff]   ;;  %v6140_v6 = vld [vmem:[#allocation3 + $0x520] ss:$16 sps:$4 sm:$0xff]  }
  0x99   :  { %1419 = vmatprep.subr.bf16.mxu1 %v6061_v7  ;;  %v6143_v7 = vld [vmem:[#allocation3 + $0x128] ss:$16 sps:$4 sm:$0xff]  }
  0x9a   :  { %1329 = vmatmul.mubr.bf16.vlgmr.msra.gmra.mxu0 %v6978_v8 }
  0x9b   :  { %1370 = vmatmul.mubr.bf16.vlgmr.msra.gmra.mxu1 %v6980_v9  ;;  %1379 = vmatpush1.bf16.msra.mxu0 %v6056_v10  ;;  %v6148_v10 = vld [vmem:[#allocation3 + $0x504] ss:$16 sps:$4 sm:$0xff]  }
  0x9c   :  { %1420 = vmatpush1.bf16.msra.mxu1 %v6059_v11  ;;  %1380 = vmatprep.subr.bf16.mxu0 %v6064_v12  ;;  %v6151_v11 = vld [vmem:[#allocation3 + $0x10c] ss:$16 sps:$4 sm:$0xff]   ;;  %v6146_v12 = vld [vmem:[#allocation3 + $0x500] ss:$16 sps:$4 sm:$0xff]  }
  0x9d   :  { %1421 = vmatprep.subr.bf16.mxu1 %v6067_v13  ;;  %1451 = vmatprep.mubr.bf16.mxu1 %v139_v54  ;;  %v6119_v54 = vld [vmem:[#allocation3 + $0x1a8] ss:$16 sps:$4 sm:$0xff]  }
  0x9e   :  { %1410 = vmatprep.mubr.bf16.mxu0 %v6991_v40  ;;  %v6149_v13 = vld [vmem:[#allocation3 + $0x108] ss:$16 sps:$4 sm:$0xff]  }
  0x9f   :  { %1381 = vmatpush1.bf16.msra.mxu0 %v6062_v14  ;;  %v6155_v14 = vld [vmem:[#allocation3 + $0x2ec] ss:$16 sps:$4 sm:$0xff]  }
  0xa0   :  { %1422 = vmatpush1.bf16.msra.mxu1 %v6065_v15  ;;  %1382 = vmatprep.subr.bf16.mxu0 %v6070_v16  ;;  %v6158_v15 = vld [vmem:[#allocation3 + $0x4ec] ss:$16 sps:$4 sm:$0xff]   ;;  %v6996_v16 = vpack.c.bf16 %v6987_v34, %v6987_v34 }
  0xa1   :  { %1423 = vmatprep.subr.bf16.mxu1 %v6073_v17  ;;  %v6153_v17 = vld [vmem:[#allocation3 + $0x2e8] ss:$16 sps:$4 sm:$0xff]   ;;  %v6188_v34 = vld [vmem:[#allocation3 + $0x44c] ss:$16 sps:$4 sm:$0xff]  }
  0xa3   :  { %1383 = vmatpush1.bf16.msra.mxu0 %v6068_v18  ;;  %v6156_v18 = vld [vmem:[#allocation3 + $0x4e8] ss:$16 sps:$4 sm:$0xff]  }
  0xa4   :  { %1424 = vmatpush1.bf16.msra.mxu1 %v6071_v19  ;;  %1384 = vmatprep.subr.bf16.mxu0 %v6076_v20  ;;  %v6161_v19 = vld [vmem:[#allocation3 + $0x2cc] ss:$16 sps:$4 sm:$0xff]  }
  0xa5   :  { %1425 = vmatprep.subr.bf16.mxu1 %v6079_v21  ;;  %v6164_v20 = vld [vmem:[#allocation3 + $0x4cc] ss:$16 sps:$4 sm:$0xff]   ;;  %v6159_v21 = vld [vmem:[#allocation3 + $0x2c8] ss:$16 sps:$4 sm:$0xff]  }
  0xa7   :  { %1385 = vmatpush1.bf16.msra.mxu0 %v6074_v22  ;;  %v6162_v22 = vld [vmem:[#allocation3 + $0x4c8] ss:$16 sps:$4 sm:$0xff]  }
  0xa8   :  { %1426 = vmatpush1.bf16.msra.mxu1 %v6077_v23  ;;  %1386 = vmatprep.subr.bf16.mxu0 %v6082_v24  ;;  %v6167_v23 = vld [vmem:[#allocation3 + $0x2ac] ss:$16 sps:$4 sm:$0xff]  }
  0xa9   :  { %1427 = vmatprep.subr.bf16.mxu1 %v6085_v25  ;;  %v6170_v24 = vld [vmem:[#allocation3 + $0x4ac] ss:$16 sps:$4 sm:$0xff]   ;;  %v6165_v25 = vld [vmem:[#allocation3 + $0x2a8] ss:$16 sps:$4 sm:$0xff]  }
  0xab   :  { %1387 = vmatpush1.bf16.msra.mxu0 %v6080_v26  ;;  %v6168_v26 = vld [vmem:[#allocation3 + $0x4a8] ss:$16 sps:$4 sm:$0xff]  }
  0xac   :  { %1428 = vmatpush1.bf16.msra.mxu1 %v6083_v27  ;;  %1388 = vmatprep.subr.bf16.mxu0 %v6088_v28  ;;  %v6173_v27 = vld [vmem:[#allocation3 + $0x28c] ss:$16 sps:$4 sm:$0xff]   ;;  %v6171_v28 = vld [vmem:[#allocation3 + $0x288] ss:$16 sps:$4 sm:$0xff]  }
  0xad   :  { %1429 = vmatprep.subr.bf16.mxu1 %v6091_v29  ;;  %v6174_v29 = vld [vmem:[#allocation3 + $0x488] ss:$16 sps:$4 sm:$0xff]  }
  0xaf   :  { %1389 = vmatpush1.bf16.msra.mxu0 %v6086_v30  ;;  %v6179_v30 = vld [vmem:[#allocation3 + $0x26c] ss:$16 sps:$4 sm:$0xff]  }
  0xb0   :  { %1430 = vmatpush1.bf16.msra.mxu1 %v6089_v31  ;;  %1390 = vmatprep.subr.bf16.mxu0 %v6094_v32  ;;  %v6182_v31 = vld [vmem:[#allocation3 + $0x46c] ss:$16 sps:$4 sm:$0xff]   ;;  %v6177_v32 = vld [vmem:[#allocation3 + $0x268] ss:$16 sps:$4 sm:$0xff]  }
  0xb1   :  { %1431 = vmatprep.subr.bf16.mxu1 %v6097_v33  ;;  %v6185_v33 = vld [vmem:[#allocation3 + $0x24c] ss:$16 sps:$4 sm:$0xff]  }
  0xb3   :  { %1391 = vmatpush1.bf16.msra.mxu0 %v6092_v35  ;;  %v6183_v35 = vld [vmem:[#allocation3 + $0x248] ss:$16 sps:$4 sm:$0xff]  }
  0xb4   :  { %1432 = vmatpush1.bf16.msra.mxu1 %v6095_v37  ;;  %1392 = vmatprep.subr.bf16.mxu0 %v6100_v38  ;;  %v6191_v37 = vld [vmem:[#allocation3 + $0x22c] ss:$16 sps:$4 sm:$0xff]  }
  0xb5   :  { %1433 = vmatprep.subr.bf16.mxu1 %v6103_v39  ;;  %v6194_v38 = vld [vmem:[#allocation3 + $0x42c] ss:$16 sps:$4 sm:$0xff]   ;;  %v6189_v39 = vld [vmem:[#allocation3 + $0x228] ss:$16 sps:$4 sm:$0xff]  }
  0xb7   :  { %1393 = vmatpush1.bf16.msra.mxu0 %v6098_v41  ;;  %v6197_v41 = vld [vmem:[#allocation3 + $0x20c] ss:$16 sps:$4 sm:$0xff]  }
  0xb8   :  { %1434 = vmatpush1.bf16.msra.mxu1 %v6101_v42  ;;  %1394 = vmatprep.subr.bf16.mxu0 %v6106_v43  ;;  %v6200_v42 = vld [vmem:[#allocation3 + $0x40c] ss:$16 sps:$4 sm:$0xff]   ;;  %v6195_v43 = vld [vmem:[#allocation3 + $0x208] ss:$16 sps:$4 sm:$0xff]  }
  0xb9   :  { %1435 = vmatprep.subr.bf16.mxu1 %v6109_v44  ;;  %v6198_v44 = vld [vmem:[#allocation3 + $0x408] ss:$16 sps:$4 sm:$0xff]  }
  0xbb   :  { %1395 = vmatpush2.bf16.msra.mxu0 %v6104_v45  ;;  %v6203_v45 = vld [vmem:[#allocation3 + $0x3ec] ss:$16 sps:$4 sm:$0xff]  }
  0xbc   :  { %1436 = vmatpush2.bf16.msra.mxu1 %v6107_v46  ;;  %1396 = vmatprep.subr.bf16.mxu0 %v6112_v47  ;;  %v6206_v46 = vld [vmem:[#allocation3 + $0x5ec] ss:$16 sps:$4 sm:$0xff]   ;;  %v6201_v47 = vld [vmem:[#allocation3 + $0x3e8] ss:$16 sps:$4 sm:$0xff]  }
  0xbd   :  { %1437 = vmatprep.subr.bf16.mxu1 %v6115_v48  ;;  %v6204_v48 = vld [vmem:[#allocation3 + $0x5e8] ss:$16 sps:$4 sm:$0xff]  }
  0xbf   :  { %1397 = vmatpush2.bf16.msra.mxu0 %v6110_v49  ;;  %v6209_v49 = vld [vmem:[#allocation3 + $0x3cc] ss:$16 sps:$4 sm:$0xff]  }
  0xc0   :  { %1438 = vmatpush2.bf16.msra.mxu1 %v6113_v50  ;;  %1398 = vmatprep.subr.bf16.mxu0 %v6118_v51  ;;  %v6212_v50 = vld [vmem:[#allocation3 + $0x5cc] ss:$16 sps:$4 sm:$0xff]   ;;  %v6207_v51 = vld [vmem:[#allocation3 + $0x3c8] ss:$16 sps:$4 sm:$0xff]  }
  0xc1   :  { %1439 = vmatprep.subr.bf16.mxu1 %v6121_v52  ;;  %v6210_v52 = vld [vmem:[#allocation3 + $0x5c8] ss:$16 sps:$4 sm:$0xff]  }
  0xc3   :  { %1399 = vmatpush2.bf16.msra.mxu0 %v6116_v53  ;;  %v6215_v53 = vld [vmem:[#allocation3 + $0x3ac] ss:$16 sps:$4 sm:$0xff]  }
  0xc4   :  { %1440 = vmatpush2.bf16.msra.mxu1 %v6119_v54  ;;  %1400 = vmatprep.subr.bf16.mxu0 %v6124_v56  ;;  %v6218_v54 = vld [vmem:[#allocation3 + $0x5ac] ss:$16 sps:$4 sm:$0xff]   ;;  %v6213_v56 = vld [vmem:[#allocation3 + $0x3a8] ss:$16 sps:$4 sm:$0xff]  }
  0xc5   :  { %1441 = vmatprep.subr.bf16.mxu1 %v6127_v57  ;;  %v6216_v57 = vld [vmem:[#allocation3 + $0x5a8] ss:$16 sps:$4 sm:$0xff]  }
  0xc7   :  { %1401 = vmatpush2.bf16.msra.mxu0 %v6122_v58  ;;  %v6221_v58 = vld [vmem:[#allocation3 + $0x38c] ss:$16 sps:$4 sm:$0xff]  }
  0xc8   :  { %1442 = vmatpush2.bf16.msra.mxu1 %v6125_v59  ;;  %1402 = vmatprep.subr.bf16.mxu0 %v6130_v60  ;;  %v6224_v59 = vld [vmem:[#allocation3 + $0x58c] ss:$16 sps:$4 sm:$0xff]   ;;  %v6219_v60 = vld [vmem:[#allocation3 + $0x388] ss:$16 sps:$4 sm:$0xff]  }
  0xc9   :  { %1443 = vmatprep.subr.bf16.mxu1 %v6133_v61  ;;  %v6222_v61 = vld [vmem:[#allocation3 + $0x588] ss:$16 sps:$4 sm:$0xff]  }
  0xcb   :  { %1403 = vmatpush2.bf16.msra.mxu0 %v6128_v62  ;;  %v6227_v62 = vld [vmem:[#allocation3 + $0x36c] ss:$16 sps:$4 sm:$0xff]  }
  0xcc   :  { %1444 = vmatpush2.bf16.msra.mxu1 %v6131_v63  ;;  %1404 = vmatprep.subr.bf16.mxu0 %v6136_v0  ;;  %v6230_v63 = vld [vmem:[#allocation3 + $0x56c] ss:$16 sps:$4 sm:$0xff]   ;;  %v6225_v0 = vld [vmem:[#allocation3 + $0x368] ss:$16 sps:$4 sm:$0xff]  }
  0xcd   :  { %1445 = vmatprep.subr.bf16.mxu1 %v6139_v1  ;;  %v6228_v1 = vld [vmem:[#allocation3 + $0x568] ss:$16 sps:$4 sm:$0xff]  }
  0xcf   :  { %1405 = vmatpush2.bf16.msra.mxu0 %v6134_v2  ;;  %v6233_v2 = vld [vmem:[#allocation3 + $0x34c] ss:$16 sps:$4 sm:$0xff]  }
  0xd0   :  { %1446 = vmatpush2.bf16.msra.mxu1 %v6137_v3  ;;  %1406 = vmatprep.subr.bf16.mxu0 %v6142_v4  ;;  %v6236_v3 = vld [vmem:[#allocation3 + $0x54c] ss:$16 sps:$4 sm:$0xff]   ;;  %v6231_v4 = vld [vmem:[#allocation3 + $0x348] ss:$16 sps:$4 sm:$0xff]  }
  0xd1   :  { %1447 = vmatprep.subr.bf16.mxu1 %v6145_v5  ;;  %v6234_v5 = vld [vmem:[#allocation3 + $0x548] ss:$16 sps:$4 sm:$0xff]  }
  0xd3   :  { %1407 = vmatpush2.bf16.msra.mxu0 %v6140_v6  ;;  %v6239_v6 = vld [vmem:[#allocation3 + $0x32c] ss:$16 sps:$4 sm:$0xff]  }
  0xd4   :  { %1448 = vmatpush2.bf16.msra.mxu1 %v6143_v7  ;;  %1408 = vmatprep.subr.bf16.mxu0 %v6148_v10  ;;  %v6242_v7 = vld [vmem:[#allocation3 + $0x52c] ss:$16 sps:$4 sm:$0xff]   ;;  %v6237_v10 = vld [vmem:[#allocation3 + $0x328] ss:$16 sps:$4 sm:$0xff]  }
  0xd5   :  { %1449 = vmatprep.subr.bf16.mxu1 %v6151_v11  ;;  %v6240_v11 = vld [vmem:[#allocation3 + $0x528] ss:$16 sps:$4 sm:$0xff]  }
  0xd7   :  { %1409 = vmatpush2.bf16.msra.mxu0 %v6146_v12  ;;  %v6245_v12 = vld [vmem:[#allocation3 + $0x30c] ss:$16 sps:$4 sm:$0xff]  }
  0xd8   :  { %1450 = vmatpush2.bf16.msra.mxu1 %v6149_v13  ;;  %1460 = vmatprep.subr.bf16.mxu0 %v6155_v14  ;;  %v6248_v13 = vld [vmem:[#allocation3 + $0x50c] ss:$16 sps:$4 sm:$0xff]   ;;  %v6243_v14 = vld [vmem:[#allocation3 + $0x308] ss:$16 sps:$4 sm:$0xff]  }
  0xd9   :  { %1501 = vmatprep.subr.bf16.mxu1 %v6158_v15  ;;  %v7005_v15 = vld [vmem:[%s8026_s1] sm:$0xff] }
  0xda   :  { %1411 = vmatmul.mubr.bf16.vlgmr.msra.gmra.mxu0 %v6996_v16 }
  0xdb   :  { %1452 = vmatmul.mubr.bf16.vlgmr.msra.gmra.mxu1 %v6978_v8  ;;  %1461 = vmatpush1.bf16.msra.mxu0 %v6153_v17  ;;  %v6176_v8 = vld [vmem:[#allocation3 + $0x48c] ss:$16 sps:$4 sm:$0xff]   ;;  %v7010_v17 = vld [vmem:[%s8026_s1 + $0x8] sm:$0xff] }
  0xdc   :  { %1502 = vmatpush1.bf16.msra.mxu1 %v6156_v18  ;;  %1462 = vmatprep.subr.bf16.mxu0 %v6161_v19  ;;  %v6246_v18 = vld [vmem:[#allocation3 + $0x508] ss:$16 sps:$4 sm:$0xff]   ;;  %v6251_v19 = vld [vmem:[#allocation3 + $0x6e4] ss:$16 sps:$4 sm:$0xff]  }
  0xdd   :  { %1503 = vmatprep.subr.bf16.mxu1 %v6164_v20  ;;  %1492 = vmatprep.mubr.bf16.mxu0 %v6975_v55  ;;  %v6180_v55 = vld [vmem:[#allocation3 + $0x468] ss:$16 sps:$4 sm:$0xff]   ;;  %v6254_v20 = vld [vmem:[#allocation3 + $0x8e4] ss:$16 sps:$4 sm:$0xff]  }
  0xde   :  { %1533 = vmatprep.mubr.bf16.mxu1 %v6991_v40  ;;  %v6192_v40 = vld [vmem:[#allocation3 + $0x428] ss:$16 sps:$4 sm:$0xff]  }
  0xdf   :  { %1463 = vmatpush1.bf16.msra.mxu0 %v6159_v21  ;;  %v1548_v21 = vcombine.high %v7005_v15, %v7005_v15 }
  0xe0   :  { %1504 = vmatpush1.bf16.msra.mxu1 %v6162_v22  ;;  %1464 = vmatprep.subr.bf16.mxu0 %v6167_v23  ;;  %v1549_v22 = vcombine.high %v7010_v17, %v7010_v17  ;;  %v6249_v23 = vld [vmem:[#allocation3 + $0x6e0] ss:$16 sps:$4 sm:$0xff]  }
  0xe1   :  { %1505 = vmatprep.subr.bf16.mxu1 %v6170_v24  ;;  %v6252_v24 = vld [vmem:[#allocation3 + $0x8e0] ss:$16 sps:$4 sm:$0xff]  }
  0xe3   :  { %1465 = vmatpush1.bf16.msra.mxu0 %v6165_v25  ;;  %v6257_v25 = vld [vmem:[#allocation3 + $0x6c4] ss:$16 sps:$4 sm:$0xff]  }
  0xe4   :  { %1506 = vmatpush1.bf16.msra.mxu1 %v6168_v26  ;;  %1466 = vmatprep.subr.bf16.mxu0 %v6173_v27  ;;  %v6260_v26 = vld [vmem:[#allocation3 + $0x8c4] ss:$16 sps:$4 sm:$0xff]   ;;  %v7016_v27 = vpack.c.bf16 %v1548_v21, %v1548_v21 }
  0xe5   :  { %1507 = vmatprep.subr.bf16.mxu1 %v6176_v8  ;;  %v7018_v8 = vpack.c.bf16 %v1549_v22, %v1549_v22  ;;  %v6341_v21 = vld [vmem:[#allocation3 + $0x704] ss:$16 sps:$4 sm:$0xff]  }
  0xe6   :  { %v6344_v22 = vld [vmem:[#allocation3 + $0x904] ss:$16 sps:$4 sm:$0xff]  }
  0xe7   :  { %1467 = vmatpush1.bf16.msra.mxu0 %v6171_v28  ;;  %v6255_v28 = vld [vmem:[#allocation3 + $0x6c0] ss:$16 sps:$4 sm:$0xff]  }
  0xe8   :  { %1508 = vmatpush1.bf16.msra.mxu1 %v6174_v29  ;;  %1468 = vmatprep.subr.bf16.mxu0 %v6179_v30  ;;  %v6258_v29 = vld [vmem:[#allocation3 + $0x8c0] ss:$16 sps:$4 sm:$0xff]   ;;  %v6263_v30 = vld [vmem:[#allocation3 + $0x6a4] ss:$16 sps:$4 sm:$0xff]  }
  0xe9   :  { %1509 = vmatprep.subr.bf16.mxu1 %v6182_v31  ;;  %v6266_v31 = vld [vmem:[#allocation3 + $0x8a4] ss:$16 sps:$4 sm:$0xff]  }
  0xeb   :  { %1469 = vmatpush1.bf16.msra.mxu0 %v6177_v32  ;;  %v6261_v32 = vld [vmem:[#allocation3 + $0x6a0] ss:$16 sps:$4 sm:$0xff]  }
  0xec   :  { %1510 = vmatpush1.bf16.msra.mxu1 %v6180_v55  ;;  %1470 = vmatprep.subr.bf16.mxu0 %v6185_v33  ;;  %v6264_v55 = vld [vmem:[#allocation3 + $0x8a0] ss:$16 sps:$4 sm:$0xff]  }
  0xed   :  { %1511 = vmatprep.subr.bf16.mxu1 %v6188_v34  ;;  %v6267_v33 = vld [vmem:[#allocation3 + $0x680] ss:$16 sps:$4 sm:$0xff]  }
  0xee   :  { %v6270_v34 = vld [vmem:[#allocation3 + $0x880] ss:$16 sps:$4 sm:$0xff]  }
  0xef   :  { %1471 = vmatpush1.bf16.msra.mxu0 %v6183_v35  ;;  %v6275_v35 = vld [vmem:[#allocation3 + $0x664] ss:$16 sps:$4 sm:$0xff]  }
  0xf0   :  { %1512 = vmatpush1.bf16.msra.mxu1 %v6186_v36  ;;  %1472 = vmatprep.subr.bf16.mxu0 %v6191_v37  ;;  %v6278_v36 = vld [vmem:[#allocation3 + $0x864] ss:$16 sps:$4 sm:$0xff]   ;;  %v6273_v37 = vld [vmem:[#allocation3 + $0x660] ss:$16 sps:$4 sm:$0xff]  }
  0xf1   :  { %1513 = vmatprep.subr.bf16.mxu1 %v6194_v38  ;;  %v6276_v38 = vld [vmem:[#allocation3 + $0x860] ss:$16 sps:$4 sm:$0xff]  }
  0xf3   :  { %1473 = vmatpush1.bf16.msra.mxu0 %v6189_v39  ;;  %v6281_v39 = vld [vmem:[#allocation3 + $0x644] ss:$16 sps:$4 sm:$0xff]  }
  0xf4   :  { %1514 = vmatpush1.bf16.msra.mxu1 %v6192_v40  ;;  %1474 = vmatprep.subr.bf16.mxu0 %v6197_v41  ;;  %v6284_v40 = vld [vmem:[#allocation3 + $0x844] ss:$16 sps:$4 sm:$0xff]   ;;  %v6279_v41 = vld [vmem:[#allocation3 + $0x640] ss:$16 sps:$4 sm:$0xff]  }
  0xf5   :  { %1515 = vmatprep.subr.bf16.mxu1 %v6200_v42  ;;  %v6282_v42 = vld [vmem:[#allocation3 + $0x840] ss:$16 sps:$4 sm:$0xff]  }
  0xf7   :  { %1475 = vmatpush1.bf16.msra.mxu0 %v6195_v43  ;;  %v6287_v43 = vld [vmem:[#allocation3 + $0x624] ss:$16 sps:$4 sm:$0xff]  }
  0xf8   :  { %1516 = vmatpush1.bf16.msra.mxu1 %v6198_v44  ;;  %1476 = vmatprep.subr.bf16.mxu0 %v6203_v45  ;;  %v6290_v44 = vld [vmem:[#allocation3 + $0x824] ss:$16 sps:$4 sm:$0xff]   ;;  %v6285_v45 = vld [vmem:[#allocation3 + $0x620] ss:$16 sps:$4 sm:$0xff]  }
  0xf9   :  { %1517 = vmatprep.subr.bf16.mxu1 %v6206_v46  ;;  %v6288_v46 = vld [vmem:[#allocation3 + $0x820] ss:$16 sps:$4 sm:$0xff]  }
  0xfb   :  { %1477 = vmatpush2.bf16.msra.mxu0 %v6201_v47  ;;  %v6293_v47 = vld [vmem:[#allocation3 + $0x604] ss:$16 sps:$4 sm:$0xff]  }
  0xfc   :  { %1518 = vmatpush2.bf16.msra.mxu1 %v6204_v48  ;;  %1478 = vmatprep.subr.bf16.mxu0 %v6209_v49  ;;  %v6296_v48 = vld [vmem:[#allocation3 + $0x804] ss:$16 sps:$4 sm:$0xff]   ;;  %v6291_v49 = vld [vmem:[#allocation3 + $0x600] ss:$16 sps:$4 sm:$0xff]  }
  0xfd   :  { %1519 = vmatprep.subr.bf16.mxu1 %v6212_v50  ;;  %v6294_v50 = vld [vmem:[#allocation3 + $0x800] ss:$16 sps:$4 sm:$0xff]  }
  0xff   :  { %1479 = vmatpush2.bf16.msra.mxu0 %v6207_v51  ;;  %v6299_v51 = vld [vmem:[#allocation3 + $0x7e4] ss:$16 sps:$4 sm:$0xff]  }
 0x100   :  { %1520 = vmatpush2.bf16.msra.mxu1 %v6210_v52  ;;  %1480 = vmatprep.subr.bf16.mxu0 %v6215_v53  ;;  %v6302_v52 = vld [vmem:[#allocation3 + $0x9e4] ss:$16 sps:$4 sm:$0xff]   ;;  %v6297_v53 = vld [vmem:[#allocation3 + $0x7e0] ss:$16 sps:$4 sm:$0xff]  }
 0x101   :  { %1521 = vmatprep.subr.bf16.mxu1 %v6218_v54  ;;  %v6300_v54 = vld [vmem:[#allocation3 + $0x9e0] ss:$16 sps:$4 sm:$0xff]  }
 0x103   :  { %1481 = vmatpush2.bf16.msra.mxu0 %v6213_v56  ;;  %v6305_v56 = vld [vmem:[#allocation3 + $0x7c4] ss:$16 sps:$4 sm:$0xff]  }
 0x104   :  { %1522 = vmatpush2.bf16.msra.mxu1 %v6216_v57  ;;  %1482 = vmatprep.subr.bf16.mxu0 %v6221_v58  ;;  %v6308_v57 = vld [vmem:[#allocation3 + $0x9c4] ss:$16 sps:$4 sm:$0xff]   ;;  %v6303_v58 = vld [vmem:[#allocation3 + $0x7c0] ss:$16 sps:$4 sm:$0xff]  }
 0x105   :  { %1523 = vmatprep.subr.bf16.mxu1 %v6224_v59  ;;  %v6306_v59 = vld [vmem:[#allocation3 + $0x9c0] ss:$16 sps:$4 sm:$0xff]  }
 0x107   :  { %1483 = vmatpush2.bf16.msra.mxu0 %v6219_v60  ;;  %v6311_v60 = vld [vmem:[#allocation3 + $0x7a4] ss:$16 sps:$4 sm:$0xff]  }
 0x108   :  { %1524 = vmatpush2.bf16.msra.mxu1 %v6222_v61  ;;  %1484 = vmatprep.subr.bf16.mxu0 %v6227_v62  ;;  %v6314_v61 = vld [vmem:[#allocation3 + $0x9a4] ss:$16 sps:$4 sm:$0xff]   ;;  %v6309_v62 = vld [vmem:[#allocation3 + $0x7a0] ss:$16 sps:$4 sm:$0xff]  }
 0x109   :  { %1525 = vmatprep.subr.bf16.mxu1 %v6230_v63  ;;  %v6312_v63 = vld [vmem:[#allocation3 + $0x9a0] ss:$16 sps:$4 sm:$0xff]  }
 0x10b   :  { %1485 = vmatpush2.bf16.msra.mxu0 %v6225_v0  ;;  %v6317_v0 = vld [vmem:[#allocation3 + $0x784] ss:$16 sps:$4 sm:$0xff]  }
 0x10c   :  { %1526 = vmatpush2.bf16.msra.mxu1 %v6228_v1  ;;  %1486 = vmatprep.subr.bf16.mxu0 %v6233_v2  ;;  %v6320_v1 = vld [vmem:[#allocation3 + $0x984] ss:$16 sps:$4 sm:$0xff]   ;;  %v6315_v2 = vld [vmem:[#allocation3 + $0x780] ss:$16 sps:$4 sm:$0xff]  }
 0x10d   :  { %1527 = vmatprep.subr.bf16.mxu1 %v6236_v3  ;;  %v6318_v3 = vld [vmem:[#allocation3 + $0x980] ss:$16 sps:$4 sm:$0xff]  }
 0x10f   :  { %1487 = vmatpush2.bf16.msra.mxu0 %v6231_v4  ;;  %v6323_v4 = vld [vmem:[#allocation3 + $0x764] ss:$16 sps:$4 sm:$0xff]  }
 0x110   :  { %1528 = vmatpush2.bf16.msra.mxu1 %v6234_v5  ;;  %1488 = vmatprep.subr.bf16.mxu0 %v6239_v6  ;;  %v6326_v5 = vld [vmem:[#allocation3 + $0x964] ss:$16 sps:$4 sm:$0xff]   ;;  %v6321_v6 = vld [vmem:[#allocation3 + $0x760] ss:$16 sps:$4 sm:$0xff]  }
 0x111   :  { %1529 = vmatprep.subr.bf16.mxu1 %v6242_v7  ;;  %v6324_v7 = vld [vmem:[#allocation3 + $0x960] ss:$16 sps:$4 sm:$0xff]  }
 0x113   :  { %1489 = vmatpush2.bf16.msra.mxu0 %v6237_v10  ;;  %v6329_v10 = vld [vmem:[#allocation3 + $0x744] ss:$16 sps:$4 sm:$0xff]  }
 0x114   :  { %1530 = vmatpush2.bf16.msra.mxu1 %v6240_v11  ;;  %1490 = vmatprep.subr.bf16.mxu0 %v6245_v12  ;;  %v6332_v11 = vld [vmem:[#allocation3 + $0x944] ss:$16 sps:$4 sm:$0xff]   ;;  %v6327_v12 = vld [vmem:[#allocation3 + $0x740] ss:$16 sps:$4 sm:$0xff]  }
 0x115   :  { %1531 = vmatprep.subr.bf16.mxu1 %v6248_v13  ;;  %v6330_v13 = vld [vmem:[#allocation3 + $0x940] ss:$16 sps:$4 sm:$0xff]  }
 0x117   :  { %1491 = vmatpush2.bf16.msra.mxu0 %v6243_v14  ;;  %v6335_v14 = vld [vmem:[#allocation3 + $0x724] ss:$16 sps:$4 sm:$0xff]  }
 0x118   :  { %1532 = vmatpush2.bf16.msra.mxu1 %v6246_v18  ;;  %2713 = vmatprep.subr.bf16.mxu0 %v6251_v19  ;;  %v6338_v18 = vld [vmem:[#allocation3 + $0x924] ss:$16 sps:$4 sm:$0xff]   ;;  %v6333_v19 = vld [vmem:[#allocation3 + $0x720] ss:$16 sps:$4 sm:$0xff]  }
 0x119   :  { %2754 = vmatprep.subr.bf16.mxu1 %v6254_v20  ;;  %v6336_v20 = vld [vmem:[#allocation3 + $0x920] ss:$16 sps:$4 sm:$0xff]  }
 0x11a   :  { %1493 = vmatmul.mubr.bf16.vlgmr.msra.gmra.mxu0 %v6980_v9  ;;  %v6269_v9 = vld [vmem:[#allocation3 + $0x684] ss:$16 sps:$4 sm:$0xff]  }
 0x11b   :  { %1534 = vmatmul.mubr.bf16.vlgmr.msra.gmra.mxu1 %v6996_v16  ;;  %2714 = vmatpush1.bf16.msra.mxu0 %v6249_v23  ;;  %v6272_v16 = vld [vmem:[#allocation3 + $0x884] ss:$16 sps:$4 sm:$0xff]   ;;  %v6339_v23 = vld [vmem:[#allocation3 + $0x700] ss:$16 sps:$4 sm:$0xff]  }
 0x11c   :  { %2755 = vmatpush1.bf16.msra.mxu1 %v6252_v24  ;;  %2715 = vmatprep.subr.bf16.mxu0 %v6257_v25  ;;  %v7027_v24 = vld [vmem:[%s8026_s1 + $0x10] sm:$0xff]  ;;  %v6342_v25 = vld [vmem:[#allocation3 + $0x900] ss:$16 sps:$4 sm:$0xff]  }
 0x11d   :  { %2756 = vmatprep.subr.bf16.mxu1 %v6260_v26  ;;  %2745 = vmatprep.mubr.bf16.mxu0 %v7016_v27  ;;  %v6349_v26 = vld [vmem:[#allocation3 + $0xae4] ss:$16 sps:$4 sm:$0xff]  }
 0x11e   :  { %2786 = vmatprep.mubr.bf16.mxu1 %v7018_v8 }
 0x11f   :  { %2716 = vmatpush1.bf16.msra.mxu0 %v6255_v28  ;;  %v6352_v28 = vld [vmem:[#allocation3 + $0x6ec] ss:$16 sps:$4 sm:$0xff]  }
 0x120   :  { %2757 = vmatpush1.bf16.msra.mxu1 %v6258_v29  ;;  %2717 = vmatprep.subr.bf16.mxu0 %v6263_v30  ;;  %v1550_v29 = vcombine.high %v7027_v24, %v7027_v24  ;;  %v7033_v30 = vpack.c.bf16 %v7005_v15, %v7005_v15 }
 0x121   :  { %2758 = vmatprep.subr.bf16.mxu1 %v6266_v31  ;;  %v7037_v31 = vpack.c.bf16 %v7010_v17, %v7010_v17  ;;  %v6353_v17 = vld [vmem:[#allocation3 + $0xac0] ss:$16 sps:$4 sm:$0xff]  }
 0x123   :  { %2718 = vmatpush1.bf16.msra.mxu0 %v6261_v32  ;;  %v6347_v32 = vld [vmem:[#allocation3 + $0xae0] ss:$16 sps:$4 sm:$0xff]  }
 0x124   :  { %2759 = vmatpush1.bf16.msra.mxu1 %v6264_v55  ;;  %2719 = vmatprep.subr.bf16.mxu0 %v6269_v9  ;;  %v6350_v55 = vld [vmem:[#allocation3 + $0x6e8] ss:$16 sps:$4 sm:$0xff]   ;;  %v6355_v9 = vld [vmem:[#allocation3 + $0xac4] ss:$16 sps:$4 sm:$0xff]  }
 0x125   :  { %2760 = vmatprep.subr.bf16.mxu1 %v6272_v16  ;;  %v6358_v16 = vld [vmem:[#allocation3 + $0x6cc] ss:$16 sps:$4 sm:$0xff]  }
 0x127   :  { %2720 = vmatpush1.bf16.msra.mxu0 %v6267_v33  ;;  %v7039_v33 = vpack.c.bf16 %v1550_v29, %v1550_v29  ;;  %v6419_v29 = vld [vmem:[#allocation3 + $0xb60] ss:$16 sps:$4 sm:$0xff]  }
 0x128   :  { %2761 = vmatpush1.bf16.msra.mxu1 %v6270_v34  ;;  %2721 = vmatprep.subr.bf16.mxu0 %v6275_v35 }
 0x129   :  { %2762 = vmatprep.subr.bf16.mxu1 %v6278_v36  ;;  %v6356_v36 = vld [vmem:[#allocation3 + $0x6c8] ss:$16 sps:$4 sm:$0xff]  }
 0x12b   :  { %2722 = vmatpush1.bf16.msra.mxu0 %v6273_v37  ;;  %v6361_v37 = vld [vmem:[#allocation3 + $0xaa4] ss:$16 sps:$4 sm:$0xff]  }
 0x12c   :  { %2763 = vmatpush1.bf16.msra.mxu1 %v6276_v38  ;;  %2723 = vmatprep.subr.bf16.mxu0 %v6281_v39 }
 0x12d   :  { %2764 = vmatprep.subr.bf16.mxu1 %v6284_v40  ;;  %v6364_v40 = vld [vmem:[#allocation3 + $0x6ac] ss:$16 sps:$4 sm:$0xff]  }
 0x12f   :  { %2724 = vmatpush1.bf16.msra.mxu0 %v6279_v41 }
 0x130   :  { %2765 = vmatpush1.bf16.msra.mxu1 %v6282_v42  ;;  %2725 = vmatprep.subr.bf16.mxu0 %v6287_v43 }
 0x131   :  { %2766 = vmatprep.subr.bf16.mxu1 %v6290_v44  ;;  %v6359_v44 = vld [vmem:[#allocation3 + $0xaa0] ss:$16 sps:$4 sm:$0xff]  }
 0x133   :  { %2726 = vmatpush1.bf16.msra.mxu0 %v6285_v45  ;;  %v6362_v45 = vld [vmem:[#allocation3 + $0x6a8] ss:$16 sps:$4 sm:$0xff]  }
 0x134   :  { %2767 = vmatpush1.bf16.msra.mxu1 %v6288_v46  ;;  %2727 = vmatprep.subr.bf16.mxu0 %v6293_v47  ;;  %v6367_v46 = vld [vmem:[#allocation3 + $0xa84] ss:$16 sps:$4 sm:$0xff]  }
 0x135   :  { %2768 = vmatprep.subr.bf16.mxu1 %v6296_v48 }
 0x137   :  { %2728 = vmatpush1.bf16.msra.mxu0 %v6291_v49  ;;  %v6370_v49 = vld [vmem:[#allocation3 + $0x68c] ss:$16 sps:$4 sm:$0xff]  }
 0x138   :  { %2769 = vmatpush1.bf16.msra.mxu1 %v6294_v50  ;;  %2729 = vmatprep.subr.bf16.mxu0 %v6299_v51  ;;  %v6365_v50 = vld [vmem:[#allocation3 + $0xa80] ss:$16 sps:$4 sm:$0xff]   ;;  %v6368_v51 = vld [vmem:[#allocation3 + $0x688] ss:$16 sps:$4 sm:$0xff]  }
 0x139   :  { %2770 = vmatprep.subr.bf16.mxu1 %v6302_v52  ;;  %v6373_v52 = vld [vmem:[#allocation3 + $0xa64] ss:$16 sps:$4 sm:$0xff]  }
 0x13b   :  { %2730 = vmatpush2.bf16.msra.mxu0 %v6297_v53  ;;  %v6371_v53 = vld [vmem:[#allocation3 + $0xa60] ss:$16 sps:$4 sm:$0xff]  }
 0x13c   :  { %2771 = vmatpush2.bf16.msra.mxu1 %v6300_v54  ;;  %2731 = vmatprep.subr.bf16.mxu0 %v6305_v56  ;;  %v6374_v54 = vld [vmem:[#allocation3 + $0x668] ss:$16 sps:$4 sm:$0xff]   ;;  %v6379_v56 = vld [vmem:[#allocation3 + $0xa44] ss:$16 sps:$4 sm:$0xff]  }
 0x13d   :  { %2772 = vmatprep.subr.bf16.mxu1 %v6308_v57  ;;  %v6382_v57 = vld [vmem:[#allocation3 + $0x64c] ss:$16 sps:$4 sm:$0xff]  }
 0x13f   :  { %2732 = vmatpush2.bf16.msra.mxu0 %v6303_v58  ;;  %v6377_v58 = vld [vmem:[#allocation3 + $0xa40] ss:$16 sps:$4 sm:$0xff]  }
 0x140   :  { %2773 = vmatpush2.bf16.msra.mxu1 %v6306_v59  ;;  %2733 = vmatprep.subr.bf16.mxu0 %v6311_v60  ;;  %v6380_v59 = vld [vmem:[#allocation3 + $0x648] ss:$16 sps:$4 sm:$0xff]   ;;  %v6385_v60 = vld [vmem:[#allocation3 + $0xa24] ss:$16 sps:$4 sm:$0xff]  }
 0x141   :  { %2774 = vmatprep.subr.bf16.mxu1 %v6314_v61  ;;  %v6388_v61 = vld [vmem:[#allocation3 + $0x62c] ss:$16 sps:$4 sm:$0xff]  }
 0x143   :  { %2734 = vmatpush2.bf16.msra.mxu0 %v6309_v62  ;;  %v6383_v62 = vld [vmem:[#allocation3 + $0xa20] ss:$16 sps:$4 sm:$0xff]  }
 0x144   :  { %2775 = vmatpush2.bf16.msra.mxu1 %v6312_v63  ;;  %2735 = vmatprep.subr.bf16.mxu0 %v6317_v0  ;;  %v6386_v63 = vld [vmem:[#allocation3 + $0x628] ss:$16 sps:$4 sm:$0xff]   ;;  %v6391_v0 = vld [vmem:[#allocation3 + $0xa04] ss:$16 sps:$4 sm:$0xff]  }
 0x145   :  { %2776 = vmatprep.subr.bf16.mxu1 %v6320_v1  ;;  %v6394_v1 = vld [vmem:[#allocation3 + $0x60c] ss:$16 sps:$4 sm:$0xff]  }
 0x147   :  { %2736 = vmatpush2.bf16.msra.mxu0 %v6315_v2  ;;  %v6389_v2 = vld [vmem:[#allocation3 + $0xa00] ss:$16 sps:$4 sm:$0xff]  }
 0x148   :  { %2777 = vmatpush2.bf16.msra.mxu1 %v6318_v3  ;;  %2737 = vmatprep.subr.bf16.mxu0 %v6323_v4  ;;  %v6392_v3 = vld [vmem:[#allocation3 + $0x608] ss:$16 sps:$4 sm:$0xff]   ;;  %v6397_v4 = vld [vmem:[#allocation3 + $0xbe4] ss:$16 sps:$4 sm:$0xff]  }
 0x149   :  { %2778 = vmatprep.subr.bf16.mxu1 %v6326_v5  ;;  %v6400_v5 = vld [vmem:[#allocation3 + $0x7ec] ss:$16 sps:$4 sm:$0xff]  }
 0x14b   :  { %2738 = vmatpush2.bf16.msra.mxu0 %v6321_v6  ;;  %v6395_v6 = vld [vmem:[#allocation3 + $0xbe0] ss:$16 sps:$4 sm:$0xff]  }
 0x14c   :  { %2779 = vmatpush2.bf16.msra.mxu1 %v6324_v7  ;;  %2739 = vmatprep.subr.bf16.mxu0 %v6329_v10  ;;  %v6398_v7 = vld [vmem:[#allocation3 + $0x7e8] ss:$16 sps:$4 sm:$0xff]   ;;  %v6403_v10 = vld [vmem:[#allocation3 + $0xbc4] ss:$16 sps:$4 sm:$0xff]  }
 0x14d   :  { %2780 = vmatprep.subr.bf16.mxu1 %v6332_v11  ;;  %v6406_v11 = vld [vmem:[#allocation3 + $0x7cc] ss:$16 sps:$4 sm:$0xff]  }
 0x14f   :  { %2740 = vmatpush2.bf16.msra.mxu0 %v6327_v12  ;;  %v6401_v12 = vld [vmem:[#allocation3 + $0xbc0] ss:$16 sps:$4 sm:$0xff]  }
 0x150   :  { %2781 = vmatpush2.bf16.msra.mxu1 %v6330_v13  ;;  %2741 = vmatprep.subr.bf16.mxu0 %v6335_v14  ;;  %v6404_v13 = vld [vmem:[#allocation3 + $0x7c8] ss:$16 sps:$4 sm:$0xff]   ;;  %v6409_v14 = vld [vmem:[#allocation3 + $0xba4] ss:$16 sps:$4 sm:$0xff]  }
 0x151   :  { %2782 = vmatprep.subr.bf16.mxu1 %v6338_v18  ;;  %v6412_v18 = vld [vmem:[#allocation3 + $0x7ac] ss:$16 sps:$4 sm:$0xff]  }
 0x153   :  { %2742 = vmatpush2.bf16.msra.mxu0 %v6333_v19  ;;  %v6407_v19 = vld [vmem:[#allocation3 + $0xba0] ss:$16 sps:$4 sm:$0xff]  }
 0x154   :  { %2783 = vmatpush2.bf16.msra.mxu1 %v6336_v20  ;;  %2743 = vmatprep.subr.bf16.mxu0 %v6341_v21  ;;  %v6410_v20 = vld [vmem:[#allocation3 + $0x7a8] ss:$16 sps:$4 sm:$0xff]   ;;  %v6415_v21 = vld [vmem:[#allocation3 + $0xb84] ss:$16 sps:$4 sm:$0xff]  }
 0x155   :  { %2784 = vmatprep.subr.bf16.mxu1 %v6344_v22  ;;  %v6418_v22 = vld [vmem:[#allocation3 + $0x78c] ss:$16 sps:$4 sm:$0xff]  }
 0x157   :  { %2744 = vmatpush2.bf16.msra.mxu0 %v6339_v23  ;;  %v6413_v23 = vld [vmem:[#allocation3 + $0xb80] ss:$16 sps:$4 sm:$0xff]  }
 0x158   :  { %2785 = vmatpush2.bf16.msra.mxu1 %v6342_v25  ;;  %2795 = vmatprep.subr.bf16.mxu0 %v6349_v26  ;;  %v6416_v25 = vld [vmem:[#allocation3 + $0x788] ss:$16 sps:$4 sm:$0xff]   ;;  %v6421_v26 = vld [vmem:[#allocation3 + $0xb64] ss:$16 sps:$4 sm:$0xff]  }
 0x159   :  { %2836 = vmatprep.subr.bf16.mxu1 %v6352_v28  ;;  %v6424_v28 = vld [vmem:[#allocation3 + $0x76c] ss:$16 sps:$4 sm:$0xff]  }
 0x15a   :  { %v1330_v34 = vpop.f32.mrf.mxu0  ;;  %2746 = vmatmul.mubr.bf16.vlgmr.msra.gmra.mxu0 %v7033_v30 }
 0x15b   :  { %v1371_v35 = vpop.f32.mrf.mxu1  ;;  %2787 = vmatmul.mubr.bf16.vlgmr.msra.gmra.mxu1 %v7037_v31  ;;  %2796 = vmatpush1.bf16.msra.mxu0 %v6347_v32  ;;  %v6422_v32 = vld [vmem:[#allocation3 + $0x768] ss:$16 sps:$4 sm:$0xff]  }
 0x15c   :  { %v7043_v15 = vadd.f32 %v1371_v35, %v1330_v34  ;;  %2837 = vmatpush1.bf16.msra.mxu1 %v6350_v55  ;;  %v1332_v38 = vpop.f32.mrf.mxu0  ;;  %2797 = vmatprep.subr.bf16.mxu0 %v6355_v9  ;;  %v6427_v55 = vld [vmem:[#allocation3 + $0xb44] ss:$16 sps:$4 sm:$0xff]   ;;  %v6430_v9 = vld [vmem:[#allocation3 + $0x74c] ss:$16 sps:$4 sm:$0xff]   ;;  %v6428_v34 = vld [vmem:[#allocation3 + $0x748] ss:$16 sps:$4 sm:$0xff]  }
 0x15d   :  { %v1373_v39 = vpop.f32.mrf.mxu1  ;;  %2838 = vmatprep.subr.bf16.mxu1 %v6358_v16  ;;  %2827 = vmatprep.mubr.bf16.mxu0 %v7039_v33  ;;  %v6425_v16 = vld [vmem:[#allocation3 + $0xb40] ss:$16 sps:$4 sm:$0xff]   ;;  %v6433_v35 = vld [vmem:[#allocation3 + $0xb24] ss:$16 sps:$4 sm:$0xff]  }
 0x15e   :  { %v7045_v41 = vadd.f32 %v1373_v39, %v1332_v38  ;;  %2868 = vmatprep.mubr.bf16.mxu1 %v7016_v27  ;;  %v1334_v42 = vpop.f32.mrf.mxu0  ;;  %v6376_v27 = vld [vmem:[#allocation3 + $0x66c] ss:$16 sps:$4 sm:$0xff]   ;;  %v6439_v38 = vld [vmem:[#allocation3 + $0xb04] ss:$16 sps:$4 sm:$0xff]  }
 0x15f   :  { %v1375_v43 = vpop.f32.mrf.mxu1  ;;  %2798 = vmatpush1.bf16.msra.mxu0 %v6353_v17  ;;  %v6436_v17 = vld [vmem:[#allocation3 + $0x72c] ss:$16 sps:$4 sm:$0xff]   ;;  %v6440_v42 = vld [vmem:[#allocation3 + $0x708] ss:$16 sps:$4 sm:$0xff]  }
 0x160   :  { %2839 = vmatpush1.bf16.msra.mxu1 %v6356_v36  ;;  %v1335_v47 = vpop.f32.mrf.mxu0  ;;  %2799 = vmatprep.subr.bf16.mxu0 %v6361_v37  ;;  %v6431_v36 = vld [vmem:[#allocation3 + $0xb20] ss:$16 sps:$4 sm:$0xff]   ;;  %v6434_v37 = vld [vmem:[#allocation3 + $0x728] ss:$16 sps:$4 sm:$0xff]   ;;  %v6442_v39 = vld [vmem:[#allocation3 + $0x70c] ss:$16 sps:$4 sm:$0xff]  }
 0x161   :  { %v1376_v48 = vpop.f32.mrf.mxu1  ;;  %2840 = vmatprep.subr.bf16.mxu1 %v6364_v40  ;;  %v6437_v40 = vld [vmem:[#allocation3 + $0xb00] ss:$16 sps:$4 sm:$0xff]   ;;  %v6446_v43 = vld [vmem:[#allocation3 + $0x8ec] ss:$16 sps:$4 sm:$0xff]   ;;  %v6447_v47 = vld [vmem:[#allocation3 + $0xae8] ss:$16 sps:$4 sm:$0xff]  }
 0x162   :  { %v6452_v48 = vld [vmem:[#allocation3 + $0x8cc] ss:$16 sps:$4 sm:$0xff]  }
 0x163   :  { %2800 = vmatpush1.bf16.msra.mxu0 %v6359_v44  ;;  %v6449_v44 = vld [vmem:[#allocation3 + $0xaec] ss:$16 sps:$4 sm:$0xff]  }
 0x164   :  { %2841 = vmatpush1.bf16.msra.mxu1 %v6362_v45  ;;  %2801 = vmatprep.subr.bf16.mxu0 %v6367_v46  ;;  %v7051_v45 = vpack.c.bf16 %v7027_v24, %v7027_v24  ;;  %v6444_v46 = vld [vmem:[#allocation3 + $0x8e8] ss:$16 sps:$4 sm:$0xff]  }
 0x165   :  { %2842 = vmatprep.subr.bf16.mxu1 %v6370_v49  ;;  %v6455_v49 = vld [vmem:[#allocation3 + $0xacc] ss:$16 sps:$4 sm:$0xff]   ;;  %v6450_v24 = vld [vmem:[#allocation3 + $0x8c8] ss:$16 sps:$4 sm:$0xff]  }
 0x167   :  { %2802 = vmatpush1.bf16.msra.mxu0 %v6365_v50 }
 0x168   :  { %2843 = vmatpush1.bf16.msra.mxu1 %v6368_v51  ;;  %2803 = vmatprep.subr.bf16.mxu0 %v6373_v52 }
 0x169   :  { %2844 = vmatprep.subr.bf16.mxu1 %v6376_v27  ;;  %v6453_v27 = vld [vmem:[#allocation3 + $0xac8] ss:$16 sps:$4 sm:$0xff]  }
 0x16b   :  { %2804 = vmatpush1.bf16.msra.mxu0 %v6371_v53 }
 0x16c   :  { %2845 = vmatpush1.bf16.msra.mxu1 %v6374_v54  ;;  %2805 = vmatprep.subr.bf16.mxu0 %v6379_v56  ;;  %v6458_v56 = vld [vmem:[#allocation3 + $0x8ac] ss:$16 sps:$4 sm:$0xff]  }
 0x16d   :  { %2846 = vmatprep.subr.bf16.mxu1 %v6382_v57  ;;  %v6461_v57 = vld [vmem:[#allocation3 + $0xaac] ss:$16 sps:$4 sm:$0xff]  }
 0x16f   :  { %2806 = vmatpush1.bf16.msra.mxu0 %v6377_v58 }
 0x170   :  { %2847 = vmatpush1.bf16.msra.mxu1 %v6380_v59  ;;  %2807 = vmatprep.subr.bf16.mxu0 %v6385_v60  ;;  %v6456_v59 = vld [vmem:[#allocation3 + $0x8a8] ss:$16 sps:$4 sm:$0xff]  }
 0x171   :  { %2848 = vmatprep.subr.bf16.mxu1 %v6388_v61  ;;  %v6459_v60 = vld [vmem:[#allocation3 + $0xaa8] ss:$16 sps:$4 sm:$0xff]  }
 0x173   :  { %2808 = vmatpush1.bf16.msra.mxu0 %v6383_v62 }
 0x174   :  { %2849 = vmatpush1.bf16.msra.mxu1 %v6386_v63  ;;  %2809 = vmatprep.subr.bf16.mxu0 %v6391_v0  ;;  %v6464_v63 = vld [vmem:[#allocation3 + $0x88c] ss:$16 sps:$4 sm:$0xff]  }
 0x175   :  { %2850 = vmatprep.subr.bf16.mxu1 %v6394_v1  ;;  %v6467_v0 = vld [vmem:[#allocation3 + $0xa8c] ss:$16 sps:$4 sm:$0xff]   ;;  %v6465_v1 = vld [vmem:[#allocation3 + $0xa88] ss:$16 sps:$4 sm:$0xff]  }
 0x177   :  { %2810 = vmatpush1.bf16.msra.mxu0 %v6389_v2  ;;  %v6468_v2 = vld [vmem:[#allocation3 + $0x868] ss:$16 sps:$4 sm:$0xff]  }
 0x178   :  { %2851 = vmatpush1.bf16.msra.mxu1 %v6392_v3  ;;  %2811 = vmatprep.subr.bf16.mxu0 %v6397_v4  ;;  %v6471_v3 = vld [vmem:[#allocation3 + $0xa68] ss:$16 sps:$4 sm:$0xff]   ;;  %v6476_v4 = vld [vmem:[#allocation3 + $0x84c] ss:$16 sps:$4 sm:$0xff]  }
 0x179   :  { %2852 = vmatprep.subr.bf16.mxu1 %v6400_v5  ;;  %v6479_v5 = vld [vmem:[#allocation3 + $0xa4c] ss:$16 sps:$4 sm:$0xff]  }
 0x17b   :  { %2812 = vmatpush2.bf16.msra.mxu0 %v6395_v6  ;;  %v6474_v6 = vld [vmem:[#allocation3 + $0x848] ss:$16 sps:$4 sm:$0xff]  }
 0x17c   :  { %2853 = vmatpush2.bf16.msra.mxu1 %v6398_v7  ;;  %2813 = vmatprep.subr.bf16.mxu0 %v6403_v10  ;;  %v6477_v7 = vld [vmem:[#allocation3 + $0xa48] ss:$16 sps:$4 sm:$0xff]   ;;  %v6482_v10 = vld [vmem:[#allocation3 + $0x82c] ss:$16 sps:$4 sm:$0xff]  }
 0x17d   :  { %2854 = vmatprep.subr.bf16.mxu1 %v6406_v11  ;;  %v6485_v11 = vld [vmem:[#allocation3 + $0xa2c] ss:$16 sps:$4 sm:$0xff]  }
 0x17f   :  { %2814 = vmatpush2.bf16.msra.mxu0 %v6401_v12  ;;  %v6480_v12 = vld [vmem:[#allocation3 + $0x828] ss:$16 sps:$4 sm:$0xff]  }
 0x180   :  { %2855 = vmatpush2.bf16.msra.mxu1 %v6404_v13  ;;  %2815 = vmatprep.subr.bf16.mxu0 %v6409_v14  ;;  %v6483_v13 = vld [vmem:[#allocation3 + $0xa28] ss:$16 sps:$4 sm:$0xff]   ;;  %v6488_v14 = vld [vmem:[#allocation3 + $0x80c] ss:$16 sps:$4 sm:$0xff]  }
 0x181   :  { %2856 = vmatprep.subr.bf16.mxu1 %v6412_v18  ;;  %v6491_v18 = vld [vmem:[#allocation3 + $0xa0c] ss:$16 sps:$4 sm:$0xff]  }
 0x183   :  { %2816 = vmatpush2.bf16.msra.mxu0 %v6407_v19  ;;  %v6486_v19 = vld [vmem:[#allocation3 + $0x808] ss:$16 sps:$4 sm:$0xff]  }
 0x184   :  { %2857 = vmatpush2.bf16.msra.mxu1 %v6410_v20  ;;  %2817 = vmatprep.subr.bf16.mxu0 %v6415_v21  ;;  %v6489_v20 = vld [vmem:[#allocation3 + $0xa08] ss:$16 sps:$4 sm:$0xff]   ;;  %v6494_v21 = vld [vmem:[#allocation3 + $0x9ec] ss:$16 sps:$4 sm:$0xff]  }
 0x185   :  { %2858 = vmatprep.subr.bf16.mxu1 %v6418_v22  ;;  %v6497_v22 = vld [vmem:[#allocation3 + $0xbec] ss:$16 sps:$4 sm:$0xff]  }
 0x187   :  { %2818 = vmatpush2.bf16.msra.mxu0 %v6413_v23  ;;  %v6492_v23 = vld [vmem:[#allocation3 + $0x9e8] ss:$16 sps:$4 sm:$0xff]  }
 0x188   :  { %2859 = vmatpush2.bf16.msra.mxu1 %v6416_v25  ;;  %2819 = vmatprep.subr.bf16.mxu0 %v6421_v26  ;;  %v6495_v25 = vld [vmem:[#allocation3 + $0xbe8] ss:$16 sps:$4 sm:$0xff]   ;;  %v6500_v26 = vld [vmem:[#allocation3 + $0x9cc] ss:$16 sps:$4 sm:$0xff]  }
 0x189   :  { %2860 = vmatprep.subr.bf16.mxu1 %v6424_v28  ;;  %v6503_v28 = vld [vmem:[#allocation3 + $0xbcc] ss:$16 sps:$4 sm:$0xff]  }
 0x18b   :  { %2820 = vmatpush2.bf16.msra.mxu0 %v6419_v29  ;;  %v6498_v29 = vld [vmem:[#allocation3 + $0x9c8] ss:$16 sps:$4 sm:$0xff]  }
 0x18c   :  { %2861 = vmatpush2.bf16.msra.mxu1 %v6422_v32  ;;  %2821 = vmatprep.subr.bf16.mxu0 %v6427_v55  ;;  %v6501_v32 = vld [vmem:[#allocation3 + $0xbc8] ss:$16 sps:$4 sm:$0xff]   ;;  %v6506_v55 = vld [vmem:[#allocation3 + $0x9ac] ss:$16 sps:$4 sm:$0xff]  }
 0x18d   :  { %2862 = vmatprep.subr.bf16.mxu1 %v6430_v9  ;;  %v6509_v9 = vld [vmem:[#allocation3 + $0xbac] ss:$16 sps:$4 sm:$0xff]  }
 0x18f   :  { %2822 = vmatpush2.bf16.msra.mxu0 %v6425_v16  ;;  %v6504_v16 = vld [vmem:[#allocation3 + $0x9a8] ss:$16 sps:$4 sm:$0xff]  }
 0x190   :  { %2863 = vmatpush2.bf16.msra.mxu1 %v6428_v34  ;;  %2823 = vmatprep.subr.bf16.mxu0 %v6433_v35  ;;  %v6507_v34 = vld [vmem:[#allocation3 + $0xba8] ss:$16 sps:$4 sm:$0xff]   ;;  %v6512_v35 = vld [vmem:[#allocation3 + $0x98c] ss:$16 sps:$4 sm:$0xff]  }
 0x191   :  { %2864 = vmatprep.subr.bf16.mxu1 %v6436_v17  ;;  %v6515_v17 = vld [vmem:[#allocation3 + $0xb8c] ss:$16 sps:$4 sm:$0xff]  }
 0x193   :  { %2824 = vmatpush2.bf16.msra.mxu0 %v6431_v36  ;;  %v6510_v36 = vld [vmem:[#allocation3 + $0x988] ss:$16 sps:$4 sm:$0xff]  }
 0x194   :  { %2865 = vmatpush2.bf16.msra.mxu1 %v6434_v37  ;;  %2825 = vmatprep.subr.bf16.mxu0 %v6439_v38  ;;  %v6513_v37 = vld [vmem:[#allocation3 + $0xb88] ss:$16 sps:$4 sm:$0xff]   ;;  %v6518_v38 = vld [vmem:[#allocation3 + $0x96c] ss:$16 sps:$4 sm:$0xff]  }
 0x195   :  { %2866 = vmatprep.subr.bf16.mxu1 %v6442_v39  ;;  %v6521_v39 = vld [vmem:[#allocation3 + $0xb6c] ss:$16 sps:$4 sm:$0xff]  }
 0x197   :  { %2826 = vmatpush2.bf16.msra.mxu0 %v6437_v40  ;;  %v6516_v40 = vld [vmem:[#allocation3 + $0x968] ss:$16 sps:$4 sm:$0xff]  }
 0x198   :  { %2867 = vmatpush2.bf16.msra.mxu1 %v6440_v42  ;;  %2877 = vmatprep.subr.bf16.mxu0 %v6446_v43  ;;  %v6519_v42 = vld [vmem:[#allocation3 + $0xb68] ss:$16 sps:$4 sm:$0xff]   ;;  %v6524_v43 = vld [vmem:[#allocation3 + $0x94c] ss:$16 sps:$4 sm:$0xff]  }
 0x199   :  { %2918 = vmatprep.subr.bf16.mxu1 %v6449_v44  ;;  %v6527_v44 = vld [vmem:[#allocation3 + $0xb4c] ss:$16 sps:$4 sm:$0xff]  }
 0x19a   :  { %v1412_v50 = vpop.f32.mrf.mxu0  ;;  %2828 = vmatmul.mubr.bf16.vlgmr.msra.gmra.mxu0 %v7051_v45 }
 0x19b   :  { %v7053_v51 = vpop.f32.mrf.mxu1  ;;  %2869 = vmatmul.mubr.bf16.vlgmr.msra.gmra.mxu1 %v7033_v30  ;;  %v7058_v52 = vadd.f32 %v1412_v50, %v7043_v15  ;;  %2878 = vmatpush1.bf16.msra.mxu0 %v6444_v46  ;;  %v6522_v46 = vld [vmem:[#allocation3 + $0x948] ss:$16 sps:$4 sm:$0xff]  }
 0x19c   :  { %2919 = vmatpush1.bf16.msra.mxu1 %v6447_v47  ;;  %v1414_v53 = vpop.f32.mrf.mxu0  ;;  %2879 = vmatprep.subr.bf16.mxu0 %v6452_v48  ;;  %v6525_v47 = vld [vmem:[#allocation3 + $0xb48] ss:$16 sps:$4 sm:$0xff]   ;;  %v6530_v48 = vld [vmem:[#allocation3 + $0x92c] ss:$16 sps:$4 sm:$0xff]  }
 0x19d   :  { %8268 = vst [vmem:[#allocation21_spill] sm:$0xff] %v7058_v52  ;;  %v7060_v54 = vpop.f32.mrf.mxu1  ;;  %2920 = vmatprep.subr.bf16.mxu1 %v6455_v49  ;;  %v7063_v58 = vadd.f32 %v1414_v53, %v7045_v41  ;;  %2909 = vmatprep.mubr.bf16.mxu0 %v7018_v8  ;;  %v6462_v41 = vld [vmem:[#allocation3 + $0x888] ss:$16 sps:$4 sm:$0xff]   ;;  %v6470_v8 = vld [vmem:[#allocation3 + $0x86c] ss:$16 sps:$4 sm:$0xff]   ;;  %v3085_v52 = vld [vmem:[#allocation6 + $0x260] sm:$0xff] }
 0x19e   :  { %2950 = vmatprep.mubr.bf16.mxu1 %v7039_v33  ;;  %v1416_v30 = vpop.f32.mrf.mxu0  ;;  %v6473_v33 = vld [vmem:[#allocation3 + $0xa6c] ss:$16 sps:$4 sm:$0xff]   ;;  %v6528_v50 = vld [vmem:[#allocation3 + $0x928] ss:$16 sps:$4 sm:$0xff]  }
 0x19f   :  { %8269 = vst [vmem:[#allocation22_spill] sm:$0xff] %v7063_v58  ;;  %v1457_v15 = vpop.f32.mrf.mxu1  ;;  %2880 = vmatpush1.bf16.msra.mxu0 %v6450_v24  ;;  %v6533_v49 = vld [vmem:[#allocation3 + $0xb2c] ss:$16 sps:$4 sm:$0xff]   ;;  %v6531_v24 = vld [vmem:[#allocation3 + $0xb28] ss:$16 sps:$4 sm:$0xff]   ;;  %v3081_v58 = vld [vmem:[#allocation6 + $0x240] sm:$0xff] }
 0x1a0   :  { %2921 = vmatpush1.bf16.msra.mxu1 %v6453_v27  ;;  %v1417_v61 = vpop.f32.mrf.mxu0  ;;  %2881 = vmatprep.subr.bf16.mxu0 %v6458_v56  ;;  %v6536_v27 = vld [vmem:[#allocation3 + $0x90c] ss:$16 sps:$4 sm:$0xff]   ;;  %v3065_v56 = vld [vmem:[#allocation6 + $0x1c0] sm:$0xff] }
 0x1a1   :  { %v1458_v62 = vpop.f32.mrf.mxu1  ;;  %2922 = vmatprep.subr.bf16.mxu1 %v6461_v57  ;;  %v6539_v53 = vld [vmem:[#allocation3 + $0xb0c] ss:$16 sps:$4 sm:$0xff]   ;;  %v3069_v57 = vld [vmem:[#allocation6 + $0x1e0] sm:$0xff] }
 0x1a2   :  { %v3066_v30 = vld [vmem:[#allocation6 + $0x1c8] sm:$0xff]  ;;  %v7067_v61 = vcombine.high %v3065_v56, %v3069_v57 }
 0x1a3   :  { %2882 = vmatpush1.bf16.msra.mxu0 %v6456_v59  ;;  %v3070_v15 = vld [vmem:[#allocation6 + $0x1e8] sm:$0xff] }
 0x1a4   :  { %2923 = vmatpush1.bf16.msra.mxu1 %v6459_v60  ;;  %2883 = vmatprep.subr.bf16.mxu0 %v6464_v63  ;;  %v6534_v59 = vld [vmem:[#allocation3 + $0x908] ss:$16 sps:$4 sm:$0xff]   ;;  %v7069_v62 = vcombine.high %v3066_v30, %v3070_v15  ;;  %v3057_v63 = vld [vmem:[#allocation6 + $0x180] sm:$0xff] }
 0x1a5   :  { %2924 = vmatprep.subr.bf16.mxu1 %v6467_v0  ;;  %v6537_v60 = vld [vmem:[#allocation3 + $0xb08] ss:$16 sps:$4 sm:$0xff]   ;;  %v3061_v0 = vld [vmem:[#allocation6 + $0x1a0] sm:$0xff] }
 0x1a7   :  { %2884 = vmatpush1.bf16.msra.mxu0 %v6462_v41  ;;  %v3058_v41 = vld [vmem:[#allocation6 + $0x188] sm:$0xff] }
 0x1a8   :  { %2925 = vmatpush1.bf16.msra.mxu1 %v6465_v1  ;;  %2885 = vmatprep.subr.bf16.mxu0 %v6470_v8  ;;  %v3062_v1 = vld [vmem:[#allocation6 + $0x1a8] sm:$0xff]  ;;  %v7071_v8 = vcombine.low %v3065_v56, %v3069_v57  ;;  %v3021_v56 = vld [vmem:[#allocation6 + $0x60] sm:$0xff] }
 0x1a9   :  { %2926 = vmatprep.subr.bf16.mxu1 %v6473_v33  ;;  %v7073_v33 = vcombine.low %v3066_v30, %v3070_v15  ;;  %v3018_v57 = vld [vmem:[#allocation6 + $0x48] sm:$0xff] }
 0x1aa   :  { %8270 = vst [vmem:[#allocation23_spill] sm:$0xff] %v7071_v8  ;;  %v3022_v30 = vld [vmem:[#allocation6 + $0x68] sm:$0xff] }
 0x1ab   :  { %2886 = vmatpush1.bf16.msra.mxu0 %v6468_v2  ;;  %8271 = vst [vmem:[#allocation24_spill] sm:$0xff] %v7073_v33  ;;  %v7077_v2 = vcombine.high %v3057_v63, %v3061_v0 }
 0x1ac   :  { %2927 = vmatpush1.bf16.msra.mxu1 %v6471_v3  ;;  %2887 = vmatprep.subr.bf16.mxu0 %v6476_v4  ;;  %v7079_v3 = vcombine.high %v3058_v41, %v3062_v1  ;;  %v3049_v4 = vld [vmem:[#allocation6 + $0x140] sm:$0xff] }
 0x1ad   :  { %2928 = vmatprep.subr.bf16.mxu1 %v6479_v5  ;;  %8272 = vst [vmem:[#allocation25_spill] sm:$0xff] %v7077_v2  ;;  %v3053_v5 = vld [vmem:[#allocation6 + $0x160] sm:$0xff] }
 0x1ae   :  { %8273 = vst [vmem:[#allocation26_spill] sm:$0xff] %v7079_v3 }
 0x1af   :  { %2888 = vmatpush1.bf16.msra.mxu0 %v6474_v6  ;;  %v3050_v6 = vld [vmem:[#allocation6 + $0x148] sm:$0xff] }
 0x1b0   :  { %2929 = vmatpush1.bf16.msra.mxu1 %v6477_v7  ;;  %2889 = vmatprep.subr.bf16.mxu0 %v6482_v10  ;;  %v3054_v7 = vld [vmem:[#allocation6 + $0x168] sm:$0xff] }
 0x1b1   :  { %2930 = vmatprep.subr.bf16.mxu1 %v6485_v11 }
 0x1b3   :  { %2890 = vmatpush1.bf16.msra.mxu0 %v6480_v12 }
 0x1b4   :  { %2931 = vmatpush1.bf16.msra.mxu1 %v6483_v13  ;;  %2891 = vmatprep.subr.bf16.mxu0 %v6488_v14  ;;  %v7086_v13 = vcombine.low %v3057_v63, %v3061_v0  ;;  %v7088_v14 = vcombine.low %v3058_v41, %v3062_v1  ;;  %v7149_v63 = vcombine.high %v3018_v57, %v3022_v30  ;;  %v3009_v0 = vld [vmem:[#allocation6] sm:$0xff]  ;;  %v3010_v1 = vld [vmem:[#allocation6 + $0x8] sm:$0xff] }
 0x1b5   :  { %2932 = vmatprep.subr.bf16.mxu1 %v6491_v18  ;;  %v3013_v41 = vld [vmem:[#allocation6 + $0x20] sm:$0xff] }
 0x1b6   :  { %8274 = vst [vmem:[#allocation27_spill] sm:$0xff] %v7086_v13  ;;  %8275 = vst [vmem:[#allocation28_spill] sm:$0xff] %v7088_v14 }
 0x1b7   :  { %2892 = vmatpush1.bf16.msra.mxu0 %v6486_v19  ;;  %8295 = vst [vmem:[#allocation48_spill] sm:$0xff] %v7149_v63 }
 0x1b8   :  { %2933 = vmatpush1.bf16.msra.mxu1 %v6489_v20  ;;  %2893 = vmatprep.subr.bf16.mxu0 %v6494_v21  ;;  %v7092_v20 = vcombine.high %v3049_v4, %v3053_v5 }
 0x1b9   :  { %2934 = vmatprep.subr.bf16.mxu1 %v6497_v22  ;;  %v3045_v22 = vld [vmem:[#allocation6 + $0x120] sm:$0xff] }
 0x1ba   :  { %8276 = vst [vmem:[#allocation29_spill] sm:$0xff] %v7092_v20 }
 0x1bb   :  { %2894 = vmatpush2.bf16.msra.mxu0 %v6492_v23  ;;  %v3042_v23 = vld [vmem:[#allocation6 + $0x108] sm:$0xff] }
 0x1bc   :  { %2935 = vmatpush2.bf16.msra.mxu1 %v6495_v25  ;;  %2895 = vmatprep.subr.bf16.mxu0 %v6500_v26  ;;  %v3046_v25 = vld [vmem:[#allocation6 + $0x128] sm:$0xff]  ;;  %v8036_v26 = vmov 0  }
 0x1bd   :  { %2936 = vmatprep.subr.bf16.mxu1 %v6503_v28 }
 0x1bf   :  { %2896 = vmatpush2.bf16.msra.mxu0 %v6498_v29 }
 0x1c0   :  { %2937 = vmatpush2.bf16.msra.mxu1 %v6501_v32  ;;  %2897 = vmatprep.subr.bf16.mxu0 %v6506_v55  ;;  %v7105_v55 = vcombine.low %v3049_v4, %v3053_v5  ;;  %v3014_v4 = vld [vmem:[#allocation6 + $0x28] sm:$0xff] }
 0x1c1   :  { %2938 = vmatprep.subr.bf16.mxu1 %v6509_v9  ;;  %v7107_v9 = vcombine.low %v3050_v6, %v3054_v7 }
 0x1c2   :  { %8280 = vst [vmem:[#allocation33_spill] sm:$0xff] %v7105_v55 }
 0x1c3   :  { %2898 = vmatpush2.bf16.msra.mxu0 %v6504_v16  ;;  %8281 = vst [vmem:[#allocation34_spill] sm:$0xff] %v7107_v9 }
 0x1c4   :  { %2939 = vmatpush2.bf16.msra.mxu1 %v6507_v34  ;;  %2899 = vmatprep.subr.bf16.mxu0 %v6512_v35  ;;  %v7113_v35 = vcombine.high %v3042_v23, %v3046_v25 }
 0x1c5   :  { %2940 = vmatprep.subr.bf16.mxu1 %v6515_v17  ;;  %v3033_v17 = vld [vmem:[#allocation6 + $0xc0] sm:$0xff] }
 0x1c6   :  { %8283 = vst [vmem:[#allocation36_spill] sm:$0xff] %v7113_v35 }
 0x1c7   :  { %2900 = vmatpush2.bf16.msra.mxu0 %v6510_v36  ;;  %v3037_v36 = vld [vmem:[#allocation6 + $0xe0] sm:$0xff] }
 0x1c8   :  { %2941 = vmatpush2.bf16.msra.mxu1 %v6513_v37  ;;  %2901 = vmatprep.subr.bf16.mxu0 %v6518_v38  ;;  %v3034_v37 = vld [vmem:[#allocation6 + $0xc8] sm:$0xff] }
 0x1c9   :  { %2942 = vmatprep.subr.bf16.mxu1 %v6521_v39  ;;  %v3038_v38 = vld [vmem:[#allocation6 + $0xe8] sm:$0xff] }
 0x1cb   :  { %2902 = vmatpush2.bf16.msra.mxu0 %v6516_v40  ;;  %v7119_v40 = vcombine.low %v3042_v23, %v3046_v25  ;;  %v3121_v25 = vld [vmem:[#allocation6 + $0x380] sm:$0xff] }
 0x1cc   :  { %2943 = vmatpush2.bf16.msra.mxu1 %v6519_v42  ;;  %2903 = vmatprep.subr.bf16.mxu0 %v6524_v43  ;;  %v7123_v42 = vcombine.high %v3033_v17, %v3037_v36  ;;  %v7125_v43 = vcombine.high %v3034_v37, %v3038_v38 }
 0x1cd   :  { %2944 = vmatprep.subr.bf16.mxu1 %v6527_v44  ;;  %8285 = vst [vmem:[#allocation38_spill] sm:$0xff] %v7119_v40  ;;  %v3025_v44 = vld [vmem:[#allocation6 + $0x80] sm:$0xff] }
 0x1ce   :  { %8286 = vst [vmem:[#allocation39_spill] sm:$0xff] %v7123_v42  ;;  %8287 = vst [vmem:[#allocation40_spill] sm:$0xff] %v7125_v43 }
 0x1cf   :  { %2904 = vmatpush2.bf16.msra.mxu0 %v6522_v46  ;;  %v3029_v46 = vld [vmem:[#allocation6 + $0xa0] sm:$0xff] }
 0x1d0   :  { %2945 = vmatpush2.bf16.msra.mxu1 %v6525_v47  ;;  %2905 = vmatprep.subr.bf16.mxu0 %v6530_v48  ;;  %v3026_v47 = vld [vmem:[#allocation6 + $0x88] sm:$0xff]  ;;  %v7141_v15 = vcombine.low %v3025_v44, %v3029_v46 }
 0x1d1   :  { %2946 = vmatprep.subr.bf16.mxu1 %v6533_v49  ;;  %v3030_v48 = vld [vmem:[#allocation6 + $0xa8] sm:$0xff]  ;;  %v7129_v49 = vcombine.low %v3033_v17, %v3037_v36 }
 0x1d2   :  { %8292 = vst [vmem:[#allocation45_spill] sm:$0xff] %v7141_v15 }
 0x1d3   :  { %2906 = vmatpush2.bf16.msra.mxu0 %v6528_v50  ;;  %8288 = vst [vmem:[#allocation41_spill] sm:$0xff] %v7129_v49  ;;  %v7131_v50 = vcombine.low %v3034_v37, %v3038_v38  ;;  %v3113_v38 = vld [vmem:[#allocation6 + $0x340] sm:$0xff] }
 0x1d4   :  { %2947 = vmatpush2.bf16.msra.mxu1 %v6531_v24  ;;  %2907 = vmatprep.subr.bf16.mxu0 %v6536_v27  ;;  %v7135_v24 = vcombine.high %v3025_v44, %v3029_v46  ;;  %v7137_v27 = vcombine.high %v3026_v47, %v3030_v48  ;;  %v3117_v44 = vld [vmem:[#allocation6 + $0x360] sm:$0xff]  ;;  %v3114_v46 = vld [vmem:[#allocation6 + $0x348] sm:$0xff] }
 0x1d5   :  { %2948 = vmatprep.subr.bf16.mxu1 %v6539_v53  ;;  %8289 = vst [vmem:[#allocation42_spill] sm:$0xff] %v7131_v50  ;;  %v3017_v53 = vld [vmem:[#allocation6 + $0x40] sm:$0xff] }
 0x1d6   :  { %8290 = vst [vmem:[#allocation43_spill] sm:$0xff] %v7135_v24  ;;  %8291 = vst [vmem:[#allocation44_spill] sm:$0xff] %v7137_v27  ;;  %v7153_v5 = vcombine.low %v3017_v53, %v3021_v56 }
 0x1d7   :  { %2908 = vmatpush2.bf16.msra.mxu0 %v6534_v59  ;;  %v7143_v59 = vcombine.low %v3026_v47, %v3030_v48  ;;  %v3118_v47 = vld [vmem:[#allocation6 + $0x368] sm:$0xff] }
 0x1d8   :  { %2949 = vmatpush2.bf16.msra.mxu1 %v6537_v60  ;;  %3777 = vmatprep.subr.bf16.mxu0 %v7067_v61  ;;  %v7147_v60 = vcombine.high %v3017_v53, %v3021_v56  ;;  %8296 = vst [vmem:[#allocation49_spill] sm:$0xff] %v7153_v5  ;;  %v7195_v56 = vcombine.high %v3113_v38, %v3117_v44 }
 0x1d9   :  { %3818 = vmatprep.subr.bf16.mxu1 %v7069_v62  ;;  %8293 = vst [vmem:[#allocation46_spill] sm:$0xff] %v7143_v59 }
 0x1da   :  { %v1494_v10 = vpop.f32.mrf.mxu0  ;;  %2910 = vmatmul.mubr.bf16.vlgmr.msra.gmra.mxu0 %v7037_v31  ;;  %v7094_v31 = vcombine.high %v3050_v6, %v3054_v7  ;;  %8294 = vst [vmem:[#allocation47_spill] sm:$0xff] %v7147_v60  ;;  %v7155_v6 = vcombine.low %v3018_v57, %v3022_v30  ;;  %v7159_v7 = vcombine.high %v3009_v0, %v3013_v41  ;;  %8310 = vst [vmem:[#allocation63_spill] sm:$0xff] %v7195_v56  ;;  %v3105_v30 = vld [vmem:[#allocation6 + $0x300] sm:$0xff] }
 0x1db   :  { %v1535_v11 = vpop.f32.mrf.mxu1  ;;  %2951 = vmatmul.mubr.bf16.vlgmr.msra.gmra.mxu1 %v7051_v45  ;;  %v1495_v12 = vadd.f32 %v1494_v10, %v7053_v51  ;;  %3778 = vmatpush1.bf16.msra.mxu0 %v7071_v8  ;;  %v3041_v45 = vld [vmem:[#allocation6 + $0x100] sm:$0xff]  ;;  %v7161_v10 = vcombine.high %v3010_v1, %v3014_v4  ;;  %v7197_v57 = vcombine.high %v3114_v46, %v3118_v47 }
 0x1dc   :  { %3819 = vmatpush1.bf16.msra.mxu1 %v7073_v33  ;;  %v1496_v18 = vpop.f32.mrf.mxu0  ;;  %3779 = vmatprep.subr.bf16.mxu0 %v7077_v2  ;;  %8277 = vst [vmem:[#allocation30_spill] sm:$0xff] %v7094_v31  ;;  %v7111_v34 = vcombine.high %v3041_v45, %v3045_v22  ;;  %v7117_v39 = vcombine.low %v3041_v45, %v3045_v22  ;;  %8297 = vst [vmem:[#allocation50_spill] sm:$0xff] %v7155_v6 }
 0x1dd   :  { %v1537_v19 = vpop.f32.mrf.mxu1  ;;  %3820 = vmatprep.subr.bf16.mxu1 %v7079_v3  ;;  %v7096_v51 = vadd.f32 %v1535_v11, %v1495_v12  ;;  %v1497_v21 = vadd.f32 %v1496_v18, %v7060_v54  ;;  %3809 = vmatprep.mubr.bf16.mxu0 %v8036_v26  ;;  %8298 = vst [vmem:[#allocation51_spill] sm:$0xff] %v7159_v7  ;;  %8299 = vst [vmem:[#allocation52_spill] sm:$0xff] %v7161_v10  ;;  %v3129_v11 = vld [vmem:[#allocation6 + $0x3c0] sm:$0xff]  ;;  %v3130_v18 = vld [vmem:[#allocation6 + $0x3c8] sm:$0xff] }
 0x1de   :  { %3850 = vmatprep.mubr.bf16.mxu1 %v8036_v26  ;;  %v1498_v28 = vpop.f32.mrf.mxu0  ;;  %8282 = vst [vmem:[#allocation35_spill] sm:$0xff] %v7111_v34  ;;  %8284 = vst [vmem:[#allocation37_spill] sm:$0xff] %v7117_v39  ;;  %v3133_v12 = vld [vmem:[#allocation6 + $0x3e0] sm:$0xff]  ;;  %v7165_v45 = vcombine.low %v3009_v0, %v3013_v41  ;;  %v3106_v41 = vld [vmem:[#allocation6 + $0x308] sm:$0xff] }
 0x1df   :  { %8278 = vst [vmem:[#allocation31_spill] sm:$0xff] %v7096_v51  ;;  %v1539_v29 = vpop.f32.mrf.mxu1  ;;  %v7101_v32 = vadd.f32 %v1537_v19, %v1497_v21  ;;  %3780 = vmatpush1.bf16.msra.mxu0 %v7086_v13  ;;  %v3134_v19 = vld [vmem:[#allocation6 + $0x3e8] sm:$0xff]  ;;  %v7167_v21 = vcombine.low %v3010_v1, %v3014_v4  ;;  %v7171_v22 = vcombine.high %v3129_v11, %v3133_v12  ;;  %v3125_v28 = vld [vmem:[#allocation6 + $0x3a0] sm:$0xff]  ;;  %8311 = vst [vmem:[#allocation64_spill] sm:$0xff] %v7197_v57 }
 0x1e0   :  { %3821 = vmatpush1.bf16.msra.mxu1 %v7088_v14  ;;  %v1499_v54 = vpop.f32.mrf.mxu0  ;;  %3781 = vmatprep.subr.bf16.mxu0 %v7092_v20  ;;  %8300 = vst [vmem:[#allocation53_spill] sm:$0xff] %v7165_v45  ;;  %v7173_v23 = vcombine.high %v3130_v18, %v3134_v19  ;;  %v3122_v29 = vld [vmem:[#allocation6 + $0x388] sm:$0xff]  ;;  %v7179_v17 = vcombine.low %v3130_v18, %v3134_v19  ;;  %v3109_v0 = vld [vmem:[#allocation6 + $0x320] sm:$0xff] }
 0x1e1   :  { %8279 = vst [vmem:[#allocation32_spill] sm:$0xff] %v7101_v32  ;;  %v1540_v16 = vpop.f32.mrf.mxu1  ;;  %3822 = vmatprep.subr.bf16.mxu1 %v7094_v31  ;;  %8301 = vst [vmem:[#allocation54_spill] sm:$0xff] %v7167_v21  ;;  %v3126_v54 = vld [vmem:[#allocation6 + $0x3a8] sm:$0xff]  ;;  %v7183_v36 = vcombine.high %v3121_v25, %v3125_v28  ;;  %v7189_v48 = vcombine.low %v3121_v25, %v3125_v28  ;;  %v7201_v4 = vcombine.low %v3113_v38, %v3117_v44  ;;  %v3097_v19 = vld [vmem:[#allocation6 + $0x2c0] sm:$0xff] }
 0x1e2   :  { %8302 = vst [vmem:[#allocation55_spill] sm:$0xff] %v7171_v22  ;;  %8303 = vst [vmem:[#allocation56_spill] sm:$0xff] %v7173_v23  ;;  %v7177_v16 = vcombine.low %v3129_v11, %v3133_v12  ;;  %v7185_v37 = vcombine.high %v3122_v29, %v3126_v54  ;;  %v7191_v53 = vcombine.low %v3122_v29, %v3126_v54  ;;  %v3110_v1 = vld [vmem:[#allocation6 + $0x328] sm:$0xff]  ;;  %v3101_v25 = vld [vmem:[#allocation6 + $0x2e0] sm:$0xff] }
 0x1e3   :  { %3782 = vmatpush1.bf16.msra.mxu0 %v7105_v55  ;;  %8305 = vst [vmem:[#allocation58_spill] sm:$0xff] %v7179_v17  ;;  %8306 = vst [vmem:[#allocation59_spill] sm:$0xff] %v7183_v36  ;;  %v7203_v11 = vcombine.low %v3114_v46, %v3118_v47  ;;  %v7207_v12 = vcombine.high %v3105_v30, %v3109_v0  ;;  %v7209_v18 = vcombine.high %v3106_v41, %v3110_v1  ;;  %v3098_v28 = vld [vmem:[#allocation6 + $0x2c8] sm:$0xff]  ;;  %v3089_v47 = vld [vmem:[#allocation6 + $0x280] sm:$0xff] }
 0x1e4   :  { %3823 = vmatpush1.bf16.msra.mxu1 %v7107_v9  ;;  %3783 = vmatprep.subr.bf16.mxu0 %v7111_v34  ;;  %8304 = vst [vmem:[#allocation57_spill] sm:$0xff] %v7177_v16  ;;  %8307 = vst [vmem:[#allocation60_spill] sm:$0xff] %v7185_v37  ;;  %v3102_v29 = vld [vmem:[#allocation6 + $0x2e8] sm:$0xff]  ;;  %v7213_v54 = vcombine.low %v3105_v30, %v3109_v0  ;;  %v7215_v38 = vcombine.low %v3106_v41, %v3110_v1  ;;  %v3093_v26 = vld [vmem:[#allocation6 + $0x2a0] sm:$0xff] }
 0x1e5   :  { %3824 = vmatprep.subr.bf16.mxu1 %v7113_v35  ;;  %8308 = vst [vmem:[#allocation61_spill] sm:$0xff] %v7189_v48  ;;  %8309 = vst [vmem:[#allocation62_spill] sm:$0xff] %v7191_v53  ;;  %v7219_v44 = vcombine.high %v3097_v19, %v3101_v25  ;;  %v7221_v46 = vcombine.high %v3098_v28, %v3102_v29  ;;  %v3090_v32 = vld [vmem:[#allocation6 + $0x288] sm:$0xff]  ;;  %v7225_v30 = vcombine.low %v3097_v19, %v3101_v25 }
 0x1e6   :  { %8312 = vst [vmem:[#allocation65_spill] sm:$0xff] %v7201_v4  ;;  %8313 = vst [vmem:[#allocation66_spill] sm:$0xff] %v7203_v11  ;;  %v3094_v51 = vld [vmem:[#allocation6 + $0x2a8] sm:$0xff]  ;;  %v7227_v0 = vcombine.low %v3098_v28, %v3102_v29  ;;  %v7231_v41 = vcombine.high %v3089_v47, %v3093_v26  ;;  %v7237_v19 = vcombine.low %v3089_v47, %v3093_v26 }
 0x1e7   :  { %3784 = vmatpush1.bf16.msra.mxu0 %v7117_v39  ;;  %8314 = vst [vmem:[#allocation67_spill] sm:$0xff] %v7207_v12  ;;  %8315 = vst [vmem:[#allocation68_spill] sm:$0xff] %v7209_v18  ;;  %v7233_v1 = vcombine.high %v3090_v32, %v3094_v51  ;;  %v7239_v25 = vcombine.low %v3090_v32, %v3094_v51  ;;  %v7243_v28 = vcombine.high %v3081_v58, %v3085_v52 }
 0x1e8   :  { %3825 = vmatpush1.bf16.msra.mxu1 %v7119_v40  ;;  %3785 = vmatprep.subr.bf16.mxu0 %v7123_v42  ;;  %8316 = vst [vmem:[#allocation69_spill] sm:$0xff] %v7213_v54  ;;  %8317 = vst [vmem:[#allocation70_spill] sm:$0xff] %v7215_v38  ;;  %v7249_v26 = vcombine.low %v3081_v58, %v3085_v52 }
 0x1e9   :  { %3826 = vmatprep.subr.bf16.mxu1 %v7125_v43  ;;  %8318 = vst [vmem:[#allocation71_spill] sm:$0xff] %v7219_v44  ;;  %8319 = vst [vmem:[#allocation72_spill] sm:$0xff] %v7221_v46 }
 0x1ea   :  { %8320 = vst [vmem:[#allocation73_spill] sm:$0xff] %v7225_v30  ;;  %8321 = vst [vmem:[#allocation74_spill] sm:$0xff] %v7227_v0 }
 0x1eb   :  { %3786 = vmatpush1.bf16.msra.mxu0 %v7129_v49  ;;  %8322 = vst [vmem:[#allocation75_spill] sm:$0xff] %v7231_v41  ;;  %8323 = vst [vmem:[#allocation76_spill] sm:$0xff] %v7233_v1 }
 0x1ec   :  { %3827 = vmatpush1.bf16.msra.mxu1 %v7131_v50  ;;  %3787 = vmatprep.subr.bf16.mxu0 %v7135_v24  ;;  %8324 = vst [vmem:[#allocation77_spill] sm:$0xff] %v7237_v19  ;;  %8325 = vst [vmem:[#allocation78_spill] sm:$0xff] %v7239_v25 }
 0x1ed   :  { %3828 = vmatprep.subr.bf16.mxu1 %v7137_v27  ;;  %8326 = vst [vmem:[#allocation79_spill] sm:$0xff] %v7243_v28  ;;  %8328 = vst [vmem:[#allocation81_spill] sm:$0xff] %v7249_v26 }
 0x1ef   :  { %3788 = vmatpush1.bf16.msra.mxu0 %v7141_v15 }
 0x1f0   :  { %3829 = vmatpush1.bf16.msra.mxu1 %v7143_v59  ;;  %3789 = vmatprep.subr.bf16.mxu0 %v7147_v60 }
 0x1f1   :  { %3830 = vmatprep.subr.bf16.mxu1 %v7149_v63 }
 0x1f3   :  { %3790 = vmatpush1.bf16.msra.mxu0 %v7153_v5 }
 0x1f4   :  { %3831 = vmatpush1.bf16.msra.mxu1 %v7155_v6  ;;  %3791 = vmatprep.subr.bf16.mxu0 %v7159_v7 }
 0x1f5   :  { %3832 = vmatprep.subr.bf16.mxu1 %v7161_v10 }
 0x1f7   :  { %3792 = vmatpush1.bf16.msra.mxu0 %v7165_v45 }
 0x1f8   :  { %3833 = vmatpush1.bf16.msra.mxu1 %v7167_v21  ;;  %3793 = vmatprep.subr.bf16.mxu0 %v7171_v22 }
 0x1f9   :  { %3834 = vmatprep.subr.bf16.mxu1 %v7173_v23 }
 0x1fb   :  { %3794 = vmatpush2.bf16.msra.mxu0 %v7177_v16 }
 0x1fc   :  { %3835 = vmatpush2.bf16.msra.mxu1 %v7179_v17  ;;  %3795 = vmatprep.subr.bf16.mxu0 %v7183_v36 }
 0x1fd   :  { %3836 = vmatprep.subr.bf16.mxu1 %v7185_v37 }
 0x1ff   :  { %3796 = vmatpush2.bf16.msra.mxu0 %v7189_v48 }
 0x200   :  { %3837 = vmatpush2.bf16.msra.mxu1 %v7191_v53  ;;  %3797 = vmatprep.subr.bf16.mxu0 %v7195_v56  ;;  %v3036_v56 = vld [vmem:[#allocation6 + $0xd8] sm:$0xff] }
 0x201   :  { %3838 = vmatprep.subr.bf16.mxu1 %v7197_v57  ;;  %v3044_v57 = vld [vmem:[#allocation6 + $0x118] sm:$0xff] }
 0x203   :  { %3798 = vmatpush2.bf16.msra.mxu0 %v7201_v4  ;;  %v8340_v4 = vmov 0  }
 0x204   :  { %3839 = vmatpush2.bf16.msra.mxu1 %v7203_v11  ;;  %3799 = vmatprep.subr.bf16.mxu0 %v7207_v12  ;;  %v3086_v12 = vld [vmem:[#allocation6 + $0x268] sm:$0xff] }
 0x205   :  { %3840 = vmatprep.subr.bf16.mxu1 %v7209_v18  ;;  %v3082_v18 = vld [vmem:[#allocation6 + $0x248] sm:$0xff] }
 0x206   :  { %v7245_v29 = vcombine.high %v3082_v18, %v3086_v12  ;;  %v7251_v51 = vcombine.low %v3082_v18, %v3086_v12 }
 0x207   :  { %3800 = vmatpush2.bf16.msra.mxu0 %v7213_v54  ;;  %v3078_v54 = vld [vmem:[#allocation6 + $0x228] sm:$0xff] }
 0x208   :  { %3841 = vmatpush2.bf16.msra.mxu1 %v7215_v38  ;;  %3801 = vmatprep.subr.bf16.mxu0 %v7219_v44  ;;  %8327 = vst [vmem:[#allocation80_spill] sm:$0xff] %v7245_v29  ;;  %v3077_v44 = vld [vmem:[#allocation6 + $0x220] sm:$0xff]  ;;  %v3074_v38 = vld [vmem:[#allocation6 + $0x208] sm:$0xff]  ;;  %8329 = vst [vmem:[#allocation82_spill] sm:$0xff] %v7251_v51 }
 0x209   :  { %3842 = vmatprep.subr.bf16.mxu1 %v7221_v46  ;;  %v3073_v46 = vld [vmem:[#allocation6 + $0x200] sm:$0xff]  ;;  %v7257_v47 = vcombine.high %v3074_v38, %v3078_v54  ;;  %v7263_v58 = vcombine.low %v3074_v38, %v3078_v54 }
 0x20a   :  { %v7255_v32 = vcombine.high %v3073_v46, %v3077_v44  ;;  %v7261_v52 = vcombine.low %v3073_v46, %v3077_v44 }
 0x20b   :  { %3802 = vmatpush2.bf16.msra.mxu0 %v7225_v30  ;;  %8331 = vst [vmem:[#allocation84_spill] sm:$0xff] %v7257_v47  ;;  %v3072_v30 = vld [vmem:[#allocation6 + $0x1f8] sm:$0xff]  ;;  %8333 = vst [vmem:[#allocation86_spill] sm:$0xff] %v7263_v58 }
 0x20c   :  { %3843 = vmatpush2.bf16.msra.mxu1 %v7227_v0  ;;  %3803 = vmatprep.subr.bf16.mxu0 %v7231_v41  ;;  %8330 = vst [vmem:[#allocation83_spill] sm:$0xff] %v7255_v32  ;;  %v3071_v41 = vld [vmem:[#allocation6 + $0x1f0] sm:$0xff]  ;;  %v3068_v0 = vld [vmem:[#allocation6 + $0x1d8] sm:$0xff]  ;;  %8332 = vst [vmem:[#allocation85_spill] sm:$0xff] %v7261_v52 }
 0x20d   :  { %3844 = vmatprep.subr.bf16.mxu1 %v7233_v1  ;;  %v3067_v1 = vld [vmem:[#allocation6 + $0x1d0] sm:$0xff]  ;;  %v7269_v18 = vcombine.high %v3068_v0, %v3072_v30  ;;  %v7275_v54 = vcombine.low %v3068_v0, %v3072_v30 }
 0x20e   :  { %v7267_v12 = vcombine.high %v3067_v1, %v3071_v41  ;;  %v7273_v44 = vcombine.low %v3067_v1, %v3071_v41 }
 0x20f   :  { %3804 = vmatpush2.bf16.msra.mxu0 %v7237_v19  ;;  %8335 = vst [vmem:[#allocation88_spill] sm:$0xff] %v7269_v18  ;;  %v3064_v19 = vld [vmem:[#allocation6 + $0x1b8] sm:$0xff]  ;;  %8337 = vst [vmem:[#allocation90_spill] sm:$0xff] %v7275_v54 }
 0x210   :  { %3845 = vmatpush2.bf16.msra.mxu1 %v7239_v25  ;;  %3805 = vmatprep.subr.bf16.mxu0 %v7243_v28  ;;  %8334 = vst [vmem:[#allocation87_spill] sm:$0xff] %v7267_v12  ;;  %v3063_v28 = vld [vmem:[#allocation6 + $0x1b0] sm:$0xff]  ;;  %v3060_v25 = vld [vmem:[#allocation6 + $0x198] sm:$0xff]  ;;  %8336 = vst [vmem:[#allocation89_spill] sm:$0xff] %v7273_v44 }
 0x211   :  { %3846 = vmatprep.subr.bf16.mxu1 %v7245_v29  ;;  %v3059_v29 = vld [vmem:[#allocation6 + $0x190] sm:$0xff]  ;;  %v7281_v46 = vcombine.high %v3060_v25, %v3064_v19  ;;  %v7291_v41 = vcombine.low %v3060_v25, %v3064_v19 }
 0x212   :  { %v7279_v38 = vcombine.high %v3059_v29, %v3063_v28  ;;  %v7289_v0 = vcombine.low %v3059_v29, %v3063_v28 }
 0x213   :  { %3806 = vmatpush2.bf16.msra.mxu0 %v7249_v26  ;;  %8339 = vst [vmem:[#allocation92_spill] sm:$0xff] %v7281_v46  ;;  %v3056_v26 = vld [vmem:[#allocation6 + $0x178] sm:$0xff] }
 0x214   :  { %3847 = vmatpush2.bf16.msra.mxu1 %v7251_v51  ;;  %3807 = vmatprep.subr.bf16.mxu0 %v7255_v32  ;;  %8338 = vst [vmem:[#allocation91_spill] sm:$0xff] %v7279_v38  ;;  %v3055_v32 = vld [vmem:[#allocation6 + $0x170] sm:$0xff]  ;;  %v3052_v51 = vld [vmem:[#allocation6 + $0x158] sm:$0xff]  ;;  %8341 = vst [vmem:[#allocation93_spill] sm:$0xff] %v7289_v0 }
 0x215   :  { %3848 = vmatprep.subr.bf16.mxu1 %v7257_v47  ;;  %v3051_v47 = vld [vmem:[#allocation6 + $0x150] sm:$0xff]  ;;  %v7307_v29 = vcombine.low %v3052_v51, %v3056_v26 }
 0x216   :  { %v7305_v28 = vcombine.low %v3051_v47, %v3055_v32 }
 0x217   :  { %3808 = vmatpush2.bf16.msra.mxu0 %v7261_v52  ;;  %8345 = vst [vmem:[#allocation97_spill] sm:$0xff] %v7307_v29 }
 0x218   :  { %3849 = vmatpush2.bf16.msra.mxu1 %v7263_v58  ;;  %3859 = vmatprep.subr.bf16.mxu0 %v7267_v12  ;;  %v7295_v12 = vcombine.high %v3051_v47, %v3055_v32  ;;  %v7297_v58 = vcombine.high %v3052_v51, %v3056_v26  ;;  %8344 = vst [vmem:[#allocation96_spill] sm:$0xff] %v7305_v28 }
 0x219   :  { %3900 = vmatprep.subr.bf16.mxu1 %v7269_v18 }
 0x21a   :  { %v2747_v11 = vpop.f32.mrf.mxu0  ;;  %3810 = vmatmul.mubr.bf16.vlgmr.msra.gmra.mxu0 %v8340_v4  ;;  %8342 = vst [vmem:[#allocation94_spill] sm:$0xff] %v7295_v12  ;;  %8343 = vst [vmem:[#allocation95_spill] sm:$0xff] %v7297_v58 }
 0x21b   :  { %v2788_v52 = vpop.f32.mrf.mxu1  ;;  %3851 = vmatmul.mubr.bf16.vlgmr.msra.gmra.mxu1 %v8340_v4  ;;  %3860 = vmatpush1.bf16.msra.mxu0 %v7273_v44  ;;  %v3047_v44 = vld [vmem:[#allocation6 + $0x130] sm:$0xff] }
 0x21c   :  { %v7285_v30 = vadd.f32 %v2788_v52, %v2747_v11  ;;  %3901 = vmatpush1.bf16.msra.mxu1 %v7275_v54  ;;  %v2749_v1 = vpop.f32.mrf.mxu0  ;;  %3861 = vmatprep.subr.bf16.mxu0 %v7279_v38  ;;  %v3043_v11 = vld [vmem:[#allocation6 + $0x110] sm:$0xff]  ;;  %v3048_v54 = vld [vmem:[#allocation6 + $0x138] sm:$0xff] }
 0x21d   :  { %v2790_v18 = vpop.f32.mrf.mxu1  ;;  %3902 = vmatprep.subr.bf16.mxu1 %v7281_v46  ;;  %3891 = vmatprep.mubr.bf16.mxu0 %v8340_v4  ;;  %v7313_v38 = vcombine.high %v3044_v57, %v3048_v54  ;;  %v7317_v26 = vcombine.low %v3043_v11, %v3047_v44  ;;  %v7319_v51 = vcombine.low %v3044_v57, %v3048_v54 }
 0x21e   :  { %v7299_v52 = vadd.f32 %v2790_v18, %v2749_v1  ;;  %3932 = vmatprep.mubr.bf16.mxu1 %v8340_v4  ;;  %v2751_v19 = vpop.f32.mrf.mxu0  ;;  %v7311_v1 = vcombine.high %v3043_v11, %v3047_v44 }
 0x21f   :  { %v2792_v25 = vpop.f32.mrf.mxu1  ;;  %3862 = vmatpush1.bf16.msra.mxu0 %v7289_v0  ;;  %8347 = vst [vmem:[#allocation99_spill] sm:$0xff] %v7313_v38  ;;  %v3035_v19 = vld [vmem:[#allocation6 + $0xd0] sm:$0xff]  ;;  %v3040_v0 = vld [vmem:[#allocation6 + $0xf8] sm:$0xff]  ;;  %8348 = vst [vmem:[#allocation100_spill] sm:$0xff] %v7317_v26 }
 0x220   :  { %3903 = vmatpush1.bf16.msra.mxu1 %v7291_v41  ;;  %v2752_v46 = vpop.f32.mrf.mxu0  ;;  %3863 = vmatprep.subr.bf16.mxu0 %v7295_v12  ;;  %8346 = vst [vmem:[#allocation98_spill] sm:$0xff] %v7311_v1  ;;  %v3039_v25 = vld [vmem:[#allocation6 + $0xf0] sm:$0xff]  ;;  %8349 = vst [vmem:[#allocation101_spill] sm:$0xff] %v7319_v51  ;;  %v7325_v47 = vcombine.high %v3036_v56, %v3040_v0  ;;  %v3032_v12 = vld [vmem:[#allocation6 + $0xb8] sm:$0xff]  ;;  %v7331_v57 = vcombine.low %v3036_v56, %v3040_v0 }
 0x221   :  { %v2793_v18 = vpop.f32.mrf.mxu1  ;;  %3904 = vmatprep.subr.bf16.mxu1 %v7297_v58  ;;  %v7323_v32 = vcombine.high %v3035_v19, %v3039_v25  ;;  %v3027_v46 = vld [vmem:[#allocation6 + $0x90] sm:$0xff]  ;;  %v3028_v58 = vld [vmem:[#allocation6 + $0x98] sm:$0xff]  ;;  %v7329_v44 = vcombine.low %v3035_v19, %v3039_v25 }
 0x222   :  { %8351 = vst [vmem:[#allocation103_spill] sm:$0xff] %v7325_v47  ;;  %v3031_v18 = vld [vmem:[#allocation6 + $0xb0] sm:$0xff]  ;;  %8353 = vst [vmem:[#allocation105_spill] sm:$0xff] %v7331_v57  ;;  %v7337_v11 = vcombine.high %v3028_v58, %v3032_v12  ;;  %v7343_v56 = vcombine.low %v3028_v58, %v3032_v12 }
 0x223   :  { %3864 = vmatpush1.bf16.msra.mxu0 %v7305_v28  ;;  %8350 = vst [vmem:[#allocation102_spill] sm:$0xff] %v7323_v32  ;;  %8352 = vst [vmem:[#allocation104_spill] sm:$0xff] %v7329_v44  ;;  %v7335_v54 = vcombine.high %v3027_v46, %v3031_v18  ;;  %v3024_v28 = vld [vmem:[#allocation6 + $0x78] sm:$0xff]  ;;  %v7341_v19 = vcombine.low %v3027_v46, %v3031_v18 }
 0x224   :  { %3905 = vmatpush1.bf16.msra.mxu1 %v7307_v29  ;;  %3865 = vmatprep.subr.bf16.mxu0 %v7311_v1  ;;  %8355 = vst [vmem:[#allocation107_spill] sm:$0xff] %v7337_v11  ;;  %v3023_v1 = vld [vmem:[#allocation6 + $0x70] sm:$0xff]  ;;  %v3020_v29 = vld [vmem:[#allocation6 + $0x58] sm:$0xff]  ;;  %8357 = vst [vmem:[#allocation109_spill] sm:$0xff] %v7343_v56 }
 0x225   :  { %3906 = vmatprep.subr.bf16.mxu1 %v7313_v38  ;;  %8354 = vst [vmem:[#allocation106_spill] sm:$0xff] %v7335_v54  ;;  %v3019_v38 = vld [vmem:[#allocation6 + $0x50] sm:$0xff]  ;;  %8356 = vst [vmem:[#allocation108_spill] sm:$0xff] %v7341_v19  ;;  %v7349_v25 = vcombine.high %v3020_v29, %v3024_v28  ;;  %v7355_v58 = vcombine.low %v3020_v29, %v3024_v28 }
 0x226   :  { %v7347_v0 = vcombine.high %v3019_v38, %v3023_v1  ;;  %v7353_v46 = vcombine.low %v3019_v38, %v3023_v1 }
 0x227   :  { %3866 = vmatpush1.bf16.msra.mxu0 %v7317_v26  ;;  %8359 = vst [vmem:[#allocation111_spill] sm:$0xff] %v7349_v25  ;;  %v3016_v26 = vld [vmem:[#allocation6 + $0x38] sm:$0xff]  ;;  %8361 = vst [vmem:[#allocation113_spill] sm:$0xff] %v7355_v58 }
 0x228   :  { %3907 = vmatpush1.bf16.msra.mxu1 %v7319_v51  ;;  %3867 = vmatprep.subr.bf16.mxu0 %v7323_v32  ;;  %8358 = vst [vmem:[#allocation110_spill] sm:$0xff] %v7347_v0  ;;  %v3015_v32 = vld [vmem:[#allocation6 + $0x30] sm:$0xff]  ;;  %v3012_v51 = vld [vmem:[#allocation6 + $0x18] sm:$0xff]  ;;  %8360 = vst [vmem:[#allocation112_spill] sm:$0xff] %v7353_v46 }
 0x229   :  { %3908 = vmatprep.subr.bf16.mxu1 %v7325_v47  ;;  %v3011_v47 = vld [vmem:[#allocation6 + $0x10] sm:$0xff]  ;;  %v7361_v18 = vcombine.high %v3012_v51, %v3016_v26  ;;  %v7367_v28 = vcombine.low %v3012_v51, %v3016_v26 }
 0x22a   :  { %v7359_v12 = vcombine.high %v3011_v47, %v3015_v32  ;;  %v7365_v38 = vcombine.low %v3011_v47, %v3015_v32 }
 0x22b   :  { %3868 = vmatpush1.bf16.msra.mxu0 %v7329_v44  ;;  %8363 = vst [vmem:[#allocation115_spill] sm:$0xff] %v7361_v18  ;;  %v3136_v44 = vld [vmem:[#allocation6 + $0x3f8] sm:$0xff]  ;;  %8365 = vst [vmem:[#allocation117_spill] sm:$0xff] %v7367_v28 }
 0x22c   :  { %3909 = vmatpush1.bf16.msra.mxu1 %v7331_v57  ;;  %3869 = vmatprep.subr.bf16.mxu0 %v7335_v54  ;;  %8362 = vst [vmem:[#allocation114_spill] sm:$0xff] %v7359_v12  ;;  %v3135_v54 = vld [vmem:[#allocation6 + $0x3f0] sm:$0xff]  ;;  %v3132_v57 = vld [vmem:[#allocation6 + $0x3d8] sm:$0xff]  ;;  %8364 = vst [vmem:[#allocation116_spill] sm:$0xff] %v7365_v38 }
 0x22d   :  { %3910 = vmatprep.subr.bf16.mxu1 %v7337_v11  ;;  %v3131_v11 = vld [vmem:[#allocation6 + $0x3d0] sm:$0xff]  ;;  %v7373_v1 = vcombine.high %v3132_v57, %v3136_v44  ;;  %v7379_v26 = vcombine.low %v3132_v57, %v3136_v44 }
 0x22e   :  { %v7371_v29 = vcombine.high %v3131_v11, %v3135_v54  ;;  %v7377_v32 = vcombine.low %v3131_v11, %v3135_v54 }
 0x22f   :  { %3870 = vmatpush1.bf16.msra.mxu0 %v7341_v19  ;;  %8367 = vst [vmem:[#allocation119_spill] sm:$0xff] %v7373_v1  ;;  %v3128_v19 = vld [vmem:[#allocation6 + $0x3b8] sm:$0xff]  ;;  %8369 = vst [vmem:[#allocation121_spill] sm:$0xff] %v7379_v26 }
 0x230   :  { %3911 = vmatpush1.bf16.msra.mxu1 %v7343_v56  ;;  %3871 = vmatprep.subr.bf16.mxu0 %v7347_v0  ;;  %8366 = vst [vmem:[#allocation118_spill] sm:$0xff] %v7371_v29  ;;  %v3127_v0 = vld [vmem:[#allocation6 + $0x3b0] sm:$0xff]  ;;  %v3124_v56 = vld [vmem:[#allocation6 + $0x398] sm:$0xff]  ;;  %8368 = vst [vmem:[#allocation120_spill] sm:$0xff] %v7377_v32 }
 0x231   :  { %3912 = vmatprep.subr.bf16.mxu1 %v7349_v25  ;;  %v3123_v25 = vld [vmem:[#allocation6 + $0x390] sm:$0xff]  ;;  %v7385_v47 = vcombine.high %v3124_v56, %v3128_v19  ;;  %v7391_v44 = vcombine.low %v3124_v56, %v3128_v19 }
 0x232   :  { %v7383_v51 = vcombine.high %v3123_v25, %v3127_v0  ;;  %v7389_v54 = vcombine.low %v3123_v25, %v3127_v0 }
 0x233   :  { %3872 = vmatpush1.bf16.msra.mxu0 %v7353_v46  ;;  %8371 = vst [vmem:[#allocation123_spill] sm:$0xff] %v7385_v47  ;;  %v3120_v46 = vld [vmem:[#allocation6 + $0x378] sm:$0xff]  ;;  %8373 = vst [vmem:[#allocation125_spill] sm:$0xff] %v7391_v44 }
 0x234   :  { %3913 = vmatpush1.bf16.msra.mxu1 %v7355_v58  ;;  %3873 = vmatprep.subr.bf16.mxu0 %v7359_v12  ;;  %8370 = vst [vmem:[#allocation122_spill] sm:$0xff] %v7383_v51  ;;  %v3119_v12 = vld [vmem:[#allocation6 + $0x370] sm:$0xff]  ;;  %v3116_v58 = vld [vmem:[#allocation6 + $0x358] sm:$0xff]  ;;  %8372 = vst [vmem:[#allocation124_spill] sm:$0xff] %v7389_v54 }
 0x235   :  { %3914 = vmatprep.subr.bf16.mxu1 %v7361_v18  ;;  %v3115_v18 = vld [vmem:[#allocation6 + $0x350] sm:$0xff]  ;;  %v7397_v11 = vcombine.high %v3116_v58, %v3120_v46  ;;  %v7403_v19 = vcombine.low %v3116_v58, %v3120_v46 }
 0x236   :  { %v7395_v57 = vcombine.high %v3115_v18, %v3119_v12  ;;  %v7401_v0 = vcombine.low %v3115_v18, %v3119_v12 }
 0x237   :  { %3874 = vmatpush1.bf16.msra.mxu0 %v7365_v38  ;;  %8375 = vst [vmem:[#allocation127_spill] sm:$0xff] %v7397_v11  ;;  %v3112_v38 = vld [vmem:[#allocation6 + $0x338] sm:$0xff]  ;;  %8377 = vst [vmem:[#allocation129_spill] sm:$0xff] %v7403_v19 }
 0x238   :  { %3915 = vmatpush1.bf16.msra.mxu1 %v7367_v28  ;;  %3875 = vmatprep.subr.bf16.mxu0 %v7371_v29  ;;  %8374 = vst [vmem:[#allocation126_spill] sm:$0xff] %v7395_v57  ;;  %v3111_v29 = vld [vmem:[#allocation6 + $0x330] sm:$0xff]  ;;  %v3108_v28 = vld [vmem:[#allocation6 + $0x318] sm:$0xff]  ;;  %8376 = vst [vmem:[#allocation128_spill] sm:$0xff] %v7401_v0 }
 0x239   :  { %3916 = vmatprep.subr.bf16.mxu1 %v7373_v1  ;;  %v3107_v1 = vld [vmem:[#allocation6 + $0x310] sm:$0xff]  ;;  %v7409_v25 = vcombine.high %v3108_v28, %v3112_v38  ;;  %v7415_v46 = vcombine.low %v3108_v28, %v3112_v38 }
 0x23a   :  { %v7407_v56 = vcombine.high %v3107_v1, %v3111_v29  ;;  %v7413_v12 = vcombine.low %v3107_v1, %v3111_v29 }
 0x23b   :  { %3876 = vmatpush2.bf16.msra.mxu0 %v7377_v32  ;;  %8379 = vst [vmem:[#allocation131_spill] sm:$0xff] %v7409_v25  ;;  %v3104_v32 = vld [vmem:[#allocation6 + $0x2f8] sm:$0xff]  ;;  %8381 = vst [vmem:[#allocation133_spill] sm:$0xff] %v7415_v46 }
 0x23c   :  { %3917 = vmatpush2.bf16.msra.mxu1 %v7379_v26  ;;  %3877 = vmatprep.subr.bf16.mxu0 %v7383_v51  ;;  %8378 = vst [vmem:[#allocation130_spill] sm:$0xff] %v7407_v56  ;;  %v3103_v51 = vld [vmem:[#allocation6 + $0x2f0] sm:$0xff]  ;;  %v3100_v26 = vld [vmem:[#allocation6 + $0x2d8] sm:$0xff]  ;;  %8380 = vst [vmem:[#allocation132_spill] sm:$0xff] %v7413_v12 }
 0x23d   :  { %3918 = vmatprep.subr.bf16.mxu1 %v7385_v47  ;;  %v3099_v47 = vld [vmem:[#allocation6 + $0x2d0] sm:$0xff]  ;;  %v7421_v18 = vcombine.high %v3100_v26, %v3104_v32  ;;  %v7427_v38 = vcombine.low %v3100_v26, %v3104_v32 }
 0x23e   :  { %v7419_v58 = vcombine.high %v3099_v47, %v3103_v51  ;;  %v7425_v29 = vcombine.low %v3099_v47, %v3103_v51 }
 0x23f   :  { %3878 = vmatpush2.bf16.msra.mxu0 %v7389_v54  ;;  %8383 = vst [vmem:[#allocation135_spill] sm:$0xff] %v7421_v18  ;;  %v3096_v54 = vld [vmem:[#allocation6 + $0x2b8] sm:$0xff]  ;;  %8385 = vst [vmem:[#allocation137_spill] sm:$0xff] %v7427_v38 }
 0x240   :  { %3919 = vmatpush2.bf16.msra.mxu1 %v7391_v44  ;;  %3879 = vmatprep.subr.bf16.mxu0 %v7395_v57  ;;  %8382 = vst [vmem:[#allocation134_spill] sm:$0xff] %v7419_v58  ;;  %v3095_v57 = vld [vmem:[#allocation6 + $0x2b0] sm:$0xff]  ;;  %v3092_v44 = vld [vmem:[#allocation6 + $0x298] sm:$0xff]  ;;  %8384 = vst [vmem:[#allocation136_spill] sm:$0xff] %v7425_v29 }
 0x241   :  { %3920 = vmatprep.subr.bf16.mxu1 %v7397_v11  ;;  %v3091_v11 = vld [vmem:[#allocation6 + $0x290] sm:$0xff]  ;;  %v7433_v1 = vcombine.high %v3092_v44, %v3096_v54  ;;  %v7439_v32 = vcombine.low %v3092_v44, %v3096_v54 }
 0x242   :  { %v7431_v28 = vcombine.high %v3091_v11, %v3095_v57  ;;  %v7437_v51 = vcombine.low %v3091_v11, %v3095_v57 }
 0x243   :  { %3880 = vmatpush2.bf16.msra.mxu0 %v7401_v0  ;;  %8387 = vst [vmem:[#allocation139_spill] sm:$0xff] %v7433_v1  ;;  %v3088_v0 = vld [vmem:[#allocation6 + $0x278] sm:$0xff]  ;;  %8389 = vst [vmem:[#allocation141_spill] sm:$0xff] %v7439_v32 }
 0x244   :  { %3921 = vmatpush2.bf16.msra.mxu1 %v7403_v19  ;;  %3881 = vmatprep.subr.bf16.mxu0 %v7407_v56  ;;  %8386 = vst [vmem:[#allocation138_spill] sm:$0xff] %v7431_v28  ;;  %v3087_v56 = vld [vmem:[#allocation6 + $0x270] sm:$0xff]  ;;  %v3084_v19 = vld [vmem:[#allocation6 + $0x258] sm:$0xff]  ;;  %8388 = vst [vmem:[#allocation140_spill] sm:$0xff] %v7437_v51 }
 0x245   :  { %3922 = vmatprep.subr.bf16.mxu1 %v7409_v25  ;;  %v3083_v25 = vld [vmem:[#allocation6 + $0x250] sm:$0xff]  ;;  %v7445_v47 = vcombine.high %v3084_v19, %v3088_v0  ;;  %v7451_v54 = vcombine.low %v3084_v19, %v3088_v0 }
 0x246   :  { %v7443_v26 = vcombine.high %v3083_v25, %v3087_v56  ;;  %v7449_v57 = vcombine.low %v3083_v25, %v3087_v56 }
 0x247   :  { %3882 = vmatpush2.bf16.msra.mxu0 %v7413_v12  ;;  %8391 = vst [vmem:[#allocation143_spill] sm:$0xff] %v7445_v47  ;;  %v3080_v12 = vld [vmem:[#allocation6 + $0x238] sm:$0xff]  ;;  %8393 = vst [vmem:[#allocation145_spill] sm:$0xff] %v7451_v54 }
 0x248   :  { %3923 = vmatpush2.bf16.msra.mxu1 %v7415_v46  ;;  %3883 = vmatprep.subr.bf16.mxu0 %v7419_v58  ;;  %8390 = vst [vmem:[#allocation142_spill] sm:$0xff] %v7443_v26  ;;  %v3079_v58 = vld [vmem:[#allocation6 + $0x230] sm:$0xff]  ;;  %v3076_v46 = vld [vmem:[#allocation6 + $0x218] sm:$0xff]  ;;  %8392 = vst [vmem:[#allocation144_spill] sm:$0xff] %v7449_v57 }
 0x249   :  { %3924 = vmatprep.subr.bf16.mxu1 %v7421_v18  ;;  %v3075_v18 = vld [vmem:[#allocation6 + $0x210] sm:$0xff]  ;;  %v7457_v11 = vcombine.high %v3076_v46, %v3080_v12 }
 0x24a   :  { %v7455_v44 = vcombine.high %v3075_v18, %v3079_v58 }
 0x24b   :  { %3884 = vmatpush2.bf16.msra.mxu0 %v7425_v29  ;;  %8395 = vst [vmem:[#allocation147_spill] sm:$0xff] %v7457_v11 }
 0x24c   :  { %3925 = vmatpush2.bf16.msra.mxu1 %v7427_v38  ;;  %3885 = vmatprep.subr.bf16.mxu0 %v7431_v28  ;;  %8394 = vst [vmem:[#allocation146_spill] sm:$0xff] %v7455_v44 }
 0x24d   :  { %3926 = vmatprep.subr.bf16.mxu1 %v7433_v1  ;;  %v7461_v1 = vcombine.low %v3075_v18, %v3079_v58 }
 0x24f   :  { %3886 = vmatpush2.bf16.msra.mxu0 %v7437_v51  ;;  %8396 = vst [vmem:[#allocation148_spill] sm:$0xff] %v7461_v1  ;;  %v7463_v51 = vcombine.low %v3076_v46, %v3080_v12 }
 0x250   :  { %3927 = vmatpush2.bf16.msra.mxu1 %v7439_v32  ;;  %3887 = vmatprep.subr.bf16.mxu0 %v7443_v26 }
 0x251   :  { %3928 = vmatprep.subr.bf16.mxu1 %v7445_v47  ;;  %8397 = vst [vmem:[#allocation149_spill] sm:$0xff] %v7463_v51 }
 0x253   :  { %3888 = vmatpush2.bf16.msra.mxu0 %v7449_v57 }
 0x254   :  { %3929 = vmatpush2.bf16.msra.mxu1 %v7451_v54  ;;  %3889 = vmatprep.subr.bf16.mxu0 %v7455_v44 }
 0x255   :  { %3930 = vmatprep.subr.bf16.mxu1 %v7457_v11 }
 0x257   :  { %3890 = vmatpush2.bf16.msra.mxu0 %v7461_v1 }
 0x258   :  { %3931 = vmatpush2.bf16.msra.mxu1 %v7463_v51  ;;  %4022 = vmatprep.subr.bf16.mxu0 %v7067_v61 }
 0x259   :  { %4063 = vmatprep.subr.bf16.mxu1 %v7069_v62 }
 0x25a   :  { %v2829_v0 = vpop.f32.mrf.mxu0  ;;  %3892 = vmatmul.mubr.bf16.vlgmr.msra.gmra.mxu0 %v8340_v4 }
 0x25b   :  { %v7471_v19 = vpop.f32.mrf.mxu1  ;;  %3933 = vmatmul.mubr.bf16.vlgmr.msra.gmra.mxu1 %v8340_v4  ;;  %v7476_v56 = vadd.f32 %v2829_v0, %v7285_v30  ;;  %4023 = vmatpush1.bf16.msra.mxu0 %v7071_v8  ;;  %v8399_v0 = vld [vmem:[#allocation64_spill] sm:$0xff] }
 0x25c   :  { %4064 = vmatpush1.bf16.msra.mxu1 %v7073_v33  ;;  %v2831_v25 = vpop.f32.mrf.mxu0  ;;  %4024 = vmatprep.subr.bf16.mxu0 %v7077_v2 }
 0x25d   :  { %v7480_v12 = vpop.f32.mrf.mxu1  ;;  %4065 = vmatprep.subr.bf16.mxu1 %v7079_v3  ;;  %v7485_v46 = vadd.f32 %v2831_v25, %v7299_v52  ;;  %v8398_v52 = vld [vmem:[#allocation63_spill] sm:$0xff]  ;;  %v8400_v25 = vld [vmem:[#allocation65_spill] sm:$0xff] }
 0x25e   :  { %v2833_v58 = vpop.f32.mrf.mxu0 }
 0x25f   :  { %v2874_v18 = vpop.f32.mrf.mxu1  ;;  %4025 = vmatpush1.bf16.msra.mxu0 %v7086_v13  ;;  %v8401_v58 = vld [vmem:[#allocation66_spill] sm:$0xff] }
 0x260   :  { %4066 = vmatpush1.bf16.msra.mxu1 %v7088_v14  ;;  %v2834_v4 = vpop.f32.mrf.mxu0  ;;  %4026 = vmatprep.subr.bf16.mxu0 %v7092_v20  ;;  %v8402_v18 = vld [vmem:[#allocation67_spill] sm:$0xff] }
 0x261   :  { %v2875_v30 = vpop.f32.mrf.mxu1  ;;  %4067 = vmatprep.subr.bf16.mxu1 %v7094_v31  ;;  %v8403_v4 = vld [vmem:[#allocation68_spill] sm:$0xff] }
 0x262   :  { %v8404_v30 = vld [vmem:[#allocation69_spill] sm:$0xff] }
 0x263   :  { %4027 = vmatpush1.bf16.msra.mxu0 %v7105_v55 }
 0x264   :  { %4068 = vmatpush1.bf16.msra.mxu1 %v7107_v9  ;;  %4028 = vmatprep.subr.bf16.mxu0 %v7111_v34 }
 0x265   :  { %4069 = vmatprep.subr.bf16.mxu1 %v7113_v35 }
 0x267   :  { %4029 = vmatpush1.bf16.msra.mxu0 %v7117_v39 }
 0x268   :  { %4070 = vmatpush1.bf16.msra.mxu1 %v7119_v40  ;;  %4030 = vmatprep.subr.bf16.mxu0 %v7123_v42 }
 0x269   :  { %4071 = vmatprep.subr.bf16.mxu1 %v7125_v43 }
 0x26b   :  { %4031 = vmatpush1.bf16.msra.mxu0 %v7129_v49 }
 0x26c   :  { %4072 = vmatpush1.bf16.msra.mxu1 %v7131_v50  ;;  %4032 = vmatprep.subr.bf16.mxu0 %v7135_v24 }
 0x26d   :  { %4073 = vmatprep.subr.bf16.mxu1 %v7137_v27 }
 0x26f   :  { %4033 = vmatpush1.bf16.msra.mxu0 %v7141_v15 }
 0x270   :  { %4074 = vmatpush1.bf16.msra.mxu1 %v7143_v59  ;;  %4034 = vmatprep.subr.bf16.mxu0 %v7147_v60 }
 0x271   :  { %4075 = vmatprep.subr.bf16.mxu1 %v7149_v63 }
 0x273   :  { %4035 = vmatpush1.bf16.msra.mxu0 %v7153_v5  ;;  %v8216_v5 = vlaneseq }
 0x274   :  { %4076 = vmatpush1.bf16.msra.mxu1 %v7155_v6  ;;  %4036 = vmatprep.subr.bf16.mxu0 %v7159_v7 }
 0x275   :  { %4077 = vmatprep.subr.bf16.mxu1 %v7161_v10 }
 0x277   :  { %4037 = vmatpush1.bf16.msra.mxu0 %v7165_v45 }
 0x278   :  { %4078 = vmatpush1.bf16.msra.mxu1 %v7167_v21  ;;  %4038 = vmatprep.subr.bf16.mxu0 %v7171_v22 }
 0x279   :  { %4079 = vmatprep.subr.bf16.mxu1 %v7173_v23 }
 0x27b   :  { %4039 = vmatpush2.bf16.msra.mxu0 %v7177_v16 }
 0x27c   :  { %4080 = vmatpush2.bf16.msra.mxu1 %v7179_v17  ;;  %4040 = vmatprep.subr.bf16.mxu0 %v7183_v36  ;;  %v8405_v36 = vld [vmem:[#allocation70_spill] sm:$0xff] }
 0x27d   :  { %4081 = vmatprep.subr.bf16.mxu1 %v7185_v37  ;;  %v8406_v37 = vld [vmem:[#allocation71_spill] sm:$0xff] }
 0x27f   :  { %4041 = vmatpush2.bf16.msra.mxu0 %v7189_v48  ;;  %v8407_v48 = vld [vmem:[#allocation72_spill] sm:$0xff] }
 0x280   :  { %4082 = vmatpush2.bf16.msra.mxu1 %v7191_v53  ;;  %4042 = vmatprep.subr.bf16.mxu0 %v8398_v52  ;;  %v8408_v53 = vld [vmem:[#allocation73_spill] sm:$0xff]  ;;  %v8409_v52 = vld [vmem:[#allocation74_spill] sm:$0xff] }
 0x281   :  { %4083 = vmatprep.subr.bf16.mxu1 %v8399_v0  ;;  %v8410_v0 = vld [vmem:[#allocation75_spill] sm:$0xff] }
 0x283   :  { %4043 = vmatpush2.bf16.msra.mxu0 %v8400_v25  ;;  %v8411_v25 = vld [vmem:[#allocation76_spill] sm:$0xff] }
 0x284   :  { %4084 = vmatpush2.bf16.msra.mxu1 %v8401_v58  ;;  %4044 = vmatprep.subr.bf16.mxu0 %v8402_v18  ;;  %v8412_v58 = vld [vmem:[#allocation77_spill] sm:$0xff]  ;;  %v8413_v18 = vld [vmem:[#allocation78_spill] sm:$0xff] }
 0x285   :  { %4085 = vmatprep.subr.bf16.mxu1 %v8403_v4  ;;  %v8414_v4 = vld [vmem:[#allocation79_spill] sm:$0xff] }
 0x287   :  { %4045 = vmatpush2.bf16.msra.mxu0 %v8404_v30  ;;  %v8415_v30 = vld [vmem:[#allocation80_spill] sm:$0xff] }
 0x288   :  { %4086 = vmatpush2.bf16.msra.mxu1 %v8405_v36  ;;  %4046 = vmatprep.subr.bf16.mxu0 %v8406_v37  ;;  %v8416_v36 = vld [vmem:[#allocation81_spill] sm:$0xff]  ;;  %v8417_v37 = vld [vmem:[#allocation82_spill] sm:$0xff] }
 0x289   :  { %4087 = vmatprep.subr.bf16.mxu1 %v8407_v48  ;;  %v8418_v48 = vld [vmem:[#allocation83_spill] sm:$0xff] }
 0x28b   :  { %4047 = vmatpush2.bf16.msra.mxu0 %v8408_v53  ;;  %v8419_v53 = vld [vmem:[#allocation84_spill] sm:$0xff] }
 0x28c   :  { %4088 = vmatpush2.bf16.msra.mxu1 %v8409_v52  ;;  %4048 = vmatprep.subr.bf16.mxu0 %v8410_v0  ;;  %v8420_v52 = vld [vmem:[#allocation85_spill] sm:$0xff]  ;;  %v8421_v0 = vld [vmem:[#allocation86_spill] sm:$0xff] }
 0x28d   :  { %4089 = vmatprep.subr.bf16.mxu1 %v8411_v25  ;;  %v8422_v25 = vld [vmem:[#allocation87_spill] sm:$0xff] }
 0x28f   :  { %4049 = vmatpush2.bf16.msra.mxu0 %v8412_v58  ;;  %v8423_v58 = vld [vmem:[#allocation88_spill] sm:$0xff] }
 0x290   :  { %4090 = vmatpush2.bf16.msra.mxu1 %v8413_v18  ;;  %4050 = vmatprep.subr.bf16.mxu0 %v8414_v4 }
 0x291   :  { %4091 = vmatprep.subr.bf16.mxu1 %v8415_v30 }
 0x293   :  { %4051 = vmatpush2.bf16.msra.mxu0 %v8416_v36 }
 0x294   :  { %4092 = vmatpush2.bf16.msra.mxu1 %v8417_v37  ;;  %4052 = vmatprep.subr.bf16.mxu0 %v8418_v48 }
 0x295   :  { %4093 = vmatprep.subr.bf16.mxu1 %v8419_v53 }
 0x297   :  { %4053 = vmatpush2.bf16.msra.mxu0 %v8420_v52 }
 0x298   :  { %4094 = vmatpush2.bf16.msra.mxu1 %v8421_v0  ;;  %4104 = vmatprep.subr.bf16.mxu0 %v8422_v25 }
 0x299   :  { %4145 = vmatprep.subr.bf16.mxu1 %v8423_v58 }
 0x29a   :  { %v2911_v18 = vpop.f32.mrf.mxu0 }
 0x29b   :  { %v2952_v4 = vpop.f32.mrf.mxu1  ;;  %v2912_v30 = vadd.f32 %v2911_v18, %v7471_v19  ;;  %v7550_v19 = vshrl.u32 %v8216_v5, 7 }
 0x29c   :  { %v2913_v17 = vpop.f32.mrf.mxu0 }
 0x29d   :  { %v2954_v36 = vpop.f32.mrf.mxu1  ;;  %v2953_v16 = vadd.f32 %v2952_v4, %v2912_v30  ;;  %v2914_v37 = vadd.f32 %v2913_v17, %v7480_v12  ;;  %v2963_v18 = vsub.s32 0, %v7550_v19  ;;  %v2959_v17 = vld [vmem:[#allocation8] sm:$0xff] }
 0x29e   :  { %v2915_v48 = vpop.f32.mrf.mxu0 }
 0x29f   :  { %v2956_v23 = vpop.f32.mrf.mxu1  ;;  %v2955_v53 = vadd.f32 %v2954_v36, %v2914_v37  ;;  %v2964_v36 = vrot.slane %v2959_v17, %v2963_v18  ;;  %v2975_v37 = vsub.s32 3, %v7550_v19 }
 0x2a0   :  { %v2916_v22 = vpop.f32.mrf.mxu0  ;;  %v2971_v23 = vsub.s32 2, %v7550_v19 }
 0x2a1   :  { %v2957_v52 = vpop.f32.mrf.mxu1  ;;  %v2967_v22 = vsub.s32 1, %v7550_v19 }
 0x2a2   :  { %v2972_v48 = vrot.slane %v2959_v17, %v2971_v23 }
 0x2a3   :  { %v2968_v12 = vrot.slane %v2959_v17, %v2967_v22 }
 0x2a5   :  { %v7563_v4 = vadd.f32 %v2968_v12, %v7476_v56  ;;  %v2979_v56 = vsub.s32 4, %v7550_v19  ;;  %v2991_v12 = vsub.s32 7, %v7550_v19 }
 0x2a7   :  { %8428 = vst [vmem:[#allocation150_spill] sm:$0xff] %v7563_v4 }
 0x2da   :  { %v3811_v21 = vpop.f32.mrf.mxu0 }
 0x2db   :  { %v3852_v0 = vpop.f32.mrf.mxu1 }
 0x2dc   :  { %v3813_v45 = vpop.f32.mrf.mxu0 }
 0x2dd   :  { %v3854_v25 = vpop.f32.mrf.mxu1  ;;  %v3942_v23 = vadd.f32 %v3813_v45, %v7563_v4 }
 0x2de   :  { %v3815_v10 = vpop.f32.mrf.mxu0 }
 0x2df   :  { %v3856_v58 = vpop.f32.mrf.mxu1  ;;  %v8424_v10 = vld [vmem:[#allocation21_spill] sm:$0xff] }
 0x2e0   :  { %v3816_v7 = vpop.f32.mrf.mxu0  ;;  %v7557_v52 = vadd.f32 %v2964_v36, %v8424_v10 }
 0x2e1   :  { %v3857_v6 = vpop.f32.mrf.mxu1  ;;  %v8426_v7 = vld [vmem:[#allocation22_spill] sm:$0xff] }
 0x2e2   :  { %8425 = vst [vmem:[#allocation21_spill] sm:$0xff] %v7557_v52  ;;  %v2976_v6 = vrot.slane %v2959_v17, %v2975_v37  ;;  %v7560_v58 = vadd.f32 %v2972_v48, %v8426_v7  ;;  %v3941_v30 = vadd.f32 %v3811_v21, %v7557_v52  ;;  %v5803_v37 = vmul.f32 -1.442695, %v3942_v23 }
 0x2e3   :  { %v2987_v21 = vsub.s32 6, %v7550_v19  ;;  %v2980_v7 = vrot.slane %v2959_v17, %v2979_v56 }
 0x2e4   :  { %8427 = vst [vmem:[#allocation22_spill] sm:$0xff] %v7560_v58  ;;  %v3943_v5 = vadd.f32 %v3852_v0, %v7560_v58  ;;  %v7568_v18 = vadd.f32 %v2976_v6, %v7485_v46  ;;  %v5802_v22 = vmul.f32 -1.442695, %v3941_v30  ;;  %v2983_v0 = vsub.s32 5, %v7550_v19 }
 0x2e6   :  { %8429 = vst [vmem:[#allocation151_spill] sm:$0xff] %v7568_v18  ;;  %v3944_v36 = vadd.f32 %v3854_v25, %v7568_v18  ;;  %v5804_v10 = vmul.f32 -1.442695, %v3943_v5  ;;  %6573 = vpow2.f32 %v5802_v22  ;;  %v2988_v25 = vrot.slane %v2959_v17, %v2987_v21  ;;  %v8431_v18 = vld [vmem:[#allocation32_spill] sm:$0xff] }
 0x2e7   :  { %v2984_v5 = vrot.slane %v2959_v17, %v2983_v0  ;;  %v2992_v22 = vrot.slane %v2959_v17, %v2991_v12 }
 0x2e8   :  { %v5805_v48 = vmul.f32 -1.442695, %v3944_v36  ;;  %6575 = vpow2.f32 %v5804_v10  ;;  %v7580_v4 = vadd.f32 %v2988_v25, %v8431_v18 }
 0x2e9   :  { %6577 = vpow2.f32 %v5803_v37  ;;  %v8430_v37 = vld [vmem:[#allocation31_spill] sm:$0xff]  ;;  %v7582_v58 = vadd.f32 %v2984_v5, %v2953_v16  ;;  %v7584_v56 = vadd.f32 %v2992_v22, %v2955_v53 }
 0x2ea   :  { %6579 = vpow2.f32 %v5805_v48  ;;  %v7577_v48 = vadd.f32 %v2980_v7, %v8430_v37 }
 0x2f3   :  { %v6574_v46 = vpop.eup %6573 }
 0x2f4   :  { %v3955_v30 = vadd.f32 1.0, %v6574_v46 }
 0x2f5   :  { %v6576_v45 = vpop.eup %6575 }
 0x2f6   :  { %v6578_v6 = vpop.eup %6577  ;;  %v3967_v36 = vadd.f32 1.0, %v6576_v45  ;;  %6581 = vrcp.f32 %v3955_v30 }
 0x2f7   :  { %v6580_v23 = vpop.eup %6579  ;;  %v3956_v10 = vadd.f32 1.0, %v6578_v6 }
 0x2f8   :  { %v3968_v52 = vadd.f32 1.0, %v6580_v23  ;;  %6583 = vrcp.f32 %v3967_v36 }
 0x2f9   :  { %6585 = vrcp.f32 %v3956_v10 }
 0x31a   :  { %v3893_v63 = vpop.f32.mrf.mxu0 }
 0x31b   :  { %v3934_v60 = vpop.f32.mrf.mxu1  ;;  %v3945_v21 = vadd.f32 %v3893_v63, %v7577_v48  ;;  %v6582_v63 = vpop.eup %6581 }
 0x31c   :  { %v3947_v17 = vadd.f32 %v3934_v60, %v7580_v4  ;;  %v3895_v0 = vpop.f32.mrf.mxu0  ;;  %v6584_v60 = vpop.eup %6583 }
 0x31d   :  { %v3936_v46 = vpop.f32.mrf.mxu1  ;;  %6587 = vtanh.f32 %v3945_v21  ;;  %v3946_v18 = vadd.f32 %v3895_v0, %v7582_v58  ;;  %v6586_v5 = vpop.eup %6585  ;;  %v3987_v22 = vmul.f32 0.0, %v6584_v60 }
 0x31e   :  { %v5806_v12 = vmul.f32 -1.442695, %v3947_v17  ;;  %v3948_v16 = vadd.f32 %v3936_v46, %v7584_v56  ;;  %6589 = vrcp.f32 %v3968_v52  ;;  %v3897_v45 = vpop.f32.mrf.mxu0 }
 0x31f   :  { %v3938_v6 = vpop.f32.mrf.mxu1 }
 0x320   :  { %6591 = vpow2.f32 %v5806_v12  ;;  %v5807_v53 = vmul.f32 -1.442695, %v3948_v16  ;;  %v3898_v7 = vpop.f32.mrf.mxu0  ;;  %v6889_v16 = vmov 1966171168  }
 0x321   :  { %6593 = vtanh.f32 %v3946_v18  ;;  %v3939_v25 = vpop.f32.mrf.mxu1  ;;  %v4001_v45 = vunpack.c.l.s4 %v6889_v16  ;;  %v8439_v16 = vld [vmem:[#allocation93_spill] sm:$0xff] }
 0x322   :  { %6595 = vpow2.f32 %v5807_v53 }
 0x323   :  { %v4002_v53 = vunpack.c.0.s8 %v4001_v45  ;;  %v8440_v45 = vld [vmem:[#allocation94_spill] sm:$0xff] }
 0x32a   :  { %v6588_v30 = vpop.eup %6587 }
 0x32b   :  { %v6590_v23 = vpop.eup %6589  ;;  %v3989_v36 = vmul.f32 %v6588_v30, %v6582_v63 }
 0x32c   :  { %v3988_v0 = vmul.f32 0.0, %v6590_v23 }
 0x32d   :  { %v6592_v10 = vpop.eup %6591  ;;  %v7590_v21 = vadd.f32 %v3989_v36, %v3987_v22 }
 0x32e   :  { %v6594_v37 = vpop.eup %6593  ;;  %v3981_v52 = vadd.f32 1.0, %v6592_v10 }
 0x32f   :  { %v6596_v17 = vpop.eup %6595  ;;  %v3990_v46 = vmul.f32 %v6594_v37, %v6586_v5  ;;  %6597 = vtanh.f32 %v7590_v21  ;;  %v7597_v5 = vsub.s32 %v4002_v53, %v7550_v19  ;;  %v8432_v37 = vlaneseq  ;;  %v8442_v53 = vld [vmem:[#allocation96_spill] sm:$0xff] }
 0x330   :  { %v3982_v12 = vadd.f32 1.0, %v6596_v17  ;;  %6599 = vrcp.f32 %v3981_v52  ;;  %v8435_v17 = vld [vmem:[#allocation89_spill] sm:$0xff] }
 0x331   :  { %v7593_v18 = vadd.f32 %v3990_v46, %v3988_v0  ;;  %vm7603_vm0 = vcmp.lt.s32.totalorder %v8432_v37, 256  ;;  %v8436_v0 = vld [vmem:[#allocation90_spill] sm:$0xff]  ;;  %v8437_v46 = vld [vmem:[#allocation91_spill] sm:$0xff]  ;;  %v6568_v52 = vld [vmem:[#allocation12 + $0x20] sm:$0xff]  }
 0x332   :  { %6601 = vrcp.f32 %v3982_v12  ;;  %v8438_v12 = vld [vmem:[#allocation92_spill] sm:$0xff]  ;;  %v8452_v37 = vld [vmem:[#allocation106_spill] sm:$0xff] }
 0x333   :  { %6603 = vtanh.f32 %v7593_v18 }
 0x33c   :  { %v6598_v6 = vpop.eup %6597 }
 0x33d   :  { %v6600_v7 = vpop.eup %6599 }
 0x33e   :  { %v3995_v60 = vmul.f32 %v6600_v7, %v6598_v6  ;;  %v8441_v6 = vld [vmem:[#allocation95_spill] sm:$0xff]  ;;  %v8443_v7 = vld [vmem:[#allocation97_spill] sm:$0xff] }
 0x33f   :  { %v6602_v25 = vpop.eup %6601 }
 0x340   :  { %v6604_v63 = vpop.eup %6603  ;;  %v7599_v36 = vpack.c.bf16 %v3995_v60, %v3995_v60 }
 0x341   :  { %v3996_v30 = vmul.f32 %v6604_v63, %v6602_v25  ;;  %v8444_v25 = vld [vmem:[#allocation98_spill] sm:$0xff]  ;;  %v8445_v63 = vld [vmem:[#allocation99_spill] sm:$0xff] }
 0x343   :  { %v4021_v23 = vpack.c.bf16 %v3996_v30, %v3996_v30  ;;  %v3999_v22 = vcombine.low %v3995_v60, %v3996_v30  ;;  %v8446_v60 = vld [vmem:[#allocation100_spill] sm:$0xff]  ;;  %v8447_v30 = vld [vmem:[#allocation101_spill] sm:$0xff] }
 0x345   :  { %4054 = vmatprep.mubr.bf16.mxu0 %v4021_v23  ;;  %4095 = vmatprep.mubr.bf16.mxu1 %v4021_v23  ;;  %v4006_v10 = vrot.slane %v3999_v22, %v7597_v5  ;;  %v8449_v22 = vld [vmem:[#allocation103_spill] sm:$0xff] }
 0x346   :  { %4055 = vmatmul.mubr.bf16.vlgmr.msra.gmra.mxu0 %v7599_v36  ;;  %4096 = vmatmul.mubr.bf16.vlgmr.msra.gmra.mxu1 %v7599_v36 }
 0x347   :  { %v4013_v19 = vrot.slane %v4006_v10, %v7597_v5  ;;  %4105 = vmatpush1.bf16.msra.mxu0 %v8435_v17  ;;  %4146 = vmatpush1.bf16.msra.mxu1 %v8436_v0  ;;  %v8450_v10 = vld [vmem:[#allocation104_spill] sm:$0xff] }
 0x348   :  { %4136 = vmatprep.mubr.bf16.mxu0 %v4021_v23  ;;  %4177 = vmatprep.mubr.bf16.mxu1 %v4021_v23  ;;  %v8448_v23 = vld [vmem:[#allocation102_spill] sm:$0xff] }
 0x349   :  { %4019 = vst.msk [vmem:[#allocation2] ss:$4 sm:$0x3] %vm7603_vm0, %v4013_v19  ;;  %4106 = vmatprep.subr.bf16.mxu0 %v8437_v46  ;;  %4147 = vmatprep.subr.bf16.mxu1 %v8438_v12  ;;  %v8451_v19 = vld [vmem:[#allocation105_spill] sm:$0xff] }
 0x34b   :  { %4107 = vmatpush1.bf16.msra.mxu0 %v8439_v16  ;;  %4148 = vmatpush1.bf16.msra.mxu1 %v7291_v41 }
 0x34c   :  { %4108 = vmatprep.subr.bf16.mxu0 %v8440_v45  ;;  %4149 = vmatprep.subr.bf16.mxu1 %v8441_v6 }
 0x34f   :  { %4109 = vmatpush1.bf16.msra.mxu0 %v8442_v53  ;;  %4150 = vmatpush1.bf16.msra.mxu1 %v8443_v7  ;;  %v8453_v53 = vld [vmem:[#allocation107_spill] sm:$0xff]  ;;  %v8454_v7 = vld [vmem:[#allocation108_spill] sm:$0xff] }
 0x350   :  { %4110 = vmatprep.subr.bf16.mxu0 %v8444_v25  ;;  %4151 = vmatprep.subr.bf16.mxu1 %v8445_v63  ;;  %v8455_v25 = vld [vmem:[#allocation109_spill] sm:$0xff]  ;;  %v8456_v63 = vld [vmem:[#allocation110_spill] sm:$0xff] }
 0x353   :  { %4111 = vmatpush1.bf16.msra.mxu0 %v8446_v60  ;;  %4152 = vmatpush1.bf16.msra.mxu1 %v8447_v30  ;;  %v8457_v60 = vld [vmem:[#allocation111_spill] sm:$0xff]  ;;  %v8458_v30 = vld [vmem:[#allocation112_spill] sm:$0xff] }
 0x354   :  { %4112 = vmatprep.subr.bf16.mxu0 %v8448_v23  ;;  %4153 = vmatprep.subr.bf16.mxu1 %v8449_v22  ;;  %v8459_v23 = vld [vmem:[#allocation113_spill] sm:$0xff]  ;;  %v8460_v22 = vld [vmem:[#allocation114_spill] sm:$0xff] }
 0x357   :  { %4113 = vmatpush1.bf16.msra.mxu0 %v8450_v10  ;;  %4154 = vmatpush1.bf16.msra.mxu1 %v8451_v19  ;;  %v8461_v10 = vld [vmem:[#allocation115_spill] sm:$0xff]  ;;  %v8462_v19 = vld [vmem:[#allocation116_spill] sm:$0xff] }
 0x358   :  { %4114 = vmatprep.subr.bf16.mxu0 %v8452_v37  ;;  %4155 = vmatprep.subr.bf16.mxu1 %v8453_v53  ;;  %v8463_v37 = vld [vmem:[#allocation117_spill] sm:$0xff]  ;;  %v8464_v53 = vld [vmem:[#allocation118_spill] sm:$0xff] }
 0x35b   :  { %4115 = vmatpush1.bf16.msra.mxu0 %v8454_v7  ;;  %4156 = vmatpush1.bf16.msra.mxu1 %v8455_v25  ;;  %v8465_v7 = vld [vmem:[#allocation119_spill] sm:$0xff]  ;;  %v8466_v25 = vld [vmem:[#allocation120_spill] sm:$0xff] }
 0x35c   :  { %4116 = vmatprep.subr.bf16.mxu0 %v8456_v63  ;;  %4157 = vmatprep.subr.bf16.mxu1 %v8457_v60  ;;  %v8467_v63 = vld [vmem:[#allocation121_spill] sm:$0xff]  ;;  %v8468_v60 = vld [vmem:[#allocation122_spill] sm:$0xff] }
 0x35f   :  { %4117 = vmatpush1.bf16.msra.mxu0 %v8458_v30  ;;  %4158 = vmatpush1.bf16.msra.mxu1 %v8459_v23  ;;  %v8469_v30 = vld [vmem:[#allocation123_spill] sm:$0xff]  ;;  %v8470_v23 = vld [vmem:[#allocation124_spill] sm:$0xff] }
 0x360   :  { %4118 = vmatprep.subr.bf16.mxu0 %v8460_v22  ;;  %4159 = vmatprep.subr.bf16.mxu1 %v8461_v10  ;;  %v8471_v22 = vld [vmem:[#allocation125_spill] sm:$0xff]  ;;  %v8472_v10 = vld [vmem:[#allocation126_spill] sm:$0xff] }
 0x363   :  { %4119 = vmatpush1.bf16.msra.mxu0 %v8462_v19  ;;  %4160 = vmatpush1.bf16.msra.mxu1 %v8463_v37  ;;  %v8473_v19 = vld [vmem:[#allocation127_spill] sm:$0xff]  ;;  %v8474_v37 = vld [vmem:[#allocation128_spill] sm:$0xff] }
 0x364   :  { %4120 = vmatprep.subr.bf16.mxu0 %v8464_v53  ;;  %4161 = vmatprep.subr.bf16.mxu1 %v8465_v7  ;;  %v8475_v53 = vld [vmem:[#allocation129_spill] sm:$0xff]  ;;  %v8476_v7 = vld [vmem:[#allocation130_spill] sm:$0xff] }
 0x367   :  { %4121 = vmatpush2.bf16.msra.mxu0 %v8466_v25  ;;  %4162 = vmatpush2.bf16.msra.mxu1 %v8467_v63  ;;  %v8477_v25 = vld [vmem:[#allocation131_spill] sm:$0xff]  ;;  %v8478_v63 = vld [vmem:[#allocation132_spill] sm:$0xff] }
 0x368   :  { %4122 = vmatprep.subr.bf16.mxu0 %v8468_v60  ;;  %4163 = vmatprep.subr.bf16.mxu1 %v8469_v30  ;;  %v8479_v60 = vld [vmem:[#allocation133_spill] sm:$0xff]  ;;  %v8480_v30 = vld [vmem:[#allocation134_spill] sm:$0xff] }
 0x36b   :  { %4123 = vmatpush2.bf16.msra.mxu0 %v8470_v23  ;;  %4164 = vmatpush2.bf16.msra.mxu1 %v8471_v22  ;;  %v8481_v23 = vld [vmem:[#allocation135_spill] sm:$0xff] }
 0x36c   :  { %4124 = vmatprep.subr.bf16.mxu0 %v8472_v10  ;;  %4165 = vmatprep.subr.bf16.mxu1 %v8473_v19 }
 0x36f   :  { %4125 = vmatpush2.bf16.msra.mxu0 %v8474_v37  ;;  %4166 = vmatpush2.bf16.msra.mxu1 %v8475_v53  ;;  %v8482_v37 = vld [vmem:[#allocation139_spill] sm:$0xff]  ;;  %v8483_v53 = vld [vmem:[#allocation140_spill] sm:$0xff] }
 0x370   :  { %4126 = vmatprep.subr.bf16.mxu0 %v8476_v7  ;;  %4167 = vmatprep.subr.bf16.mxu1 %v8477_v25 }
 0x373   :  { %4127 = vmatpush2.bf16.msra.mxu0 %v8478_v63  ;;  %4168 = vmatpush2.bf16.msra.mxu1 %v8479_v60 }
 0x374   :  { %4128 = vmatprep.subr.bf16.mxu0 %v8480_v30  ;;  %4169 = vmatprep.subr.bf16.mxu1 %v8481_v23 }
 0x377   :  { %4129 = vmatpush2.bf16.msra.mxu0 %v7425_v29  ;;  %4170 = vmatpush2.bf16.msra.mxu1 %v7427_v38 }
 0x378   :  { %4130 = vmatprep.subr.bf16.mxu0 %v7431_v28  ;;  %4171 = vmatprep.subr.bf16.mxu1 %v8482_v37 }
 0x37b   :  { %4131 = vmatpush2.bf16.msra.mxu0 %v8483_v53  ;;  %4172 = vmatpush2.bf16.msra.mxu1 %v7439_v32 }
 0x37c   :  { %4132 = vmatprep.subr.bf16.mxu0 %v7443_v26  ;;  %4173 = vmatprep.subr.bf16.mxu1 %v7445_v47 }
 0x37f   :  { %4133 = vmatpush2.bf16.msra.mxu0 %v7449_v57  ;;  %4174 = vmatpush2.bf16.msra.mxu1 %v7451_v54 }
 0x380   :  { %4134 = vmatprep.subr.bf16.mxu0 %v7455_v44  ;;  %4175 = vmatprep.subr.bf16.mxu1 %v7457_v11 }
 0x383   :  { %4135 = vmatpush2.bf16.msra.mxu0 %v7461_v1  ;;  %4176 = vmatpush2.bf16.msra.mxu1 %v7463_v51 }
 0x384   :  { %4303 = vmatprep.subr.bf16.mxu0 %v7067_v61  ;;  %4344 = vmatprep.subr.bf16.mxu1 %v7069_v62 }
 0x386   :  { %4137 = vmatmul.mubr.bf16.vlgmr.msra.gmra.mxu0 %v7599_v36  ;;  %4178 = vmatmul.mubr.bf16.vlgmr.msra.gmra.mxu1 %v7599_v36  ;;  %v8484_v36 = vld [vmem:[#allocation47_spill] sm:$0xff] }
 0x387   :  { %4304 = vmatpush1.bf16.msra.mxu0 %v7071_v8  ;;  %4345 = vmatpush1.bf16.msra.mxu1 %v7073_v33 }
 0x388   :  { %4305 = vmatprep.subr.bf16.mxu0 %v7077_v2  ;;  %4346 = vmatprep.subr.bf16.mxu1 %v7079_v3  ;;  %v8529_v2 = vld [vmem:[#allocation151_spill] sm:$0xff] }
 0x38b   :  { %4306 = vmatpush1.bf16.msra.mxu0 %v7086_v13  ;;  %4347 = vmatpush1.bf16.msra.mxu1 %v7088_v14  ;;  %v8528_v13 = vld [vmem:[#allocation150_spill] sm:$0xff] }
 0x38c   :  { %4307 = vmatprep.subr.bf16.mxu0 %v7092_v20  ;;  %4348 = vmatprep.subr.bf16.mxu1 %v7094_v31 }
 0x38f   :  { %4308 = vmatpush1.bf16.msra.mxu0 %v7105_v55  ;;  %4349 = vmatpush1.bf16.msra.mxu1 %v7107_v9 }
 0x390   :  { %4309 = vmatprep.subr.bf16.mxu0 %v7111_v34  ;;  %4350 = vmatprep.subr.bf16.mxu1 %v7113_v35 }
 0x393   :  { %4310 = vmatpush1.bf16.msra.mxu0 %v7117_v39  ;;  %4351 = vmatpush1.bf16.msra.mxu1 %v7119_v40  ;;  %v8485_v39 = vld [vmem:[#allocation48_spill] sm:$0xff]  ;;  %v8486_v40 = vld [vmem:[#allocation49_spill] sm:$0xff] }
 0x394   :  { %4311 = vmatprep.subr.bf16.mxu0 %v7123_v42  ;;  %4352 = vmatprep.subr.bf16.mxu1 %v7125_v43  ;;  %v8487_v42 = vld [vmem:[#allocation50_spill] sm:$0xff]  ;;  %v8488_v43 = vld [vmem:[#allocation51_spill] sm:$0xff] }
 0x397   :  { %4312 = vmatpush1.bf16.msra.mxu0 %v7129_v49  ;;  %4353 = vmatpush1.bf16.msra.mxu1 %v7131_v50  ;;  %v8489_v49 = vld [vmem:[#allocation52_spill] sm:$0xff]  ;;  %v8490_v50 = vld [vmem:[#allocation53_spill] sm:$0xff] }
 0x398   :  { %4313 = vmatprep.subr.bf16.mxu0 %v7135_v24  ;;  %4354 = vmatprep.subr.bf16.mxu1 %v7137_v27  ;;  %v8491_v24 = vld [vmem:[#allocation54_spill] sm:$0xff]  ;;  %v8492_v27 = vld [vmem:[#allocation55_spill] sm:$0xff] }
 0x39b   :  { %4314 = vmatpush1.bf16.msra.mxu0 %v7141_v15  ;;  %4355 = vmatpush1.bf16.msra.mxu1 %v7143_v59  ;;  %v8493_v15 = vld [vmem:[#allocation56_spill] sm:$0xff]  ;;  %v8494_v59 = vld [vmem:[#allocation57_spill] sm:$0xff] }
 0x39c   :  { %4315 = vmatprep.subr.bf16.mxu0 %v8484_v36  ;;  %4356 = vmatprep.subr.bf16.mxu1 %v8485_v39  ;;  %v8495_v36 = vld [vmem:[#allocation58_spill] sm:$0xff]  ;;  %v8496_v39 = vld [vmem:[#allocation59_spill] sm:$0xff] }
 0x39f   :  { %4316 = vmatpush1.bf16.msra.mxu0 %v8486_v40  ;;  %4357 = vmatpush1.bf16.msra.mxu1 %v8487_v42  ;;  %v8497_v40 = vld [vmem:[#allocation60_spill] sm:$0xff]  ;;  %v8498_v42 = vld [vmem:[#allocation61_spill] sm:$0xff] }
 0x3a0   :  { %4317 = vmatprep.subr.bf16.mxu0 %v8488_v43  ;;  %4358 = vmatprep.subr.bf16.mxu1 %v8489_v49  ;;  %v8499_v43 = vld [vmem:[#allocation62_spill] sm:$0xff]  ;;  %v8500_v49 = vld [vmem:[#allocation63_spill] sm:$0xff] }
 0x3a3   :  { %4318 = vmatpush1.bf16.msra.mxu0 %v8490_v50  ;;  %4359 = vmatpush1.bf16.msra.mxu1 %v8491_v24  ;;  %v8501_v50 = vld [vmem:[#allocation64_spill] sm:$0xff]  ;;  %v8502_v24 = vld [vmem:[#allocation65_spill] sm:$0xff] }
 0x3a4   :  { %4319 = vmatprep.subr.bf16.mxu0 %v8492_v27  ;;  %4360 = vmatprep.subr.bf16.mxu1 %v8493_v15  ;;  %v8503_v27 = vld [vmem:[#allocation66_spill] sm:$0xff]  ;;  %v8504_v15 = vld [vmem:[#allocation67_spill] sm:$0xff] }
 0x3a7   :  { %4320 = vmatpush2.bf16.msra.mxu0 %v8494_v59  ;;  %4361 = vmatpush2.bf16.msra.mxu1 %v8495_v36  ;;  %v8505_v59 = vld [vmem:[#allocation68_spill] sm:$0xff]  ;;  %v8506_v36 = vld [vmem:[#allocation69_spill] sm:$0xff] }
 0x3a8   :  { %4321 = vmatprep.subr.bf16.mxu0 %v8496_v39  ;;  %4362 = vmatprep.subr.bf16.mxu1 %v8497_v40  ;;  %v8507_v39 = vld [vmem:[#allocation70_spill] sm:$0xff]  ;;  %v8508_v40 = vld [vmem:[#allocation71_spill] sm:$0xff] }
 0x3ab   :  { %4322 = vmatpush2.bf16.msra.mxu0 %v8498_v42  ;;  %4363 = vmatpush2.bf16.msra.mxu1 %v8499_v43  ;;  %v8509_v42 = vld [vmem:[#allocation72_spill] sm:$0xff]  ;;  %v8510_v43 = vld [vmem:[#allocation73_spill] sm:$0xff] }
 0x3ac   :  { %4323 = vmatprep.subr.bf16.mxu0 %v8500_v49  ;;  %4364 = vmatprep.subr.bf16.mxu1 %v8501_v50  ;;  %v8511_v49 = vld [vmem:[#allocation74_spill] sm:$0xff]  ;;  %v8512_v50 = vld [vmem:[#allocation75_spill] sm:$0xff] }
 0x3af   :  { %4324 = vmatpush2.bf16.msra.mxu0 %v8502_v24  ;;  %4365 = vmatpush2.bf16.msra.mxu1 %v8503_v27  ;;  %v8513_v24 = vld [vmem:[#allocation76_spill] sm:$0xff]  ;;  %v8514_v27 = vld [vmem:[#allocation77_spill] sm:$0xff] }
 0x3b0   :  { %4325 = vmatprep.subr.bf16.mxu0 %v8504_v15  ;;  %4366 = vmatprep.subr.bf16.mxu1 %v8505_v59  ;;  %v8515_v15 = vld [vmem:[#allocation78_spill] sm:$0xff]  ;;  %v8516_v59 = vld [vmem:[#allocation79_spill] sm:$0xff] }
 0x3b3   :  { %4326 = vmatpush2.bf16.msra.mxu0 %v8506_v36  ;;  %4367 = vmatpush2.bf16.msra.mxu1 %v8507_v39  ;;  %v8517_v36 = vld [vmem:[#allocation80_spill] sm:$0xff]  ;;  %v8518_v39 = vld [vmem:[#allocation81_spill] sm:$0xff] }
 0x3b4   :  { %4327 = vmatprep.subr.bf16.mxu0 %v8508_v40  ;;  %4368 = vmatprep.subr.bf16.mxu1 %v8509_v42  ;;  %v8519_v40 = vld [vmem:[#allocation82_spill] sm:$0xff]  ;;  %v8520_v42 = vld [vmem:[#allocation83_spill] sm:$0xff] }
 0x3b7   :  { %4328 = vmatpush2.bf16.msra.mxu0 %v8510_v43  ;;  %4369 = vmatpush2.bf16.msra.mxu1 %v8511_v49  ;;  %v8521_v43 = vld [vmem:[#allocation84_spill] sm:$0xff]  ;;  %v8522_v49 = vld [vmem:[#allocation85_spill] sm:$0xff] }
 0x3b8   :  { %4329 = vmatprep.subr.bf16.mxu0 %v8512_v50  ;;  %4370 = vmatprep.subr.bf16.mxu1 %v8513_v24  ;;  %v8523_v50 = vld [vmem:[#allocation86_spill] sm:$0xff]  ;;  %v8524_v24 = vld [vmem:[#allocation87_spill] sm:$0xff] }
 0x3bb   :  { %4330 = vmatpush2.bf16.msra.mxu0 %v8514_v27  ;;  %4371 = vmatpush2.bf16.msra.mxu1 %v8515_v15  ;;  %v8525_v27 = vld [vmem:[#allocation88_spill] sm:$0xff] }
 0x3bc   :  { %4331 = vmatprep.subr.bf16.mxu0 %v8516_v59  ;;  %4372 = vmatprep.subr.bf16.mxu1 %v8517_v36 }
 0x3bf   :  { %4332 = vmatpush2.bf16.msra.mxu0 %v8518_v39  ;;  %4373 = vmatpush2.bf16.msra.mxu1 %v8519_v40 }
 0x3c0   :  { %4333 = vmatprep.subr.bf16.mxu0 %v8520_v42  ;;  %4374 = vmatprep.subr.bf16.mxu1 %v8521_v43  ;;  %v8526_v43 = vld [vmem:[#allocation21_spill] sm:$0xff] }
 0x3c3   :  { %4334 = vmatpush2.bf16.msra.mxu0 %v8522_v49  ;;  %4375 = vmatpush2.bf16.msra.mxu1 %v8523_v50  ;;  %v8527_v49 = vld [vmem:[#allocation22_spill] sm:$0xff] }
 0x3c4   :  { %4385 = vmatprep.subr.bf16.mxu0 %v8524_v24  ;;  %4426 = vmatprep.subr.bf16.mxu1 %v8525_v27 }
 0x406   :  { %v4056_v15 = vpop.f32.mrf.mxu0  ;;  %v4097_v59 = vpop.f32.mrf.mxu1 }
 0x407   :  { %v4194_v55 = vrot.slane %v4056_v15, 7  ;;  %v4196_v42 = vrot.slane %v4097_v59, 7 }
 0x408   :  { %v4058_v35 = vpop.f32.mrf.mxu0  ;;  %v4099_v36 = vpop.f32.mrf.mxu1 }
 0x409   :  { %v4195_v31 = vrot.slane %v4058_v35, 7  ;;  %v4210_v20 = vadd.f32 %v4194_v55, %v8526_v43  ;;  %v4212_v14 = vadd.f32 %v4196_v42, %v8527_v49  ;;  %v4197_v50 = vrot.slane %v4099_v36, 7 }
 0x40a   :  { %v4060_v34 = vpop.f32.mrf.mxu0  ;;  %v4101_v39 = vpop.f32.mrf.mxu1 }
 0x40b   :  { %v4211_v24 = vadd.f32 %v4195_v31, %v8528_v13  ;;  %v5808_v3 = vmul.f32 -1.442695, %v4210_v20  ;;  %v5810_v27 = vmul.f32 -1.442695, %v4212_v14  ;;  %v4213_v33 = vadd.f32 %v4197_v50, %v8529_v2 }
 0x40c   :  { %v4061_v9 = vpop.f32.mrf.mxu0  ;;  %v4102_v40 = vpop.f32.mrf.mxu1 }
 0x40d   :  { %v5809_v8 = vmul.f32 -1.442695, %v4211_v24  ;;  %6605 = vpow2.f32 %v5808_v3  ;;  %v5811_v34 = vmul.f32 -1.442695, %v4213_v33 }
 0x40e   :  { %6607 = vpow2.f32 %v5810_v27 }
 0x40f   :  { %6609 = vpow2.f32 %v5809_v8 }
 0x410   :  { %6611 = vpow2.f32 %v5811_v34 }
 0x41a   :  { %v6606_v9 = vpop.eup %6605 }
 0x41b   :  { %v6608_v39 = vpop.eup %6607  ;;  %v4224_v40 = vadd.f32 1.0, %v6606_v9 }
 0x41c   :  { %v6610_v35 = vpop.eup %6609  ;;  %v4236_v55 = vadd.f32 1.0, %v6608_v39 }
 0x41d   :  { %v6612_v15 = vpop.eup %6611  ;;  %v4225_v42 = vadd.f32 1.0, %v6610_v35  ;;  %6613 = vrcp.f32 %v4224_v40 }
 0x41e   :  { %6615 = vrcp.f32 %v4236_v55  ;;  %v4237_v31 = vadd.f32 1.0, %v6612_v15 }
 0x41f   :  { %6617 = vrcp.f32 %v4225_v42  ;;  %v4258_v42 = vrot.slane %v7590_v21, 7 }
 0x446   :  { %v4138_v59 = vpop.f32.mrf.mxu0  ;;  %v4179_v36 = vpop.f32.mrf.mxu1 }
 0x447   :  { %v4198_v20 = vrot.slane %v4138_v59, 7  ;;  %v4200_v14 = vrot.slane %v4179_v36, 7  ;;  %v6614_v36 = vpop.eup %6613 }
 0x448   :  { %v4140_v50 = vpop.f32.mrf.mxu0  ;;  %v4181_v3 = vpop.f32.mrf.mxu1 }
 0x449   :  { %v4214_v33 = vadd.f32 %v4198_v20, %v7577_v48  ;;  %v4216_v8 = vadd.f32 %v4200_v14, %v7580_v4  ;;  %v4199_v24 = vrot.slane %v4140_v50, 7  ;;  %v4201_v27 = vrot.slane %v4181_v3, 7  ;;  %v6616_v20 = vpop.eup %6615 }
 0x44a   :  { %v4142_v34 = vpop.f32.mrf.mxu0  ;;  %v4183_v9 = vpop.f32.mrf.mxu1 }
 0x44b   :  { %6619 = vtanh.f32 %v4214_v33  ;;  %v5812_v39 = vmul.f32 -1.442695, %v4216_v8  ;;  %v4215_v35 = vadd.f32 %v4199_v24, %v7582_v58  ;;  %v4217_v40 = vadd.f32 %v4201_v27, %v7584_v56  ;;  %v6618_v14 = vpop.eup %6617 }
 0x44c   :  { %6621 = vrcp.f32 %v4237_v31  ;;  %v4143_v55 = vpop.f32.mrf.mxu0  ;;  %v4184_v15 = vpop.f32.mrf.mxu1  ;;  %v4262_v33 = vmul.f32 %v6616_v20, %v4258_v42  ;;  %v4259_v24 = vrot.slane %v7593_v18, 7 }
 0x44d   :  { %6623 = vpow2.f32 %v5812_v39  ;;  %v5813_v59 = vmul.f32 -1.442695, %v4217_v40 }
 0x44e   :  { %6625 = vtanh.f32 %v4215_v35 }
 0x44f   :  { %6627 = vpow2.f32 %v5813_v59 }
 0x458   :  { %v6620_v50 = vpop.eup %6619 }
 0x459   :  { %v6622_v3 = vpop.eup %6621  ;;  %v4264_v8 = vmul.f32 %v6620_v50, %v6614_v36 }
 0x45a   :  { %v6624_v34 = vpop.eup %6623  ;;  %v4263_v40 = vmul.f32 %v6622_v3, %v4259_v24 }
 0x45b   :  { %v6626_v27 = vpop.eup %6625  ;;  %v7752_v31 = vadd.f32 %v4264_v8, %v4262_v33  ;;  %v4250_v9 = vadd.f32 1.0, %v6624_v34 }
 0x45c   :  { %v6628_v39 = vpop.eup %6627  ;;  %v4265_v35 = vmul.f32 %v6626_v27, %v6618_v14 }
 0x45d   :  { %6629 = vtanh.f32 %v7752_v31  ;;  %v4251_v55 = vadd.f32 1.0, %v6628_v39  ;;  %v8531_v39 = vld [vmem:[#allocation97_spill] sm:$0xff] }
 0x45e   :  { %6631 = vrcp.f32 %v4250_v9  ;;  %v7755_v15 = vadd.f32 %v4265_v35, %v4263_v40  ;;  %v8530_v9 = vld [vmem:[#allocation96_spill] sm:$0xff]  ;;  %v8532_v40 = vld [vmem:[#allocation98_spill] sm:$0xff]  ;;  %v8533_v35 = vld [vmem:[#allocation99_spill] sm:$0xff] }
 0x45f   :  { %6633 = vrcp.f32 %v4251_v55  ;;  %v8534_v55 = vld [vmem:[#allocation100_spill] sm:$0xff] }
 0x460   :  { %6635 = vtanh.f32 %v7755_v15 }
 0x46a   :  { %v6630_v21 = vpop.eup %6629 }
 0x46b   :  { %v6632_v59 = vpop.eup %6631 }
 0x46c   :  { %v6634_v36 = vpop.eup %6633  ;;  %v4270_v18 = vmul.f32 %v6632_v59, %v6630_v21  ;;  %v8535_v21 = vld [vmem:[#allocation101_spill] sm:$0xff]  ;;  %v8536_v59 = vld [vmem:[#allocation102_spill] sm:$0xff] }
 0x46d   :  { %v6636_v20 = vpop.eup %6635 }
 0x46e   :  { %v4271_v42 = vmul.f32 %v6636_v20, %v6634_v36  ;;  %v4293_v50 = vpack.c.bf16 %v4270_v18, %v4270_v18  ;;  %v8537_v36 = vld [vmem:[#allocation103_spill] sm:$0xff]  ;;  %v8539_v20 = vld [vmem:[#allocation105_spill] sm:$0xff] }
 0x470   :  { %v4294_v33 = vpack.c.bf16 %v4271_v42, %v4271_v42  ;;  %v4274_v8 = vcombine.low %v4270_v18, %v4271_v42  ;;  %v7759_v34 = vshrl.u32 %v4293_v50, 16  ;;  %v8538_v18 = vld [vmem:[#allocation104_spill] sm:$0xff]  ;;  %v8540_v42 = vld [vmem:[#allocation106_spill] sm:$0xff]  ;;  %v8541_v50 = vld [vmem:[#allocation107_spill] sm:$0xff] }
 0x472   :  { %v4299_v3 = vshrl.u32 %v4294_v33, 16  ;;  %v4281_v14 = vrot.slane %v4274_v8, %v7597_v5  ;;  %v8542_v33 = vld [vmem:[#allocation108_spill] sm:$0xff]  ;;  %v8543_v8 = vld [vmem:[#allocation109_spill] sm:$0xff] }
 0x474   :  { %4335 = vmatprep.mubr.bf16.mxu0 %v4299_v3  ;;  %4376 = vmatprep.mubr.bf16.mxu1 %v4299_v3  ;;  %v4282_v24 = vcombine.high %v4281_v14, %v4281_v14  ;;  %v8545_v14 = vld [vmem:[#allocation111_spill] sm:$0xff] }
 0x475   :  { %4336 = vmatmul.mubr.bf16.vlgmr.msra.gmra.mxu0 %v7759_v34  ;;  %4377 = vmatmul.mubr.bf16.vlgmr.msra.gmra.mxu1 %v7759_v34 }
 0x476   :  { %v4289_v27 = vrot.slane %v4282_v24, %v7597_v5  ;;  %4386 = vmatpush1.bf16.msra.mxu0 %v8435_v17  ;;  %4427 = vmatpush1.bf16.msra.mxu1 %v8436_v0  ;;  %v8546_v24 = vld [vmem:[#allocation112_spill] sm:$0xff] }
 0x477   :  { %4417 = vmatprep.mubr.bf16.mxu0 %v4299_v3  ;;  %4458 = vmatprep.mubr.bf16.mxu1 %v4299_v3  ;;  %v8544_v3 = vld [vmem:[#allocation110_spill] sm:$0xff] }
 0x478   :  { %4292 = vst.msk [vmem:[#allocation2 + $0x1] ss:$4 sm:$0x3] %vm7603_vm0, %v4289_v27  ;;  %4387 = vmatprep.subr.bf16.mxu0 %v8437_v46  ;;  %4428 = vmatprep.subr.bf16.mxu1 %v8438_v12  ;;  %v8547_v27 = vld [vmem:[#allocation113_spill] sm:$0xff] }
 0x47a   :  { %4388 = vmatpush1.bf16.msra.mxu0 %v8439_v16  ;;  %4429 = vmatpush1.bf16.msra.mxu1 %v7291_v41 }
 0x47b   :  { %4389 = vmatprep.subr.bf16.mxu0 %v8440_v45  ;;  %4430 = vmatprep.subr.bf16.mxu1 %v8441_v6 }
 0x47e   :  { %4390 = vmatpush1.bf16.msra.mxu0 %v8530_v9  ;;  %4431 = vmatpush1.bf16.msra.mxu1 %v8531_v39 }
 0x47f   :  { %4391 = vmatprep.subr.bf16.mxu0 %v8532_v40  ;;  %4432 = vmatprep.subr.bf16.mxu1 %v8533_v35 }
 0x482   :  { %4392 = vmatpush1.bf16.msra.mxu0 %v8534_v55  ;;  %4433 = vmatpush1.bf16.msra.mxu1 %v8535_v21 }
 0x483   :  { %4393 = vmatprep.subr.bf16.mxu0 %v8536_v59  ;;  %4434 = vmatprep.subr.bf16.mxu1 %v8537_v36  ;;  %v8548_v36 = vld [vmem:[#allocation114_spill] sm:$0xff] }
 0x486   :  { %4394 = vmatpush1.bf16.msra.mxu0 %v8538_v18  ;;  %4435 = vmatpush1.bf16.msra.mxu1 %v8539_v20  ;;  %v8549_v18 = vld [vmem:[#allocation115_spill] sm:$0xff]  ;;  %v8550_v20 = vld [vmem:[#allocation116_spill] sm:$0xff] }
 0x487   :  { %4395 = vmatprep.subr.bf16.mxu0 %v8540_v42  ;;  %4436 = vmatprep.subr.bf16.mxu1 %v8541_v50  ;;  %v8551_v42 = vld [vmem:[#allocation117_spill] sm:$0xff]  ;;  %v8552_v50 = vld [vmem:[#allocation118_spill] sm:$0xff] }
 0x48a   :  { %4396 = vmatpush1.bf16.msra.mxu0 %v8542_v33  ;;  %4437 = vmatpush1.bf16.msra.mxu1 %v8543_v8  ;;  %v8553_v33 = vld [vmem:[#allocation119_spill] sm:$0xff]  ;;  %v8554_v8 = vld [vmem:[#allocation120_spill] sm:$0xff] }
 0x48b   :  { %4397 = vmatprep.subr.bf16.mxu0 %v8544_v3  ;;  %4438 = vmatprep.subr.bf16.mxu1 %v8545_v14  ;;  %v8555_v3 = vld [vmem:[#allocation121_spill] sm:$0xff]  ;;  %v8556_v14 = vld [vmem:[#allocation122_spill] sm:$0xff] }
 0x48e   :  { %4398 = vmatpush1.bf16.msra.mxu0 %v8546_v24  ;;  %4439 = vmatpush1.bf16.msra.mxu1 %v8547_v27  ;;  %v8557_v24 = vld [vmem:[#allocation123_spill] sm:$0xff]  ;;  %v8558_v27 = vld [vmem:[#allocation124_spill] sm:$0xff] }
 0x48f   :  { %4399 = vmatprep.subr.bf16.mxu0 %v8548_v36  ;;  %4440 = vmatprep.subr.bf16.mxu1 %v8549_v18 }
 0x492   :  { %4400 = vmatpush1.bf16.msra.mxu0 %v8550_v20  ;;  %4441 = vmatpush1.bf16.msra.mxu1 %v8551_v42  ;;  %v8559_v42 = vld [vmem:[#allocation128_spill] sm:$0xff] }
 0x493   :  { %4401 = vmatprep.subr.bf16.mxu0 %v8552_v50  ;;  %4442 = vmatprep.subr.bf16.mxu1 %v8553_v33  ;;  %v8560_v50 = vld [vmem:[#allocation129_spill] sm:$0xff] }
 0x496   :  { %4402 = vmatpush2.bf16.msra.mxu0 %v8554_v8  ;;  %4443 = vmatpush2.bf16.msra.mxu1 %v8555_v3 }
 0x497   :  { %4403 = vmatprep.subr.bf16.mxu0 %v8556_v14  ;;  %4444 = vmatprep.subr.bf16.mxu1 %v8557_v24 }
 0x49a   :  { %4404 = vmatpush2.bf16.msra.mxu0 %v8558_v27  ;;  %4445 = vmatpush2.bf16.msra.mxu1 %v8471_v22 }
 0x49b   :  { %4405 = vmatprep.subr.bf16.mxu0 %v8472_v10  ;;  %4446 = vmatprep.subr.bf16.mxu1 %v8473_v19 }
 0x49e   :  { %4406 = vmatpush2.bf16.msra.mxu0 %v8559_v42  ;;  %4447 = vmatpush2.bf16.msra.mxu1 %v8560_v50 }
 0x49f   :  { %4407 = vmatprep.subr.bf16.mxu0 %v8476_v7  ;;  %4448 = vmatprep.subr.bf16.mxu1 %v8477_v25 }
 0x4a2   :  { %4408 = vmatpush2.bf16.msra.mxu0 %v8478_v63  ;;  %4449 = vmatpush2.bf16.msra.mxu1 %v8479_v60 }
 0x4a3   :  { %4409 = vmatprep.subr.bf16.mxu0 %v8480_v30  ;;  %4450 = vmatprep.subr.bf16.mxu1 %v8481_v23 }
 0x4a6   :  { %4410 = vmatpush2.bf16.msra.mxu0 %v7425_v29  ;;  %4451 = vmatpush2.bf16.msra.mxu1 %v7427_v38 }
 0x4a7   :  { %4411 = vmatprep.subr.bf16.mxu0 %v7431_v28  ;;  %4452 = vmatprep.subr.bf16.mxu1 %v8482_v37 }
 0x4aa   :  { %4412 = vmatpush2.bf16.msra.mxu0 %v8483_v53  ;;  %4453 = vmatpush2.bf16.msra.mxu1 %v7439_v32 }
 0x4ab   :  { %4413 = vmatprep.subr.bf16.mxu0 %v7443_v26  ;;  %4454 = vmatprep.subr.bf16.mxu1 %v7445_v47  ;;  %v8561_v47 = vld [vmem:[#allocation23_spill] sm:$0xff]  ;;  %v8570_v26 = vld [vmem:[#allocation34_spill] sm:$0xff] }
 0x4ae   :  { %4414 = vmatpush2.bf16.msra.mxu0 %v7449_v57  ;;  %4455 = vmatpush2.bf16.msra.mxu1 %v7451_v54  ;;  %v8562_v57 = vld [vmem:[#allocation24_spill] sm:$0xff]  ;;  %v8563_v54 = vld [vmem:[#allocation25_spill] sm:$0xff] }
 0x4af   :  { %4415 = vmatprep.subr.bf16.mxu0 %v7455_v44  ;;  %4456 = vmatprep.subr.bf16.mxu1 %v7457_v11  ;;  %v8564_v44 = vld [vmem:[#allocation26_spill] sm:$0xff]  ;;  %v8565_v11 = vld [vmem:[#allocation27_spill] sm:$0xff] }
 0x4b2   :  { %4416 = vmatpush2.bf16.msra.mxu0 %v7461_v1  ;;  %4457 = vmatpush2.bf16.msra.mxu1 %v7463_v51  ;;  %v8566_v1 = vld [vmem:[#allocation28_spill] sm:$0xff]  ;;  %v8567_v51 = vld [vmem:[#allocation29_spill] sm:$0xff] }
 0x4b3   :  { %4582 = vmatprep.subr.bf16.mxu0 %v7067_v61  ;;  %4623 = vmatprep.subr.bf16.mxu1 %v7069_v62  ;;  %v8568_v61 = vld [vmem:[#allocation30_spill] sm:$0xff]  ;;  %v8569_v62 = vld [vmem:[#allocation33_spill] sm:$0xff] }
 0x4b5   :  { %4418 = vmatmul.mubr.bf16.vlgmr.msra.gmra.mxu0 %v7759_v34  ;;  %4459 = vmatmul.mubr.bf16.vlgmr.msra.gmra.mxu1 %v7759_v34  ;;  %v8571_v34 = vld [vmem:[#allocation35_spill] sm:$0xff] }
 0x4b6   :  { %4583 = vmatpush1.bf16.msra.mxu0 %v8561_v47  ;;  %4624 = vmatpush1.bf16.msra.mxu1 %v8562_v57  ;;  %v8572_v47 = vld [vmem:[#allocation36_spill] sm:$0xff]  ;;  %v8573_v57 = vld [vmem:[#allocation37_spill] sm:$0xff] }
 0x4b7   :  { %4584 = vmatprep.subr.bf16.mxu0 %v8563_v54  ;;  %4625 = vmatprep.subr.bf16.mxu1 %v8564_v44  ;;  %v8574_v54 = vld [vmem:[#allocation38_spill] sm:$0xff]  ;;  %v8575_v44 = vld [vmem:[#allocation39_spill] sm:$0xff] }
 0x4ba   :  { %4585 = vmatpush1.bf16.msra.mxu0 %v8565_v11  ;;  %4626 = vmatpush1.bf16.msra.mxu1 %v8566_v1  ;;  %v8576_v11 = vld [vmem:[#allocation40_spill] sm:$0xff]  ;;  %v8577_v1 = vld [vmem:[#allocation41_spill] sm:$0xff] }
 0x4bb   :  { %4586 = vmatprep.subr.bf16.mxu0 %v8567_v51  ;;  %4627 = vmatprep.subr.bf16.mxu1 %v8568_v61  ;;  %v8578_v51 = vld [vmem:[#allocation42_spill] sm:$0xff]  ;;  %v8579_v61 = vld [vmem:[#allocation43_spill] sm:$0xff] }
 0x4be   :  { %4587 = vmatpush1.bf16.msra.mxu0 %v8569_v62  ;;  %4628 = vmatpush1.bf16.msra.mxu1 %v8570_v26  ;;  %v8580_v62 = vld [vmem:[#allocation44_spill] sm:$0xff]  ;;  %v8581_v26 = vld [vmem:[#allocation45_spill] sm:$0xff] }
 0x4bf   :  { %4588 = vmatprep.subr.bf16.mxu0 %v8571_v34  ;;  %4629 = vmatprep.subr.bf16.mxu1 %v8572_v47  ;;  %v8582_v34 = vld [vmem:[#allocation46_spill] sm:$0xff]  ;;  %v8583_v47 = vld [vmem:[#allocation47_spill] sm:$0xff] }
 0x4c2   :  { %4589 = vmatpush1.bf16.msra.mxu0 %v8573_v57  ;;  %4630 = vmatpush1.bf16.msra.mxu1 %v8574_v54  ;;  %v8584_v57 = vld [vmem:[#allocation48_spill] sm:$0xff]  ;;  %v8585_v54 = vld [vmem:[#allocation49_spill] sm:$0xff] }
 0x4c3   :  { %4590 = vmatprep.subr.bf16.mxu0 %v8575_v44  ;;  %4631 = vmatprep.subr.bf16.mxu1 %v8576_v11  ;;  %v8586_v44 = vld [vmem:[#allocation50_spill] sm:$0xff]  ;;  %v8587_v11 = vld [vmem:[#allocation51_spill] sm:$0xff] }
 0x4c6   :  { %4591 = vmatpush1.bf16.msra.mxu0 %v8577_v1  ;;  %4632 = vmatpush1.bf16.msra.mxu1 %v8578_v51  ;;  %v8588_v1 = vld [vmem:[#allocation52_spill] sm:$0xff]  ;;  %v8589_v51 = vld [vmem:[#allocation53_spill] sm:$0xff] }
 0x4c7   :  { %4592 = vmatprep.subr.bf16.mxu0 %v8579_v61  ;;  %4633 = vmatprep.subr.bf16.mxu1 %v8580_v62  ;;  %v8590_v61 = vld [vmem:[#allocation54_spill] sm:$0xff]  ;;  %v8591_v62 = vld [vmem:[#allocation55_spill] sm:$0xff] }
 0x4ca   :  { %4593 = vmatpush1.bf16.msra.mxu0 %v8581_v26  ;;  %4634 = vmatpush1.bf16.msra.mxu1 %v8582_v34  ;;  %v8592_v26 = vld [vmem:[#allocation56_spill] sm:$0xff]  ;;  %v8593_v34 = vld [vmem:[#allocation57_spill] sm:$0xff] }
 0x4cb   :  { %4594 = vmatprep.subr.bf16.mxu0 %v8583_v47  ;;  %4635 = vmatprep.subr.bf16.mxu1 %v8584_v57  ;;  %v8594_v47 = vld [vmem:[#allocation58_spill] sm:$0xff]  ;;  %v8595_v57 = vld [vmem:[#allocation59_spill] sm:$0xff] }
 0x4ce   :  { %4595 = vmatpush1.bf16.msra.mxu0 %v8585_v54  ;;  %4636 = vmatpush1.bf16.msra.mxu1 %v8586_v44  ;;  %v8596_v54 = vld [vmem:[#allocation60_spill] sm:$0xff]  ;;  %v8597_v44 = vld [vmem:[#allocation61_spill] sm:$0xff] }
 0x4cf   :  { %4596 = vmatprep.subr.bf16.mxu0 %v8587_v11  ;;  %4637 = vmatprep.subr.bf16.mxu1 %v8588_v1  ;;  %v8598_v11 = vld [vmem:[#allocation62_spill] sm:$0xff]  ;;  %v8599_v1 = vld [vmem:[#allocation63_spill] sm:$0xff] }
 0x4d2   :  { %4597 = vmatpush1.bf16.msra.mxu0 %v8589_v51  ;;  %4638 = vmatpush1.bf16.msra.mxu1 %v8590_v61  ;;  %v8600_v51 = vld [vmem:[#allocation64_spill] sm:$0xff]  ;;  %v8601_v61 = vld [vmem:[#allocation65_spill] sm:$0xff] }
 0x4d3   :  { %4598 = vmatprep.subr.bf16.mxu0 %v8591_v62  ;;  %4639 = vmatprep.subr.bf16.mxu1 %v8592_v26  ;;  %v8602_v62 = vld [vmem:[#allocation66_spill] sm:$0xff]  ;;  %v8603_v26 = vld [vmem:[#allocation67_spill] sm:$0xff] }
 0x4d6   :  { %4599 = vmatpush2.bf16.msra.mxu0 %v8593_v34  ;;  %4640 = vmatpush2.bf16.msra.mxu1 %v8594_v47  ;;  %v8604_v34 = vld [vmem:[#allocation68_spill] sm:$0xff]  ;;  %v8605_v47 = vld [vmem:[#allocation69_spill] sm:$0xff] }
 0x4d7   :  { %4600 = vmatprep.subr.bf16.mxu0 %v8595_v57  ;;  %4641 = vmatprep.subr.bf16.mxu1 %v8596_v54  ;;  %v8606_v57 = vld [vmem:[#allocation70_spill] sm:$0xff]  ;;  %v8607_v54 = vld [vmem:[#allocation71_spill] sm:$0xff] }
 0x4da   :  { %4601 = vmatpush2.bf16.msra.mxu0 %v8597_v44  ;;  %4642 = vmatpush2.bf16.msra.mxu1 %v8598_v11  ;;  %v8608_v44 = vld [vmem:[#allocation72_spill] sm:$0xff]  ;;  %v8609_v11 = vld [vmem:[#allocation73_spill] sm:$0xff] }
 0x4db   :  { %4602 = vmatprep.subr.bf16.mxu0 %v8599_v1  ;;  %4643 = vmatprep.subr.bf16.mxu1 %v8600_v51  ;;  %v8610_v1 = vld [vmem:[#allocation74_spill] sm:$0xff]  ;;  %v8611_v51 = vld [vmem:[#allocation75_spill] sm:$0xff] }
 0x4de   :  { %4603 = vmatpush2.bf16.msra.mxu0 %v8601_v61  ;;  %4644 = vmatpush2.bf16.msra.mxu1 %v8602_v62  ;;  %v8612_v61 = vld [vmem:[#allocation76_spill] sm:$0xff]  ;;  %v8613_v62 = vld [vmem:[#allocation77_spill] sm:$0xff] }
 0x4df   :  { %4604 = vmatprep.subr.bf16.mxu0 %v8603_v26  ;;  %4645 = vmatprep.subr.bf16.mxu1 %v8604_v34  ;;  %v8614_v26 = vld [vmem:[#allocation78_spill] sm:$0xff]  ;;  %v8615_v34 = vld [vmem:[#allocation79_spill] sm:$0xff] }
 0x4e2   :  { %4605 = vmatpush2.bf16.msra.mxu0 %v8605_v47  ;;  %4646 = vmatpush2.bf16.msra.mxu1 %v8606_v57  ;;  %v8616_v47 = vld [vmem:[#allocation80_spill] sm:$0xff]  ;;  %v8617_v57 = vld [vmem:[#allocation81_spill] sm:$0xff] }
 0x4e3   :  { %4606 = vmatprep.subr.bf16.mxu0 %v8607_v54  ;;  %4647 = vmatprep.subr.bf16.mxu1 %v8608_v44  ;;  %v8618_v54 = vld [vmem:[#allocation82_spill] sm:$0xff]  ;;  %v8619_v44 = vld [vmem:[#allocation83_spill] sm:$0xff] }
 0x4e6   :  { %4607 = vmatpush2.bf16.msra.mxu0 %v8609_v11  ;;  %4648 = vmatpush2.bf16.msra.mxu1 %v8610_v1  ;;  %v8620_v11 = vld [vmem:[#allocation84_spill] sm:$0xff]  ;;  %v8621_v1 = vld [vmem:[#allocation85_spill] sm:$0xff] }
 0x4e7   :  { %4608 = vmatprep.subr.bf16.mxu0 %v8611_v51  ;;  %4649 = vmatprep.subr.bf16.mxu1 %v8612_v61  ;;  %v8622_v51 = vld [vmem:[#allocation86_spill] sm:$0xff]  ;;  %v8623_v61 = vld [vmem:[#allocation87_spill] sm:$0xff] }
 0x4ea   :  { %4609 = vmatpush2.bf16.msra.mxu0 %v8613_v62  ;;  %4650 = vmatpush2.bf16.msra.mxu1 %v8614_v26  ;;  %v8624_v62 = vld [vmem:[#allocation88_spill] sm:$0xff] }
 0x4eb   :  { %4610 = vmatprep.subr.bf16.mxu0 %v8615_v34  ;;  %4651 = vmatprep.subr.bf16.mxu1 %v8616_v47 }
 0x4ee   :  { %4611 = vmatpush2.bf16.msra.mxu0 %v8617_v57  ;;  %4652 = vmatpush2.bf16.msra.mxu1 %v8618_v54 }
 0x4ef   :  { %4612 = vmatprep.subr.bf16.mxu0 %v8619_v44  ;;  %4653 = vmatprep.subr.bf16.mxu1 %v8620_v11 }
 0x4f2   :  { %4613 = vmatpush2.bf16.msra.mxu0 %v8621_v1  ;;  %4654 = vmatpush2.bf16.msra.mxu1 %v8622_v51 }
 0x4f3   :  { %4664 = vmatprep.subr.bf16.mxu0 %v8623_v61  ;;  %4705 = vmatprep.subr.bf16.mxu1 %v8624_v62 }
 0x535   :  { %v4337_v26 = vpop.f32.mrf.mxu0  ;;  %v4378_v34 = vpop.f32.mrf.mxu1 }
 0x536   :  { %v4475_v28 = vrot.slane %v4337_v26, 6  ;;  %v4477_v44 = vrot.slane %v4378_v34, 6 }
 0x537   :  { %v4339_v32 = vpop.f32.mrf.mxu0  ;;  %v4380_v47 = vpop.f32.mrf.mxu1 }
 0x538   :  { %v4476_v38 = vrot.slane %v4339_v32, 6  ;;  %v4491_v11 = vadd.f32 %v4475_v28, %v8526_v43  ;;  %v4493_v1 = vadd.f32 %v4477_v44, %v8527_v49  ;;  %v4478_v51 = vrot.slane %v4380_v47, 6 }
 0x539   :  { %v4341_v53 = vpop.f32.mrf.mxu0  ;;  %v4382_v57 = vpop.f32.mrf.mxu1 }
 0x53a   :  { %v4492_v61 = vadd.f32 %v4476_v38, %v8528_v13  ;;  %v5814_v29 = vmul.f32 -1.442695, %v4491_v11  ;;  %v5816_v62 = vmul.f32 -1.442695, %v4493_v1  ;;  %v4494_v23 = vadd.f32 %v4478_v51, %v8529_v2 }
 0x53b   :  { %v4342_v37 = vpop.f32.mrf.mxu0  ;;  %v4383_v54 = vpop.f32.mrf.mxu1 }
 0x53c   :  { %v5815_v30 = vmul.f32 -1.442695, %v4492_v61  ;;  %6637 = vpow2.f32 %v5814_v29  ;;  %v5817_v53 = vmul.f32 -1.442695, %v4494_v23 }
 0x53d   :  { %6639 = vpow2.f32 %v5816_v62 }
 0x53e   :  { %6641 = vpow2.f32 %v5815_v30 }
 0x53f   :  { %6643 = vpow2.f32 %v5817_v53 }
 0x549   :  { %v6638_v37 = vpop.eup %6637 }
 0x54a   :  { %v6640_v26 = vpop.eup %6639  ;;  %v4505_v34 = vadd.f32 1.0, %v6638_v37 }
 0x54b   :  { %v6642_v32 = vpop.eup %6641  ;;  %v4517_v28 = vadd.f32 1.0, %v6640_v26 }
 0x54c   :  { %v6644_v57 = vpop.eup %6643  ;;  %v4506_v54 = vadd.f32 1.0, %v6642_v32  ;;  %6645 = vrcp.f32 %v4505_v34 }
 0x54d   :  { %6647 = vrcp.f32 %v4517_v28  ;;  %v4518_v1 = vadd.f32 1.0, %v6644_v57 }
 0x54e   :  { %6649 = vrcp.f32 %v4506_v54  ;;  %v4539_v54 = vrot.slane %v7752_v31, 7 }
 0x575   :  { %v4419_v47 = vpop.f32.mrf.mxu0  ;;  %v4460_v44 = vpop.f32.mrf.mxu1 }
 0x576   :  { %v4479_v38 = vrot.slane %v4419_v47, 6  ;;  %v4481_v11 = vrot.slane %v4460_v44, 6  ;;  %v6646_v44 = vpop.eup %6645 }
 0x577   :  { %v4421_v51 = vpop.f32.mrf.mxu0  ;;  %v4462_v29 = vpop.f32.mrf.mxu1 }
 0x578   :  { %v4495_v23 = vadd.f32 %v4479_v38, %v7577_v48  ;;  %v4497_v30 = vadd.f32 %v4481_v11, %v7580_v4  ;;  %v4480_v61 = vrot.slane %v4421_v51, 6  ;;  %v4482_v62 = vrot.slane %v4462_v29, 6  ;;  %v6648_v38 = vpop.eup %6647 }
 0x579   :  { %v4423_v53 = vpop.f32.mrf.mxu0  ;;  %v4464_v37 = vpop.f32.mrf.mxu1 }
 0x57a   :  { %6651 = vtanh.f32 %v4495_v23  ;;  %v5818_v26 = vmul.f32 -1.442695, %v4497_v30  ;;  %v4496_v32 = vadd.f32 %v4480_v61, %v7582_v58  ;;  %v4498_v34 = vadd.f32 %v4482_v62, %v7584_v56  ;;  %v6650_v11 = vpop.eup %6649 }
 0x57b   :  { %6653 = vrcp.f32 %v4518_v1  ;;  %v4424_v28 = vpop.f32.mrf.mxu0  ;;  %v4465_v57 = vpop.f32.mrf.mxu1  ;;  %v4543_v23 = vmul.f32 %v6648_v38, %v4539_v54  ;;  %v4540_v61 = vrot.slane %v7755_v15, 7 }
 0x57c   :  { %6655 = vpow2.f32 %v5818_v26  ;;  %v5819_v47 = vmul.f32 -1.442695, %v4498_v34 }
 0x57d   :  { %6657 = vtanh.f32 %v4496_v32 }
 0x57e   :  { %6659 = vpow2.f32 %v5819_v47 }
 0x587   :  { %v6652_v51 = vpop.eup %6651 }
 0x588   :  { %v6654_v29 = vpop.eup %6653  ;;  %v4545_v30 = vmul.f32 %v6652_v51, %v6646_v44 }
 0x589   :  { %v6656_v53 = vpop.eup %6655  ;;  %v4544_v34 = vmul.f32 %v6654_v29, %v4540_v61 }
 0x58a   :  { %v6658_v62 = vpop.eup %6657  ;;  %v7906_v1 = vadd.f32 %v4545_v30, %v4543_v23  ;;  %v4531_v37 = vadd.f32 1.0, %v6656_v53 }
 0x58b   :  { %v6660_v26 = vpop.eup %6659  ;;  %v4546_v32 = vmul.f32 %v6658_v62, %v6650_v11 }
 0x58c   :  { %6661 = vtanh.f32 %v7906_v1  ;;  %v4532_v28 = vadd.f32 1.0, %v6660_v26  ;;  %v6544_v26 = vld [vmem:[#allocation9 + $0x30] sm:$0xff]  }
 0x58d   :  { %6663 = vrcp.f32 %v4531_v37  ;;  %v7909_v57 = vadd.f32 %v4546_v32, %v4544_v34  ;;  %v6543_v37 = vld [vmem:[#allocation9 + $0x70] sm:$0xff]   ;;  %v6546_v32 = vld [vmem:[#allocation9 + $0x68] sm:$0xff]  }
 0x58e   :  { %6665 = vrcp.f32 %v4532_v28  ;;  %v6545_v34 = vld [vmem:[#allocation9 + $0xb0] sm:$0xff]   ;;  %v6547_v28 = vld [vmem:[#allocation9 + $0x28] sm:$0xff]  }
 0x58f   :  { %6667 = vtanh.f32 %v7909_v57 }
 0x599   :  { %v6662_v31 = vpop.eup %6661 }
 0x59a   :  { %v6664_v47 = vpop.eup %6663 }
 0x59b   :  { %v6666_v44 = vpop.eup %6665  ;;  %v4551_v15 = vmul.f32 %v6664_v47, %v6662_v31  ;;  %v6548_v31 = vld [vmem:[#allocation9 + $0xa8] sm:$0xff]   ;;  %v6549_v47 = vld [vmem:[#allocation9 + $0x60] sm:$0xff]  }
 0x59c   :  { %v6668_v38 = vpop.eup %6667 }
 0x59d   :  { %v4552_v54 = vmul.f32 %v6668_v38, %v6666_v44  ;;  %v4574_v51 = vpack.c.bf16 %v4551_v15, %v4551_v15  ;;  %v6550_v44 = vld [vmem:[#allocation9 + $0x20] sm:$0xff]   ;;  %v6552_v38 = vld [vmem:[#allocation9 + $0x58] sm:$0xff]  }
 0x59f   :  { %v4575_v23 = vpack.c.bf16 %v4552_v54, %v4552_v54  ;;  %v4555_v30 = vcombine.low %v4551_v15, %v4552_v54  ;;  %v7913_v53 = vrot.slane %v4574_v51, 1  ;;  %v6551_v15 = vld [vmem:[#allocation9 + $0xa0] sm:$0xff]   ;;  %v6553_v54 = vld [vmem:[#allocation9 + $0x18] sm:$0xff]  }
 0x5a0   :  { %v6554_v51 = vld [vmem:[#allocation9 + $0x98] sm:$0xff]  }
 0x5a1   :  { %v4579_v29 = vrot.slane %v4575_v23, 1  ;;  %v4562_v11 = vrot.slane %v4555_v30, %v7597_v5  ;;  %v6555_v23 = vld [vmem:[#allocation9 + $0x50] sm:$0xff]  }
 0x5a2   :  { %v6556_v30 = vld [vmem:[#allocation9 + $0x10] sm:$0xff]  }
 0x5a3   :  { %4614 = vmatprep.mubr.bf16.mxu0 %v4579_v29  ;;  %4655 = vmatprep.mubr.bf16.mxu1 %v4579_v29  ;;  %v4569_v61 = vrot.slane %v4562_v11, %v7597_v5  ;;  %v6558_v11 = vld [vmem:[#allocation9 + $0x48] sm:$0xff]  }
 0x5a4   :  { %4615 = vmatmul.mubr.bf16.vlgmr.msra.gmra.mxu0 %v7913_v53  ;;  %4656 = vmatmul.mubr.bf16.vlgmr.msra.gmra.mxu1 %v7913_v53 }
 0x5a5   :  { %v4570_v62 = vcombine.high %v4569_v61, %v4569_v61  ;;  %4665 = vmatpush1.bf16.msra.mxu0 %v8435_v17  ;;  %4706 = vmatpush1.bf16.msra.mxu1 %v8436_v0  ;;  %v8625_v17 = vld [vmem:[#allocation103_spill] sm:$0xff]  ;;  %v8627_v0 = vld [vmem:[#allocation105_spill] sm:$0xff] }
 0x5a6   :  { %4696 = vmatprep.mubr.bf16.mxu0 %v4579_v29  ;;  %4737 = vmatprep.mubr.bf16.mxu1 %v4579_v29  ;;  %v6557_v29 = vld [vmem:[#allocation9 + $0x90] sm:$0xff]   ;;  %v6560_v61 = vld [vmem:[#allocation9 + $0x88] sm:$0xff]  }
 0x5a7   :  { %4573 = vst.msk [vmem:[#allocation2 + $0x2] ss:$4 sm:$0x3] %vm7603_vm0, %v4570_v62  ;;  %4666 = vmatprep.subr.bf16.mxu0 %v8437_v46  ;;  %4707 = vmatprep.subr.bf16.mxu1 %v8438_v12  ;;  %v8628_v46 = vld [vmem:[#allocation106_spill] sm:$0xff]  ;;  %v8629_v12 = vld [vmem:[#allocation107_spill] sm:$0xff]  ;;  %v6561_v62 = vld [vmem:[#allocation9 + $0x40] sm:$0xff]  }
 0x5a9   :  { %4667 = vmatpush1.bf16.msra.mxu0 %v8439_v16  ;;  %4708 = vmatpush1.bf16.msra.mxu1 %v7291_v41  ;;  %v8626_v41 = vld [vmem:[#allocation104_spill] sm:$0xff] }
 0x5aa   :  { %4668 = vmatprep.subr.bf16.mxu0 %v8440_v45  ;;  %4709 = vmatprep.subr.bf16.mxu1 %v8441_v6  ;;  %v8630_v16 = vld [vmem:[#allocation108_spill] sm:$0xff]  ;;  %v8631_v45 = vld [vmem:[#allocation109_spill] sm:$0xff]  ;;  %v8632_v6 = vld [vmem:[#allocation110_spill] sm:$0xff] }
 0x5ad   :  { %4669 = vmatpush1.bf16.msra.mxu0 %v8530_v9  ;;  %4710 = vmatpush1.bf16.msra.mxu1 %v8531_v39  ;;  %v8633_v9 = vld [vmem:[#allocation111_spill] sm:$0xff]  ;;  %v8634_v39 = vld [vmem:[#allocation112_spill] sm:$0xff] }
 0x5ae   :  { %4670 = vmatprep.subr.bf16.mxu0 %v8532_v40  ;;  %4711 = vmatprep.subr.bf16.mxu1 %v8533_v35  ;;  %v8635_v40 = vld [vmem:[#allocation113_spill] sm:$0xff] }
 0x5af   :  { %v8636_v35 = vld [vmem:[#allocation117_spill] sm:$0xff] }
 0x5b1   :  { %4671 = vmatpush1.bf16.msra.mxu0 %v8534_v55  ;;  %4712 = vmatpush1.bf16.msra.mxu1 %v8535_v21  ;;  %v8637_v55 = vld [vmem:[#allocation118_spill] sm:$0xff] }
 0x5b2   :  { %4672 = vmatprep.subr.bf16.mxu0 %v8536_v59  ;;  %4713 = vmatprep.subr.bf16.mxu1 %v8625_v17  ;;  %v8638_v21 = vld [vmem:[#allocation134_spill] sm:$0xff]  ;;  %v8639_v59 = vld [vmem:[#allocation135_spill] sm:$0xff]  ;;  %v6562_v17 = vld [vmem:[#allocation9] sm:$0xff]  }
 0x5b5   :  { %4673 = vmatpush1.bf16.msra.mxu0 %v8626_v41  ;;  %4714 = vmatpush1.bf16.msra.mxu1 %v8627_v0  ;;  %v6563_v41 = vld [vmem:[#allocation9 + $0x80] sm:$0xff]   ;;  %v4855_v0 = vld [vmem:[%s8027_s2] sm:$0xf]  ;;  %s6892_s2 = smov [#allocation15]  }
 0x5b6   :  { %4674 = vmatprep.subr.bf16.mxu0 %v8628_v46  ;;  %4715 = vmatprep.subr.bf16.mxu1 %v8629_v12  ;;  %v4861_v46 = vpack.c.bf16 %v4855_v0, %v4855_v0  ;;  %s5278_s19 = sshll.u32 %s6892_s2, 4  ;;  %s5279_s19 = int_to_ptr.vmem [resolvable:$true] %s5278_s19 }
 0x5b7   :  { %s6845_s20 = scalar_lea.vmem %s5279_s19, 64  ;;  %p6850_p8 = scmp.lt.s32.totalorder %s5279_s19, %s5279_s19 }
 0x5b8   :  { %p6846_p7 = scmp.ne.s32.totalorder %s5279_s19, %s6845_s20  ;;  %p6851_p9 = scmp.lt.s32.totalorder %s6845_s20, %s6845_s20 }
 0x5b9   :  { %4675 = vmatpush1.bf16.msra.mxu0 %v8630_v16  ;;  %4716 = vmatpush1.bf16.msra.mxu1 %v8631_v45 }
 0x5ba   :  { %4676 = vmatprep.subr.bf16.mxu0 %v8632_v6  ;;  %4717 = vmatprep.subr.bf16.mxu1 %v8633_v9  ;;  %p6852_p10 = por %p6851_p9, %p6850_p8 }
 0x5bc   :  { %p6853_p11 = pnand %p6852_p10, %p6846_p7 }
 0x5bd   :  { %4677 = vmatpush1.bf16.msra.mxu0 %v8634_v39  ;;  %4718 = vmatpush1.bf16.msra.mxu1 %v8635_v40 }
 0x5be   :  { %4678 = vmatprep.subr.bf16.mxu0 %v8548_v36  ;;  %4719 = vmatprep.subr.bf16.mxu1 %v8549_v18  ;;  %v8643_v36 = vld [vmem:[#allocation139_spill] sm:$0xff]  ;;  %v8644_v18 = vld [vmem:[#allocation140_spill] sm:$0xff] }
 0x5c1   :  { %4679 = vmatpush1.bf16.msra.mxu0 %v8550_v20  ;;  %4720 = vmatpush1.bf16.msra.mxu1 %v8636_v35  ;;  %v8649_v20 = vld [vmem:[#allocation145_spill] sm:$0xff] }
 0x5c2   :  { %4680 = vmatprep.subr.bf16.mxu0 %v8637_v55  ;;  %4721 = vmatprep.subr.bf16.mxu1 %v8553_v33  ;;  %v8652_v33 = vld [vmem:[#allocation148_spill] sm:$0xff] }
 0x5c5   :  { %4681 = vmatpush2.bf16.msra.mxu0 %v8554_v8  ;;  %4722 = vmatpush2.bf16.msra.mxu1 %v8555_v3  ;;  %v8653_v8 = vld [vmem:[#allocation149_spill] sm:$0xff]  ;;  %v6540_v3 = vld [vmem:[#allocation9 + $0x78] sm:$0xff]  }
 0x5c6   :  { %4682 = vmatprep.subr.bf16.mxu0 %v8556_v14  ;;  %4723 = vmatprep.subr.bf16.mxu1 %v8557_v24  ;;  %v6541_v14 = vld [vmem:[#allocation9 + $0x38] sm:$0xff]  }
 0x5c7   :  { %v6542_v24 = vld [vmem:[#allocation9 + $0xb8] sm:$0xff]  }
 0x5c9   :  { %4683 = vmatpush2.bf16.msra.mxu0 %v8558_v27  ;;  %4724 = vmatpush2.bf16.msra.mxu1 %v8471_v22  ;;  %v8640_v22 = vld [vmem:[#allocation136_spill] sm:$0xff]  ;;  %v6890_v27 = vmov 0.0  }
 0x5ca   :  { %4684 = vmatprep.subr.bf16.mxu0 %v8472_v10  ;;  %4725 = vmatprep.subr.bf16.mxu1 %v8473_v19  ;;  %v8641_v10 = vld [vmem:[#allocation137_spill] sm:$0xff]  ;;  %v8642_v19 = vld [vmem:[#allocation138_spill] sm:$0xff] }
 0x5cd   :  { %4685 = vmatpush2.bf16.msra.mxu0 %v8559_v42  ;;  %4726 = vmatpush2.bf16.msra.mxu1 %v8560_v50  ;;  %v8650_v42 = vld [vmem:[#allocation146_spill] sm:$0xff]  ;;  %v8651_v50 = vld [vmem:[#allocation147_spill] sm:$0xff] }
 0x5ce   :  { %4686 = vmatprep.subr.bf16.mxu0 %v8476_v7  ;;  %4727 = vmatprep.subr.bf16.mxu1 %v8477_v25  ;;  %v8645_v7 = vld [vmem:[#allocation141_spill] sm:$0xff]  ;;  %v8646_v25 = vld [vmem:[#allocation142_spill] sm:$0xff] }
 0x5d1   :  { %4687 = vmatpush2.bf16.msra.mxu0 %v8478_v63  ;;  %4728 = vmatpush2.bf16.msra.mxu1 %v8479_v60  ;;  %v8647_v63 = vld [vmem:[#allocation143_spill] sm:$0xff]  ;;  %v8648_v60 = vld [vmem:[#allocation144_spill] sm:$0xff] }
 0x5d2   :  { %4688 = vmatprep.subr.bf16.mxu0 %v8638_v21  ;;  %4729 = vmatprep.subr.bf16.mxu1 %v8639_v59 }
 0x5d5   :  { %4689 = vmatpush2.bf16.msra.mxu0 %v8640_v22  ;;  %4730 = vmatpush2.bf16.msra.mxu1 %v8641_v10 }
 0x5d6   :  { %4690 = vmatprep.subr.bf16.mxu0 %v8642_v19  ;;  %4731 = vmatprep.subr.bf16.mxu1 %v8643_v36 }
 0x5d9   :  { %4691 = vmatpush2.bf16.msra.mxu0 %v8644_v18  ;;  %4732 = vmatpush2.bf16.msra.mxu1 %v8645_v7 }
 0x5da   :  { %4692 = vmatprep.subr.bf16.mxu0 %v8646_v25  ;;  %4733 = vmatprep.subr.bf16.mxu1 %v8647_v63 }
 0x5dd   :  { %4693 = vmatpush2.bf16.msra.mxu0 %v8648_v60  ;;  %4734 = vmatpush2.bf16.msra.mxu1 %v8649_v20 }
 0x5de   :  { %4694 = vmatprep.subr.bf16.mxu0 %v8650_v42  ;;  %4735 = vmatprep.subr.bf16.mxu1 %v8651_v50 }
 0x5e1   :  { %4695 = vmatpush2.bf16.msra.mxu0 %v8652_v33  ;;  %4736 = vmatpush2.bf16.msra.mxu1 %v8653_v8 }
 0x5e2   :  { %5860 = vmatprep.subr.bf16.mxu0 %v6540_v3  ;;  %5900 = vmatprep.subr.bf16.mxu1 %v6890_v27 }
 0x5e4   :  { %4697 = vmatmul.mubr.bf16.vlgmr.msra.gmra.mxu0 %v7913_v53  ;;  %4738 = vmatmul.mubr.bf16.vlgmr.msra.gmra.mxu1 %v7913_v53  ;;  %v6559_v53 = vld [vmem:[#allocation9 + $0x8] sm:$0xff]  }
 0x5e5   :  { %5861 = vmatpush3.bf16.msra.mxu0 %v6541_v14  ;;  %5901 = vmatpush3.bf16.msra.mxu1 %v6542_v24 }
 0x5e6   :  { %5902 = vmatprep.subr.bf16.mxu1 %v6890_v27  ;;  %5862 = vmatprep.subr.bf16.mxu0 %v6543_v37 }
 0x5e7   :  { %5916 = vmatprep.mubr.msk.bf16.mxu1 %vm6891_vm1, %v6890_v27 }
 0x5e9   :  { %5863 = vmatpush3.bf16.msra.mxu0 %v6544_v26  ;;  %5903 = vmatpush3.bf16.msra.mxu1 %v6545_v34 }
 0x5ea   :  { %5904 = vmatprep.subr.bf16.mxu1 %v6890_v27  ;;  %5864 = vmatprep.subr.bf16.mxu0 %v6546_v32 }
 0x5ed   :  { %5865 = vmatpush3.bf16.msra.mxu0 %v6547_v28  ;;  %5905 = vmatpush3.bf16.msra.mxu1 %v6548_v31 }
 0x5ee   :  { %5906 = vmatprep.subr.bf16.mxu1 %v6890_v27  ;;  %5866 = vmatprep.subr.bf16.mxu0 %v6549_v47 }
 0x5f1   :  { %5867 = vmatpush3.bf16.msra.mxu0 %v6550_v44  ;;  %5907 = vmatpush3.bf16.msra.mxu1 %v6551_v15 }
 0x5f2   :  { %5908 = vmatprep.subr.bf16.mxu1 %v6890_v27  ;;  %5868 = vmatprep.subr.bf16.mxu0 %v6552_v38 }
 0x5f5   :  { %5869 = vmatpush3.bf16.msra.mxu0 %v6553_v54  ;;  %5909 = vmatpush3.bf16.msra.mxu1 %v6554_v51 }
 0x5f6   :  { %5910 = vmatprep.subr.bf16.mxu1 %v6890_v27  ;;  %5870 = vmatprep.subr.bf16.mxu0 %v6555_v23 }
 0x5f9   :  { %5871 = vmatpush3.bf16.msra.mxu0 %v6556_v30  ;;  %5911 = vmatpush3.bf16.msra.mxu1 %v6557_v29 }
 0x5fa   :  { %5872 = vmatprep.subr.bf16.mxu0 %v6558_v11  ;;  %5912 = vmatprep.subr.bf16.mxu1 %v6890_v27  ;;  %v4818_v11 = vrot.slane %v7906_v1, 7 }
 0x5fd   :  { %5873 = vmatpush3.bf16.msra.mxu0 %v6559_v53  ;;  %5913 = vmatpush3.bf16.msra.mxu1 %v6560_v61 }
 0x5fe   :  { %5874 = vmatprep.subr.bf16.mxu0 %v6561_v62  ;;  %5914 = vmatprep.subr.bf16.mxu1 %v6890_v27 }
 0x601   :  { %5875 = vmatpush3.bf16.msra.mxu0 %v6562_v17  ;;  %5915 = vmatpush3.bf16.msra.mxu1 %v6563_v41 }
 0x602   :  { %5920 = vmatprep.subr.bf16.mxu0 %v6890_v27 }
 0x604   :  { %5917 = vmatmul.mubr.bf16.vlgmr.msra.gmra.mxu1 %v4861_v46 }
 0x664   :  { %v4616_v12 = vpop.f32.mrf.mxu0  ;;  %v4657_v16 = vpop.f32.mrf.mxu1 }
 0x665   :  { %v4754_v55 = vrot.slane %v4616_v12, 5  ;;  %v4756_v21 = vrot.slane %v4657_v16, 5 }
 0x666   :  { %v4618_v45 = vpop.f32.mrf.mxu0  ;;  %v4659_v6 = vpop.f32.mrf.mxu1 }
 0x667   :  { %v4755_v59 = vrot.slane %v4618_v45, 5  ;;  %v4770_v22 = vadd.f32 %v4754_v55, %v8526_v43  ;;  %v4772_v10 = vadd.f32 %v4756_v21, %v8527_v49  ;;  %v4757_v19 = vrot.slane %v4659_v6, 5 }
 0x668   :  { %v4620_v9 = vpop.f32.mrf.mxu0  ;;  %v4661_v39 = vpop.f32.mrf.mxu1 }
 0x669   :  { %v4771_v36 = vadd.f32 %v4755_v59, %v8528_v13  ;;  %v5820_v18 = vmul.f32 -1.442695, %v4770_v22  ;;  %v5822_v7 = vmul.f32 -1.442695, %v4772_v10  ;;  %v4773_v25 = vadd.f32 %v4757_v19, %v8529_v2 }
 0x66a   :  { %v4621_v40 = vpop.f32.mrf.mxu0  ;;  %v4662_v35 = vpop.f32.mrf.mxu1 }
 0x66b   :  { %v5821_v63 = vmul.f32 -1.442695, %v4771_v36  ;;  %6669 = vpow2.f32 %v5820_v18  ;;  %v5823_v60 = vmul.f32 -1.442695, %v4773_v25  ;;  %v6565_v25 = vld [vmem:[#allocation12 + $0x38] sm:$0xff]  }
 0x66c   :  { %6671 = vpow2.f32 %v5822_v7 }
 0x66d   :  { %6673 = vpow2.f32 %v5821_v63 }
 0x66e   :  { %6675 = vpow2.f32 %v5823_v60  ;;  %v6566_v60 = vld [vmem:[#allocation12 + $0x30] sm:$0xff]  }
 0x678   :  { %v6670_v20 = vpop.eup %6669 }
 0x679   :  { %v6672_v42 = vpop.eup %6671  ;;  %v4784_v33 = vadd.f32 1.0, %v6670_v20  ;;  %v6569_v20 = vld [vmem:[#allocation12 + $0x18] sm:$0xff]  }
 0x67a   :  { %v6674_v50 = vpop.eup %6673  ;;  %v4796_v43 = vadd.f32 1.0, %v6672_v42 }
 0x67b   :  { %v6676_v8 = vpop.eup %6675  ;;  %v4785_v49 = vadd.f32 1.0, %v6674_v50  ;;  %6677 = vrcp.f32 %v4784_v33  ;;  %v6570_v50 = vld [vmem:[#allocation12 + $0x10] sm:$0xff]  }
 0x67c   :  { %6679 = vrcp.f32 %v4796_v43  ;;  %v4797_v2 = vadd.f32 1.0, %v6676_v8  ;;  %v6571_v8 = vld [vmem:[#allocation12 + $0x8] sm:$0xff]  }
 0x67d   :  { %6681 = vrcp.f32 %v4785_v49 }
 0x6a4   :  { %v4698_v3 = vpop.f32.mrf.mxu0  ;;  %v4739_v14 = vpop.f32.mrf.mxu1 }
 0x6a5   :  { %v4758_v13 = vrot.slane %v4698_v3, 5  ;;  %v4760_v24 = vrot.slane %v4739_v14, 5  ;;  %v6572_v3 = vld [vmem:[#allocation12] sm:$0xff]  }
 0x6a6   :  { %v4700_v37 = vpop.f32.mrf.mxu0  ;;  %v4741_v26 = vpop.f32.mrf.mxu1 }
 0x6a7   :  { %v4774_v34 = vadd.f32 %v4758_v13, %v7577_v48  ;;  %v4776_v32 = vadd.f32 %v4760_v24, %v7580_v4  ;;  %v4759_v28 = vrot.slane %v4700_v37, 5  ;;  %v4761_v31 = vrot.slane %v4741_v26, 5  ;;  %v6678_v48 = vpop.eup %6677  ;;  %v5826_v13 = vld [vmem:[#allocation11] ss:$0 sm:$0xff] }
 0x6a8   :  { %v4702_v47 = vpop.f32.mrf.mxu0  ;;  %v4743_v44 = vpop.f32.mrf.mxu1 }
 0x6a9   :  { %6683 = vtanh.f32 %v4774_v34  ;;  %v5824_v15 = vmul.f32 -1.442695, %v4776_v32  ;;  %v4775_v38 = vadd.f32 %v4759_v28, %v7582_v58  ;;  %v4777_v54 = vadd.f32 %v4761_v31, %v7584_v56  ;;  %v6680_v4 = vpop.eup %6679 }
 0x6aa   :  { %6685 = vrcp.f32 %v4797_v2  ;;  %v4703_v51 = vpop.f32.mrf.mxu0  ;;  %v4744_v23 = vpop.f32.mrf.mxu1  ;;  %v4822_v62 = vmul.f32 %v6680_v4, %v4818_v11  ;;  %v4819_v58 = vrot.slane %v7909_v57, 7  ;;  %v8654_v47 = vlaneseq }
 0x6ab   :  { %6687 = vpow2.f32 %v5824_v15  ;;  %v5825_v30 = vmul.f32 -1.442695, %v4777_v54  ;;  %v6682_v29 = vpop.eup %6681  ;;  %v5851_v15 = vld [vmem:[#allocation14] ss:$0 sm:$0xff] }
 0x6ac   :  { %6689 = vtanh.f32 %v4775_v38  ;;  %v5255_v44 = vand.u32 127, %v8654_v47 }
 0x6ad   :  { %6691 = vpow2.f32 %v5825_v30 }
 0x6ae   :  { %vm5256_vm2 = vcmp.lt.s32.totalorder %v5255_v44, 5 }
 0x6b6   :  { %v6684_v53 = vpop.eup %6683 }
 0x6b7   :  { %v6686_v61 = vpop.eup %6685  ;;  %v4824_v17 = vmul.f32 %v6684_v53, %v6678_v48 }
 0x6b8   :  { %v6688_v41 = vpop.eup %6687  ;;  %v4823_v16 = vmul.f32 %v6686_v61, %v4819_v58 }
 0x6b9   :  { %v6690_v56 = vpop.eup %6689  ;;  %v4826_v0 = vadd.f32 %v4824_v17, %v4822_v62  ;;  %v4810_v46 = vadd.f32 1.0, %v6688_v41 }
 0x6ba   :  { %v6692_v12 = vpop.eup %6691  ;;  %v4825_v45 = vmul.f32 %v6690_v56, %v6682_v29 }
 0x6bb   :  { %6693 = vtanh.f32 %v4826_v0  ;;  %v4811_v6 = vadd.f32 1.0, %v6692_v12 }
 0x6bc   :  { %6695 = vrcp.f32 %v4810_v46  ;;  %v4827_v9 = vadd.f32 %v4825_v45, %v4823_v16 }
 0x6bd   :  { %6697 = vrcp.f32 %v4811_v6 }
 0x6be   :  { %6699 = vtanh.f32 %v4827_v9 }
 0x6c4   :  { %v5135_v42 = vpop.f32.mrf.mxu1 }
 0x6c6   :  { %v5918_v33 = vpop.f32.mrf.mxu1 }
 0x6c8   :  { %v6694_v1 = vpop.eup %6693  ;;  %v5138_v43 = vpop.f32.mrf.mxu1 }
 0x6c9   :  { %v6696_v39 = vpop.eup %6695 }
 0x6ca   :  { %v6698_v40 = vpop.eup %6697  ;;  %v4830_v55 = vmul.f32 %v6696_v39, %v6694_v1  ;;  %v5919_v49 = vpop.f32.mrf.mxu1 }
 0x6cb   :  { %v6700_v35 = vpop.eup %6699 }
 0x6cc   :  { %v4831_v21 = vmul.f32 %v6700_v35, %v6698_v40 }
 0x6ce   :  { %v4834_v59 = vcombine.low %v4830_v55, %v4831_v21 }
 0x6d0   :  { %v4841_v57 = vrot.slane %v4834_v59, %v7597_v5 }
 0x6d2   :  { %v4842_v22 = vcombine.high %v4841_v57, %v4841_v57 }
 0x6d4   :  { %v4849_v10 = vrot.slane %v4842_v22, %v7597_v5  ;;  %v6567_v5 = vld [vmem:[#allocation12 + $0x28] sm:$0xff]  }
 0x6d6   :  { %v4850_v19 = vcombine.high %v4849_v10, %v4849_v10 }
 0x6d8   :  { %4853 = vst.msk [vmem:[#allocation2 + $0x3] ss:$4 sm:$0x3] %vm7603_vm0, %v4850_v19 }
 0x6df   :  { %v4854_v36 = vld [vmem:[#allocation2] sm:$0xff] }
 0x6e0   :  { %v4857_v18 = vcombine.high %v4854_v36, %v4854_v36  ;;  %v4859_v63 = vpack.c.bf16 %v4854_v36, %v4854_v36 }
 0x6e2   :  { %v4860_v7 = vpack.c.bf16 %v4857_v18, %v4857_v18 }
 0x6e4   :  { %5093 = vmatprep.mubr.bf16.mxu0 %v4860_v7 }
 0x6e5   :  { %5094 = vmatmul.mubr.bf16.vlgmr.msra.gmra.mxu0 %v4859_v63 }
 0x6e6   :  { %5921 = vmatpush3.bf16.msra.mxu0 %v6565_v25  ;;  %5936 = vmatprep.mubr.msk.bf16.mxu0 %vm6891_vm1, %v6890_v27 }
 0x6e7   :  { %5922 = vmatprep.subr.bf16.mxu0 %v6890_v27 }
 0x6ea   :  { %5923 = vmatpush3.bf16.msra.mxu0 %v6566_v60 }
 0x6eb   :  { %5924 = vmatprep.subr.bf16.mxu0 %v6890_v27 }
 0x6ee   :  { %5925 = vmatpush3.bf16.msra.mxu0 %v6567_v5 }
 0x6ef   :  { %5926 = vmatprep.subr.bf16.mxu0 %v6890_v27 }
 0x6f2   :  { %5927 = vmatpush3.bf16.msra.mxu0 %v6568_v52 }
 0x6f3   :  { %5928 = vmatprep.subr.bf16.mxu0 %v6890_v27 }
 0x6f6   :  { %5929 = vmatpush3.bf16.msra.mxu0 %v6569_v20 }
 0x6f7   :  { %5930 = vmatprep.subr.bf16.mxu0 %v6890_v27 }
 0x6fa   :  { %5931 = vmatpush3.bf16.msra.mxu0 %v6570_v50 }
 0x6fb   :  { %5932 = vmatprep.subr.bf16.mxu0 %v6890_v27 }
 0x6fe   :  { %5933 = vmatpush3.bf16.msra.mxu0 %v6571_v8 }
 0x6ff   :  { %5934 = vmatprep.subr.bf16.mxu0 %v6890_v27 }
 0x702   :  { %5935 = vmatpush3.bf16.msra.mxu0 %v6572_v3 }
 0x7a5   :  { %v5876_v14 = vpop.f32.mrf.mxu0 }
 0x7a7   :  { %v5877_v24 = vpop.f32.mrf.mxu0 }
 0x7a8   :  { %v5878_v2 = vadd.f32 %v5877_v24, %v5876_v14 }
 0x7a9   :  { %v5879_v37 = vpop.f32.mrf.mxu0 }
 0x7aa   :  { %v5096_v26 = vadd.f32 %v5878_v2, %v5826_v13 }
 0x7ab   :  { %v5880_v34 = vpop.f32.mrf.mxu0 }
 0x7ac   :  { %v5136_v32 = vadd.f32 %v5135_v42, %v5096_v26 }
 0x7ae   :  { %v5141_v28 = vmax.f32 %v5136_v32, 0.0 }
 0x7b0   :  { %v5142_v31 = vpack.c.bf16 %v5141_v28, %v5141_v28 }
 0x7b2   :  { %5937 = vmatmul.mubr.bf16.vlgmr.msra.gmra.mxu0 %v5142_v31 }
 0x872   :  { %v5248_v38 = vpop.f32.mrf.mxu0 }
 0x873   :  { %v5249_v54 = vadd.f32 %v5851_v15, %v5248_v38 }
 0x874   :  { %v5938_v27 = vpop.f32.mrf.mxu0 }
 0x875   :  { %v5257_v51 = vsel %vm5256_vm2, %v5249_v54, -1e+30 }
 0x876   :  { %v5251_v23 = vpop.f32.mrf.mxu0  ;;  %v5259_v30 = vsel %vm5258_vm3, %v5257_v51, -inf }
 0x877   :  { %5260 = vmax.xlane.f32.xlu0 %v5259_v30 }
 0x878   :  { %v5939_v48 = vpop.f32.mrf.mxu0 }
 0x900   :  { %v5261_v4 = vpop.xlane.xlu0 %5260 }
 0x901   :  { %v5262_v29 = vsub.f32 %v5249_v54, %v5261_v4 }
 0x903   :  { %v5263_v11 = vmul.f32 1.442695, %v5262_v29 }
 0x905   :  { %6701 = vpow2.f32 %v5263_v11 }
 0x912   :  { %v6702_v53 = vpop.eup %6701 }
 0x913   :  { %v5265_v61 = vsel %vm5256_vm2, %v6702_v53, 0.0 }
 0x914   :  { %v5266_v62 = vsel %vm5258_vm3, %v5265_v61, 0.0 }
 0x915   :  { %5267 = vadd.xlane.f32.xlu0 %v5266_v62 }
 0x99e   :  { %v5268_v17 = vpop.xlane.xlu0 %5267 }
 0x99f   :  { %6703 = vrcp.f32 %v5268_v17 }
 0x9ac   :  { %v6704_v41 = vpop.eup %6703 }
 0x9ad   :  { %v5270_v58 = vmul.f32 %v6704_v41, %v5265_v61 }
 0x9af   :  { %5271 = vst [vmem:[#allocation15] sm:$0xf] %v5270_v58 }
 0x9b0   :  { %6856 = shalt.err (!%p6853_p11)
}
 0x9b1   :  { %5281 = dma.vmem_to_hbm [thread:$0]  %s5279_s19, 64, %s8035_s10, [#allocation5]  }
 0x9b2   :  { %6873 = dma.done.wait [#allocation5], 64  }
 0x9b3   :  { %6874 = vsyncadd [#allocation5], 4294967232 }
 0x9b4   :  { %5285 = vsyncpa [#allocation4], 1 }
 0x9b5   :  { %5286 = vsyncpa [#allocation7], 1 }
 0x9b6   :  { %5287 = vsyncpa [#allocation10], 1 }
 0x9b7   :  { %5288 = vsyncpa [#allocation13], 1 }
 0x9b8   :  { %5289 = vsyncpa [#allocation5], 1 }

</bundles_post_ra>
